<compile_context>
chip_gen: v7x
topology: tpu7x:2x2x1
jax: 0.10.0
libtpu: 0.0.40
codegen_flags: <defaults>
</compile_context>

<pallas_src>
import functools

import jax
import jax.numpy as jnp
from jax.experimental import pallas as pl
from jax.experimental.pallas import tpu as pltpu


def _round_up(x, m):
    return (x + m - 1) // m * m


# ----------------------------------------------------------------------------
# Fused kernel: DoubleSepConv (+ folded BN) + MaxPool2d(2), one batch element
# per grid step.
# ----------------------------------------------------------------------------
def down_sep_block_kernel(x_ref, w1_ref, a1_ref, b1_ref, w2_ref, a2_ref, b2_ref,
                          c_ref, d_ref, hp_ref, *, H, W, He, We):
    # x_ref : (1, He+2, We+2, Cin)  -- input zero-padded by 2 (He=H+2, We>=W+2)
    # w1_ref: (3, 3, Cin, Cmid)     -- depthwise*pointwise pre-fused weights
    # w2_ref: (3, 3, Cmid, Cout)
    # a*,b* : (1, C)                -- folded eval-mode BatchNorm scale/shift
    cin = x_ref.shape[-1]
    cmid = w1_ref.shape[-1]
    cout = w2_ref.shape[-1]

    x = x_ref[0]                                  # (He+2, We+2, Cin)

    # ---- Conv #1: 9 accumulated MXU matmuls over the extended (He, We) grid.
    acc1 = jnp.zeros((He * We, cmid), jnp.float32)
    for u in range(3):
        for v in range(3):
            patch = x[u:u + He, v:v + We, :].reshape(He * We, cin)
            acc1 = acc1 + jnp.dot(patch, w1_ref[u, v],
                                  preferred_element_type=jnp.float32)
    # Module order is conv -> ReLU -> BatchNorm (intentional, matches Sequential).
    y = jnp.maximum(acc1, 0.0) * a1_ref[...] + b1_ref[...]
    y = y.reshape(He, We, cmid)

    # Zero everything outside the valid HxW interior: y is now exactly the
    # zero-padded conv#1 output that conv#2 needs (no padded VMEM scratch).
    ii = jax.lax.broadcasted_iota(jnp.int32, (He, We, cmid), 0)
    jj = jax.lax.broadcasted_iota(jnp.int32, (He, We, cmid), 1)
    interior = (ii >= 1) & (ii <= H) & (jj >= 1) & (jj <= W)
    y = jnp.where(interior, y, 0.0)

    # ---- Conv #2: 9 accumulated MXU matmuls over the valid (H, W) grid.
    acc2 = jnp.zeros((H * W, cout), jnp.float32)
    for u in range(3):
        for v in range(3):
            patch = y[u:u + H, v:v + W, :].reshape(H * W, cmid)
            acc2 = acc2 + jnp.dot(patch, w2_ref[u, v],
                                  preferred_element_type=jnp.float32)
    c = jnp.maximum(acc2, 0.0) * a2_ref[...] + b2_ref[...]
    c3 = c.reshape(H, W, cout)
    c_ref[0] = c3

    # ---- Fused MaxPool2d(2) while the tile is still in VMEM.
    # Pool over H pairs (free reshape on the untiled dim), stash in scratch,
    # then pool over W pairs with stride-2 sublane reads from the scratch ref.
    c4 = c3.reshape(H // 2, 2, W, cout)
    hp_ref[...] = jnp.maximum(c4[:, 0, :, :], c4[:, 1, :, :])
    d_ref[0] = jnp.maximum(hp_ref[:, pl.ds(0, W // 2, stride=2), :],
                           hp_ref[:, pl.ds(1, W // 2, stride=2), :])
    # TODO(synk): nn.Dropout(0.5) is identity in eval mode; training-mode
    # stochastic mask (pltpu.prng_*) not implemented.


# ----------------------------------------------------------------------------
# Wrapper
# ----------------------------------------------------------------------------
def down_sep_block(x_nchw, p):
    N, Cin, H, W = x_nchw.shape
    Cmid = p["w1"].shape[-1]
    Cout = p["w2"].shape[-1]
    assert H % 2 == 0 and W % 2 == 0

    He = H + 2                        # extended (halo) output height for conv#1
    We = _round_up(W + 2, 8)          # extended width, sublane-aligned

    x = jnp.transpose(x_nchw, (0, 2, 3, 1)).astype(jnp.float32)   # NHWC
    # Pad by 2 on top/left and enough on bottom/right for the extended domain;
    # extra right columns are zeroed again by the in-kernel interior mask.
    x_pad = jnp.pad(x, ((0, 0), (2, 2), (2, We - W), (0, 0)))     # (N, He+2, We+2, Cin)

    kern = functools.partial(down_sep_block_kernel, H=H, W=W, He=He, We=We)

    c, d = pl.pallas_call(
        kern,
        out_shape=(jax.ShapeDtypeStruct((N, H, W, Cout), jnp.float32),
                   jax.ShapeDtypeStruct((N, H // 2, W // 2, Cout), jnp.float32)),
        grid_spec=pltpu.PrefetchScalarGridSpec(
            num_scalar_prefetch=0,
            grid=(N,),
            in_specs=[
                pl.BlockSpec((1, He + 2, We + 2, Cin), lambda n: (n, 0, 0, 0)),
                pl.BlockSpec((3, 3, Cin, Cmid), lambda n: (0, 0, 0, 0)),
                pl.BlockSpec((1, Cmid), lambda n: (0, 0)),
                pl.BlockSpec((1, Cmid), lambda n: (0, 0)),
                pl.BlockSpec((3, 3, Cmid, Cout), lambda n: (0, 0, 0, 0)),
                pl.BlockSpec((1, Cout), lambda n: (0, 0)),
                pl.BlockSpec((1, Cout), lambda n: (0, 0)),
            ],
            out_specs=(
                pl.BlockSpec((1, H, W, Cout), lambda n: (n, 0, 0, 0)),
                pl.BlockSpec((1, H // 2, W // 2, Cout), lambda n: (n, 0, 0, 0)),
            ),
            scratch_shapes=[pltpu.VMEM((H // 2, W, Cout), jnp.float32)],
        ),
        compiler_params=pltpu.CompilerParams(
            dimension_semantics=("parallel",),          # both TCs on v7x
            vmem_limit_bytes=32 * 1024 * 1024,
        ),
    )(x_pad, p["w1"], p["a1"], p["b1"], p["w2"], p["a2"], p["b2"])
    # TODO(synk): for large images add an H-tile grid axis with a 1-row halo
    # (overlapping windows) so per-step VMEM stays bounded (v7x: 64 MiB).

    return jnp.transpose(c, (0, 3, 1, 2)), jnp.transpose(d, (0, 3, 1, 2))


# ----------------------------------------------------------------------------
# Deterministic parameter init (shapes from the PyTorch __init__), with
# wrapper-side fusion: depthwise(3x3, diagonal) x pointwise(1x1) -> dense 3x3,
# and eval-mode BatchNorm folded into scale/shift.
# ----------------------------------------------------------------------------
def init_params(keys, cin, cout):
    eps = 1e-5

    def bn_fold(k0, k1, k2, k3, c):
        gamma = 1.0 + 0.1 * jax.random.normal(k0, (c,), jnp.float32)
        beta = 0.1 * jax.random.normal(k1, (c,), jnp.float32)
        rmean = 0.1 * jax.random.normal(k2, (c,), jnp.float32)
        rvar = 0.5 + jnp.abs(jax.random.normal(k3, (c,), jnp.float32))
        scale = gamma / jnp.sqrt(rvar + eps)
        shift = beta - rmean * scale
        return scale.reshape(1, c), shift.reshape(1, c)

    # torch layouts: depthwise (C,1,3,3), pointwise (Cout,Cin,1,1)
    dw1_t = 0.3 * jax.random.normal(keys[0], (cin, 1, 3, 3), jnp.float32)
    pw1_t = 0.3 * jax.random.normal(keys[1], (cout, cin, 1, 1), jnp.float32)
    a1, b1 = bn_fold(keys[2], keys[3], keys[4], keys[5], cout)
    dw2_t = 0.3 * jax.random.normal(keys[6], (cout, 1, 3, 3), jnp.float32)
    pw2_t = 0.3 * jax.random.normal(keys[7], (cout, cout, 1, 1), jnp.float32)
    a2, b2 = bn_fold(keys[8], keys[9], keys[10], keys[11], cout)

    dw1 = jnp.transpose(dw1_t, (2, 3, 1, 0))        # HWIO (3,3,1,Cin)
    pw1 = jnp.transpose(pw1_t[:, :, 0, 0], (1, 0))  # (Cin, Cout)
    dw2 = jnp.transpose(dw2_t, (2, 3, 1, 0))        # HWIO (3,3,1,Cout)
    pw2 = jnp.transpose(pw2_t[:, :, 0, 0], (1, 0))  # (Cout, Cout)

    # depthwise is a diagonal per-channel conv -> fused dense 3x3 kernel:
    # w[u,v,ci,co] = dw[u,v,ci] * pw[ci,co]
    w1 = dw1[:, :, 0, :, None] * pw1[None, None, :, :]   # (3,3,Cin,Cout)
    w2 = dw2[:, :, 0, :, None] * pw2[None, None, :, :]   # (3,3,Cout,Cout)

    return dict(w1=w1, a1=a1, b1=b1, w2=w2, a2=a2, b2=b2,
                dw1=dw1, pw1=pw1, dw2=dw2, pw2=pw2)


# ----------------------------------------------------------------------------
# Pure-JAX reference (un-fused depthwise + pointwise XLA convs, HIGHEST prec)
# ----------------------------------------------------------------------------
def reference_forward(x_nchw, p):
    x = jnp.transpose(x_nchw, (0, 2, 3, 1)).astype(jnp.float32)
    N, H, W, Cin = x.shape
    Cout = p["pw2"].shape[1]
    dn = ("NHWC", "HWIO", "NHWC")
    hi = jax.lax.Precision.HIGHEST

    def sep_block(y, dw, pw, a, b, groups):
        y = jax.lax.conv_general_dilated(y, dw, (1, 1), "SAME",
                                         dimension_numbers=dn,
                                         feature_group_count=groups,
                                         precision=hi)
        cin_, cout_ = pw.shape
        y = jax.lax.conv_general_dilated(y, pw.reshape(1, 1, cin_, cout_),
                                         (1, 1), "SAME", dimension_numbers=dn,
                                         precision=hi)
        y = jnp.maximum(y, 0.0)
        return y * a + b

    y = sep_block(x, p["dw1"], p["pw1"], p["a1"], p["b1"], Cin)
    c = sep_block(y, p["dw2"], p["pw2"], p["a2"], p["b2"], Cout)
    down = c.reshape(N, H // 2, 2, W // 2, 2, Cout).max(axis=(2, 4))
    return jnp.transpose(c, (0, 3, 1, 2)), jnp.transpose(down, (0, 3, 1, 2))


if __name__ == "__main__":
    N, Cin, H, W, Cout = 2, 4, 16, 16, 8

    key = jax.random.PRNGKey(0)
    keys = jax.random.split(key, 16)
    x = jax.random.normal(keys[0], (N, Cin, H, W), jnp.float32)
    params = init_params(keys[1:], Cin, Cout)

    c, down = down_sep_block(x, params)
    jax.block_until_ready((c, down))

    assert c.shape == (N, Cout, H, W)
    assert down.shape == (N, Cout, H // 2, W // 2)

    c_ref, down_ref = reference_forward(x, params)

    def check(a, b, name):
        # Kernel uses default (single-pass) MXU precision per perf feedback;
        # compare against the HIGHEST-precision reference with a tolerance
        # scaled to the output magnitude.
        err = float(jnp.max(jnp.abs(a - b)))
        scale = float(jnp.max(jnp.abs(b)))
        assert err <= 2e-2 * scale + 1e-2, f"{name} mismatch: err={err}, scale={scale}"

    check(c, c_ref, "conv")
    check(down, down_ref, "maxpool")

    print("KERNEL_OK")
</pallas_src>

<mosaic_0001>
module attributes {stable_mosaic.version = 11 : i64} {
  func.func @down_sep_block_kernel(%arg0: i32, %arg1: memref<1x20x26x4xf32, #tpu.memory_space<vmem>>, %arg2: memref<3x3x4x8xf32, #tpu.memory_space<vmem>>, %arg3: memref<1x8xf32, #tpu.memory_space<vmem>>, %arg4: memref<1x8xf32, #tpu.memory_space<vmem>>, %arg5: memref<3x3x8x8xf32, #tpu.memory_space<vmem>>, %arg6: memref<1x8xf32, #tpu.memory_space<vmem>>, %arg7: memref<1x8xf32, #tpu.memory_space<vmem>>, %arg8: memref<1x16x16x8xf32, #tpu.memory_space<vmem>>, %arg9: memref<1x8x8x8xf32, #tpu.memory_space<vmem>>, %arg10: memref<8x16x8xf32, #tpu.memory_space<vmem>>) attributes {dimension_semantics = [#tpu.dimension_semantics<parallel>], iteration_bounds = array<i64: 2>, scalar_prefetch = 0 : i64, scratch_operands = 1 : i64, tpu.core_type = #tpu.core_type<tc>, window_params = [{transform_indices = @transform_0, window_bounds = array<i64: 1, 20, 26, 4>}, {pipeline_mode = #tpu.pipeline_mode<synchronous>, transform_indices = @transform_1, window_bounds = array<i64: 3, 3, 4, 8>}, {pipeline_mode = #tpu.pipeline_mode<synchronous>, transform_indices = @transform_2, window_bounds = array<i64: 1, 8>}, {pipeline_mode = #tpu.pipeline_mode<synchronous>, transform_indices = @transform_3, window_bounds = array<i64: 1, 8>}, {pipeline_mode = #tpu.pipeline_mode<synchronous>, transform_indices = @transform_4, window_bounds = array<i64: 3, 3, 8, 8>}, {pipeline_mode = #tpu.pipeline_mode<synchronous>, transform_indices = @transform_5, window_bounds = array<i64: 1, 8>}, {pipeline_mode = #tpu.pipeline_mode<synchronous>, transform_indices = @transform_6, window_bounds = array<i64: 1, 8>}, {transform_indices = @transform_7, window_bounds = array<i64: 1, 16, 16, 8>}, {transform_indices = @transform_8, window_bounds = array<i64: 1, 8, 8, 8>}]} {
    %c0 = arith.constant 0 : index
    %c0_0 = arith.constant 0 : index
    %c0_1 = arith.constant 0 : index
    %c0_2 = arith.constant 0 : index
    %0 = vector.load %arg1[%c0, %c0_0, %c0_1, %c0_2] : memref<1x20x26x4xf32, #tpu.memory_space<vmem>>, vector<1x20x26x4xf32>
    %1 = vector.shape_cast %0 : vector<1x20x26x4xf32> to vector<20x26x4xf32>
    %cst = arith.constant 0.000000e+00 : f32
    %2 = vector.broadcast %cst : f32 to vector<432x8xf32>
    %3 = vector.extract_strided_slice %1 {offsets = [0, 0, 0], sizes = [18, 24, 4], strides = [1, 1, 1]} : vector<20x26x4xf32> to vector<18x24x4xf32>
    %4 = vector.shape_cast %3 : vector<18x24x4xf32> to vector<432x4xf32>
    %c0_3 = arith.constant 0 : index
    %c0_4 = arith.constant 0 : index
    %c0_5 = arith.constant 0 : index
    %c0_6 = arith.constant 0 : index
    %5 = vector.load %arg2[%c0_3, %c0_4, %c0_5, %c0_6] : memref<3x3x4x8xf32, #tpu.memory_space<vmem>>, vector<1x1x4x8xf32>
    %6 = vector.shape_cast %5 : vector<1x1x4x8xf32> to vector<4x8xf32>
    %cst_7 = arith.constant dense<0.000000e+00> : vector<432x8xf32>
    %7 = tpu.matmul %4, %6, %cst_7 {dimension_numbers = #tpu.dot_dimension_numbers<[1], [0], [0], [1], [0, 0, 1, 1], [], []>} : vector<432x4xf32>, vector<4x8xf32>, vector<432x8xf32> -> vector<432x8xf32>
    %8 = arith.addf %2, %7 : vector<432x8xf32>
    %9 = vector.extract_strided_slice %1 {offsets = [0, 1, 0], sizes = [18, 24, 4], strides = [1, 1, 1]} : vector<20x26x4xf32> to vector<18x24x4xf32>
    %10 = vector.shape_cast %9 : vector<18x24x4xf32> to vector<432x4xf32>
    %c0_8 = arith.constant 0 : index
    %c1 = arith.constant 1 : index
    %c0_9 = arith.constant 0 : index
    %c0_10 = arith.constant 0 : index
    %11 = vector.load %arg2[%c0_8, %c1, %c0_9, %c0_10] : memref<3x3x4x8xf32, #tpu.memory_space<vmem>>, vector<1x1x4x8xf32>
    %12 = vector.shape_cast %11 : vector<1x1x4x8xf32> to vector<4x8xf32>
    %cst_11 = arith.constant dense<0.000000e+00> : vector<432x8xf32>
    %13 = tpu.matmul %10, %12, %cst_11 {dimension_numbers = #tpu.dot_dimension_numbers<[1], [0], [0], [1], [0, 0, 1, 1], [], []>} : vector<432x4xf32>, vector<4x8xf32>, vector<432x8xf32> -> vector<432x8xf32>
    %14 = arith.addf %8, %13 : vector<432x8xf32>
    %15 = vector.extract_strided_slice %1 {offsets = [0, 2, 0], sizes = [18, 24, 4], strides = [1, 1, 1]} : vector<20x26x4xf32> to vector<18x24x4xf32>
    %16 = vector.shape_cast %15 : vector<18x24x4xf32> to vector<432x4xf32>
    %c0_12 = arith.constant 0 : index
    %c2 = arith.constant 2 : index
    %c0_13 = arith.constant 0 : index
    %c0_14 = arith.constant 0 : index
    %17 = vector.load %arg2[%c0_12, %c2, %c0_13, %c0_14] : memref<3x3x4x8xf32, #tpu.memory_space<vmem>>, vector<1x1x4x8xf32>
    %18 = vector.shape_cast %17 : vector<1x1x4x8xf32> to vector<4x8xf32>
    %cst_15 = arith.constant dense<0.000000e+00> : vector<432x8xf32>
    %19 = tpu.matmul %16, %18, %cst_15 {dimension_numbers = #tpu.dot_dimension_numbers<[1], [0], [0], [1], [0, 0, 1, 1], [], []>} : vector<432x4xf32>, vector<4x8xf32>, vector<432x8xf32> -> vector<432x8xf32>
    %20 = arith.addf %14, %19 : vector<432x8xf32>
    %21 = vector.extract_strided_slice %1 {offsets = [1, 0, 0], sizes = [18, 24, 4], strides = [1, 1, 1]} : vector<20x26x4xf32> to vector<18x24x4xf32>
    %22 = vector.shape_cast %21 : vector<18x24x4xf32> to vector<432x4xf32>
    %c1_16 = arith.constant 1 : index
    %c0_17 = arith.constant 0 : index
    %c0_18 = arith.constant 0 : index
    %c0_19 = arith.constant 0 : index
    %23 = vector.load %arg2[%c1_16, %c0_17, %c0_18, %c0_19] : memref<3x3x4x8xf32, #tpu.memory_space<vmem>>, vector<1x1x4x8xf32>
    %24 = vector.shape_cast %23 : vector<1x1x4x8xf32> to vector<4x8xf32>
    %cst_20 = arith.constant dense<0.000000e+00> : vector<432x8xf32>
    %25 = tpu.matmul %22, %24, %cst_20 {dimension_numbers = #tpu.dot_dimension_numbers<[1], [0], [0], [1], [0, 0, 1, 1], [], []>} : vector<432x4xf32>, vector<4x8xf32>, vector<432x8xf32> -> vector<432x8xf32>
    %26 = arith.addf %20, %25 : vector<432x8xf32>
    %27 = vector.extract_strided_slice %1 {offsets = [1, 1, 0], sizes = [18, 24, 4], strides = [1, 1, 1]} : vector<20x26x4xf32> to vector<18x24x4xf32>
    %28 = vector.shape_cast %27 : vector<18x24x4xf32> to vector<432x4xf32>
    %c1_21 = arith.constant 1 : index
    %c1_22 = arith.constant 1 : index
    %c0_23 = arith.constant 0 : index
    %c0_24 = arith.constant 0 : index
    %29 = vector.load %arg2[%c1_21, %c1_22, %c0_23, %c0_24] : memref<3x3x4x8xf32, #tpu.memory_space<vmem>>, vector<1x1x4x8xf32>
    %30 = vector.shape_cast %29 : vector<1x1x4x8xf32> to vector<4x8xf32>
    %cst_25 = arith.constant dense<0.000000e+00> : vector<432x8xf32>
    %31 = tpu.matmul %28, %30, %cst_25 {dimension_numbers = #tpu.dot_dimension_numbers<[1], [0], [0], [1], [0, 0, 1, 1], [], []>} : vector<432x4xf32>, vector<4x8xf32>, vector<432x8xf32> -> vector<432x8xf32>
    %32 = arith.addf %26, %31 : vector<432x8xf32>
    %33 = vector.extract_strided_slice %1 {offsets = [1, 2, 0], sizes = [18, 24, 4], strides = [1, 1, 1]} : vector<20x26x4xf32> to vector<18x24x4xf32>
    %34 = vector.shape_cast %33 : vector<18x24x4xf32> to vector<432x4xf32>
    %c1_26 = arith.constant 1 : index
    %c2_27 = arith.constant 2 : index
    %c0_28 = arith.constant 0 : index
    %c0_29 = arith.constant 0 : index
    %35 = vector.load %arg2[%c1_26, %c2_27, %c0_28, %c0_29] : memref<3x3x4x8xf32, #tpu.memory_space<vmem>>, vector<1x1x4x8xf32>
    %36 = vector.shape_cast %35 : vector<1x1x4x8xf32> to vector<4x8xf32>
    %cst_30 = arith.constant dense<0.000000e+00> : vector<432x8xf32>
    %37 = tpu.matmul %34, %36, %cst_30 {dimension_numbers = #tpu.dot_dimension_numbers<[1], [0], [0], [1], [0, 0, 1, 1], [], []>} : vector<432x4xf32>, vector<4x8xf32>, vector<432x8xf32> -> vector<432x8xf32>
    %38 = arith.addf %32, %37 : vector<432x8xf32>
    %39 = vector.extract_strided_slice %1 {offsets = [2, 0, 0], sizes = [18, 24, 4], strides = [1, 1, 1]} : vector<20x26x4xf32> to vector<18x24x4xf32>
    %40 = vector.shape_cast %39 : vector<18x24x4xf32> to vector<432x4xf32>
    %c2_31 = arith.constant 2 : index
    %c0_32 = arith.constant 0 : index
    %c0_33 = arith.constant 0 : index
    %c0_34 = arith.constant 0 : index
    %41 = vector.load %arg2[%c2_31, %c0_32, %c0_33, %c0_34] : memref<3x3x4x8xf32, #tpu.memory_space<vmem>>, vector<1x1x4x8xf32>
    %42 = vector.shape_cast %41 : vector<1x1x4x8xf32> to vector<4x8xf32>
    %cst_35 = arith.constant dense<0.000000e+00> : vector<432x8xf32>
    %43 = tpu.matmul %40, %42, %cst_35 {dimension_numbers = #tpu.dot_dimension_numbers<[1], [0], [0], [1], [0, 0, 1, 1], [], []>} : vector<432x4xf32>, vector<4x8xf32>, vector<432x8xf32> -> vector<432x8xf32>
    %44 = arith.addf %38, %43 : vector<432x8xf32>
    %45 = vector.extract_strided_slice %1 {offsets = [2, 1, 0], sizes = [18, 24, 4], strides = [1, 1, 1]} : vector<20x26x4xf32> to vector<18x24x4xf32>
    %46 = vector.shape_cast %45 : vector<18x24x4xf32> to vector<432x4xf32>
    %c2_36 = arith.constant 2 : index
    %c1_37 = arith.constant 1 : index
    %c0_38 = arith.constant 0 : index
    %c0_39 = arith.constant 0 : index
    %47 = vector.load %arg2[%c2_36, %c1_37, %c0_38, %c0_39] : memref<3x3x4x8xf32, #tpu.memory_space<vmem>>, vector<1x1x4x8xf32>
    %48 = vector.shape_cast %47 : vector<1x1x4x8xf32> to vector<4x8xf32>
    %cst_40 = arith.constant dense<0.000000e+00> : vector<432x8xf32>
    %49 = tpu.matmul %46, %48, %cst_40 {dimension_numbers = #tpu.dot_dimension_numbers<[1], [0], [0], [1], [0, 0, 1, 1], [], []>} : vector<432x4xf32>, vector<4x8xf32>, vector<432x8xf32> -> vector<432x8xf32>
    %50 = arith.addf %44, %49 : vector<432x8xf32>
    %51 = vector.extract_strided_slice %1 {offsets = [2, 2, 0], sizes = [18, 24, 4], strides = [1, 1, 1]} : vector<20x26x4xf32> to vector<18x24x4xf32>
    %52 = vector.shape_cast %51 : vector<18x24x4xf32> to vector<432x4xf32>
    %c2_41 = arith.constant 2 : index
    %c2_42 = arith.constant 2 : index
    %c0_43 = arith.constant 0 : index
    %c0_44 = arith.constant 0 : index
    %53 = vector.load %arg2[%c2_41, %c2_42, %c0_43, %c0_44] : memref<3x3x4x8xf32, #tpu.memory_space<vmem>>, vector<1x1x4x8xf32>
    %54 = vector.shape_cast %53 : vector<1x1x4x8xf32> to vector<4x8xf32>
    %cst_45 = arith.constant dense<0.000000e+00> : vector<432x8xf32>
    %55 = tpu.matmul %52, %54, %cst_45 {dimension_numbers = #tpu.dot_dimension_numbers<[1], [0], [0], [1], [0, 0, 1, 1], [], []>} : vector<432x4xf32>, vector<4x8xf32>, vector<432x8xf32> -> vector<432x8xf32>
    %56 = arith.addf %50, %55 : vector<432x8xf32>
    %cst_46 = arith.constant 0.000000e+00 : f32
    %57 = vector.broadcast %cst_46 : f32 to vector<432x8xf32>
    %58 = arith.maximumf %56, %57 : vector<432x8xf32>
    %c0_47 = arith.constant 0 : index
    %c0_48 = arith.constant 0 : index
    %59 = vector.load %arg3[%c0_47, %c0_48] : memref<1x8xf32, #tpu.memory_space<vmem>>, vector<1x8xf32>
    %60 = vector.broadcast %59 : vector<1x8xf32> to vector<432x8xf32>
    %61 = arith.mulf %58, %60 : vector<432x8xf32>
    %c0_49 = arith.constant 0 : index
    %c0_50 = arith.constant 0 : index
    %62 = vector.load %arg4[%c0_49, %c0_50] : memref<1x8xf32, #tpu.memory_space<vmem>>, vector<1x8xf32>
    %63 = vector.broadcast %62 : vector<1x8xf32> to vector<432x8xf32>
    %64 = arith.addf %61, %63 : vector<432x8xf32>
    %65 = vector.shape_cast %64 : vector<432x8xf32> to vector<18x24x8xf32>
    %66 = tpu.iota {dimensions = array<i32: 0>} : vector<18x24x8xi32>
    %67 = tpu.iota {dimensions = array<i32: 1>} : vector<18x24x8xi32>
    %c1_i32 = arith.constant 1 : i32
    %68 = vector.broadcast %c1_i32 : i32 to vector<18x24x8xi32>
    %69 = arith.cmpi sge, %66, %68 : vector<18x24x8xi32>
    %c16_i32 = arith.constant 16 : i32
    %70 = vector.broadcast %c16_i32 : i32 to vector<18x24x8xi32>
    %71 = arith.cmpi sle, %66, %70 : vector<18x24x8xi32>
    %72 = arith.andi %69, %71 : vector<18x24x8xi1>
    %c1_i32_51 = arith.constant 1 : i32
    %73 = vector.broadcast %c1_i32_51 : i32 to vector<18x24x8xi32>
    %74 = arith.cmpi sge, %67, %73 : vector<18x24x8xi32>
    %75 = arith.andi %72, %74 : vector<18x24x8xi1>
    %c16_i32_52 = arith.constant 16 : i32
    %76 = vector.broadcast %c16_i32_52 : i32 to vector<18x24x8xi32>
    %77 = arith.cmpi sle, %67, %76 : vector<18x24x8xi32>
    %78 = arith.andi %75, %77 : vector<18x24x8xi1>
    %cst_53 = arith.constant 0.000000e+00 : f32
    %79 = vector.broadcast %cst_53 : f32 to vector<18x24x8xf32>
    %80 = arith.select %78, %65, %79 : vector<18x24x8xi1>, vector<18x24x8xf32>
    %cst_54 = arith.constant 0.000000e+00 : f32
    %81 = vector.broadcast %cst_54 : f32 to vector<256x8xf32>
    %82 = vector.extract_strided_slice %80 {offsets = [0, 0, 0], sizes = [16, 16, 8], strides = [1, 1, 1]} : vector<18x24x8xf32> to vector<16x16x8xf32>
    %83 = vector.shape_cast %82 : vector<16x16x8xf32> to vector<256x8xf32>
    %c0_55 = arith.constant 0 : index
    %c0_56 = arith.constant 0 : index
    %c0_57 = arith.constant 0 : index
    %c0_58 = arith.constant 0 : index
    %84 = vector.load %arg5[%c0_55, %c0_56, %c0_57, %c0_58] : memref<3x3x8x8xf32, #tpu.memory_space<vmem>>, vector<1x1x8x8xf32>
    %85 = vector.shape_cast %84 : vector<1x1x8x8xf32> to vector<8x8xf32>
    %cst_59 = arith.constant dense<0.000000e+00> : vector<256x8xf32>
    %86 = tpu.matmul %83, %85, %cst_59 {dimension_numbers = #tpu.dot_dimension_numbers<[1], [0], [0], [1], [0, 0, 1, 1], [], []>} : vector<256x8xf32>, vector<8x8xf32>, vector<256x8xf32> -> vector<256x8xf32>
    %87 = arith.addf %81, %86 : vector<256x8xf32>
    %88 = vector.extract_strided_slice %80 {offsets = [0, 1, 0], sizes = [16, 16, 8], strides = [1, 1, 1]} : vector<18x24x8xf32> to vector<16x16x8xf32>
    %89 = vector.shape_cast %88 : vector<16x16x8xf32> to vector<256x8xf32>
    %c0_60 = arith.constant 0 : index
    %c1_61 = arith.constant 1 : index
    %c0_62 = arith.constant 0 : index
    %c0_63 = arith.constant 0 : index
    %90 = vector.load %arg5[%c0_60, %c1_61, %c0_62, %c0_63] : memref<3x3x8x8xf32, #tpu.memory_space<vmem>>, vector<1x1x8x8xf32>
    %91 = vector.shape_cast %90 : vector<1x1x8x8xf32> to vector<8x8xf32>
    %cst_64 = arith.constant dense<0.000000e+00> : vector<256x8xf32>
    %92 = tpu.matmul %89, %91, %cst_64 {dimension_numbers = #tpu.dot_dimension_numbers<[1], [0], [0], [1], [0, 0, 1, 1], [], []>} : vector<256x8xf32>, vector<8x8xf32>, vector<256x8xf32> -> vector<256x8xf32>
    %93 = arith.addf %87, %92 : vector<256x8xf32>
    %94 = vector.extract_strided_slice %80 {offsets = [0, 2, 0], sizes = [16, 16, 8], strides = [1, 1, 1]} : vector<18x24x8xf32> to vector<16x16x8xf32>
    %95 = vector.shape_cast %94 : vector<16x16x8xf32> to vector<256x8xf32>
    %c0_65 = arith.constant 0 : index
    %c2_66 = arith.constant 2 : index
    %c0_67 = arith.constant 0 : index
    %c0_68 = arith.constant 0 : index
    %96 = vector.load %arg5[%c0_65, %c2_66, %c0_67, %c0_68] : memref<3x3x8x8xf32, #tpu.memory_space<vmem>>, vector<1x1x8x8xf32>
    %97 = vector.shape_cast %96 : vector<1x1x8x8xf32> to vector<8x8xf32>
    %cst_69 = arith.constant dense<0.000000e+00> : vector<256x8xf32>
    %98 = tpu.matmul %95, %97, %cst_69 {dimension_numbers = #tpu.dot_dimension_numbers<[1], [0], [0], [1], [0, 0, 1, 1], [], []>} : vector<256x8xf32>, vector<8x8xf32>, vector<256x8xf32> -> vector<256x8xf32>
    %99 = arith.addf %93, %98 : vector<256x8xf32>
    %100 = vector.extract_strided_slice %80 {offsets = [1, 0, 0], sizes = [16, 16, 8], strides = [1, 1, 1]} : vector<18x24x8xf32> to vector<16x16x8xf32>
    %101 = vector.shape_cast %100 : vector<16x16x8xf32> to vector<256x8xf32>
    %c1_70 = arith.constant 1 : index
    %c0_71 = arith.constant 0 : index
    %c0_72 = arith.constant 0 : index
    %c0_73 = arith.constant 0 : index
    %102 = vector.load %arg5[%c1_70, %c0_71, %c0_72, %c0_73] : memref<3x3x8x8xf32, #tpu.memory_space<vmem>>, vector<1x1x8x8xf32>
    %103 = vector.shape_cast %102 : vector<1x1x8x8xf32> to vector<8x8xf32>
    %cst_74 = arith.constant dense<0.000000e+00> : vector<256x8xf32>
    %104 = tpu.matmul %101, %103, %cst_74 {dimension_numbers = #tpu.dot_dimension_numbers<[1], [0], [0], [1], [0, 0, 1, 1], [], []>} : vector<256x8xf32>, vector<8x8xf32>, vector<256x8xf32> -> vector<256x8xf32>
    %105 = arith.addf %99, %104 : vector<256x8xf32>
    %106 = vector.extract_strided_slice %80 {offsets = [1, 1, 0], sizes = [16, 16, 8], strides = [1, 1, 1]} : vector<18x24x8xf32> to vector<16x16x8xf32>
    %107 = vector.shape_cast %106 : vector<16x16x8xf32> to vector<256x8xf32>
    %c1_75 = arith.constant 1 : index
    %c1_76 = arith.constant 1 : index
    %c0_77 = arith.constant 0 : index
    %c0_78 = arith.constant 0 : index
    %108 = vector.load %arg5[%c1_75, %c1_76, %c0_77, %c0_78] : memref<3x3x8x8xf32, #tpu.memory_space<vmem>>, vector<1x1x8x8xf32>
    %109 = vector.shape_cast %108 : vector<1x1x8x8xf32> to vector<8x8xf32>
    %cst_79 = arith.constant dense<0.000000e+00> : vector<256x8xf32>
    %110 = tpu.matmul %107, %109, %cst_79 {dimension_numbers = #tpu.dot_dimension_numbers<[1], [0], [0], [1], [0, 0, 1, 1], [], []>} : vector<256x8xf32>, vector<8x8xf32>, vector<256x8xf32> -> vector<256x8xf32>
    %111 = arith.addf %105, %110 : vector<256x8xf32>
    %112 = vector.extract_strided_slice %80 {offsets = [1, 2, 0], sizes = [16, 16, 8], strides = [1, 1, 1]} : vector<18x24x8xf32> to vector<16x16x8xf32>
    %113 = vector.shape_cast %112 : vector<16x16x8xf32> to vector<256x8xf32>
    %c1_80 = arith.constant 1 : index
    %c2_81 = arith.constant 2 : index
    %c0_82 = arith.constant 0 : index
    %c0_83 = arith.constant 0 : index
    %114 = vector.load %arg5[%c1_80, %c2_81, %c0_82, %c0_83] : memref<3x3x8x8xf32, #tpu.memory_space<vmem>>, vector<1x1x8x8xf32>
    %115 = vector.shape_cast %114 : vector<1x1x8x8xf32> to vector<8x8xf32>
    %cst_84 = arith.constant dense<0.000000e+00> : vector<256x8xf32>
    %116 = tpu.matmul %113, %115, %cst_84 {dimension_numbers = #tpu.dot_dimension_numbers<[1], [0], [0], [1], [0, 0, 1, 1], [], []>} : vector<256x8xf32>, vector<8x8xf32>, vector<256x8xf32> -> vector<256x8xf32>
    %117 = arith.addf %111, %116 : vector<256x8xf32>
    %118 = vector.extract_strided_slice %80 {offsets = [2, 0, 0], sizes = [16, 16, 8], strides = [1, 1, 1]} : vector<18x24x8xf32> to vector<16x16x8xf32>
    %119 = vector.shape_cast %118 : vector<16x16x8xf32> to vector<256x8xf32>
    %c2_85 = arith.constant 2 : index
    %c0_86 = arith.constant 0 : index
    %c0_87 = arith.constant 0 : index
    %c0_88 = arith.constant 0 : index
    %120 = vector.load %arg5[%c2_85, %c0_86, %c0_87, %c0_88] : memref<3x3x8x8xf32, #tpu.memory_space<vmem>>, vector<1x1x8x8xf32>
    %121 = vector.shape_cast %120 : vector<1x1x8x8xf32> to vector<8x8xf32>
    %cst_89 = arith.constant dense<0.000000e+00> : vector<256x8xf32>
    %122 = tpu.matmul %119, %121, %cst_89 {dimension_numbers = #tpu.dot_dimension_numbers<[1], [0], [0], [1], [0, 0, 1, 1], [], []>} : vector<256x8xf32>, vector<8x8xf32>, vector<256x8xf32> -> vector<256x8xf32>
    %123 = arith.addf %117, %122 : vector<256x8xf32>
    %124 = vector.extract_strided_slice %80 {offsets = [2, 1, 0], sizes = [16, 16, 8], strides = [1, 1, 1]} : vector<18x24x8xf32> to vector<16x16x8xf32>
    %125 = vector.shape_cast %124 : vector<16x16x8xf32> to vector<256x8xf32>
    %c2_90 = arith.constant 2 : index
    %c1_91 = arith.constant 1 : index
    %c0_92 = arith.constant 0 : index
    %c0_93 = arith.constant 0 : index
    %126 = vector.load %arg5[%c2_90, %c1_91, %c0_92, %c0_93] : memref<3x3x8x8xf32, #tpu.memory_space<vmem>>, vector<1x1x8x8xf32>
    %127 = vector.shape_cast %126 : vector<1x1x8x8xf32> to vector<8x8xf32>
    %cst_94 = arith.constant dense<0.000000e+00> : vector<256x8xf32>
    %128 = tpu.matmul %125, %127, %cst_94 {dimension_numbers = #tpu.dot_dimension_numbers<[1], [0], [0], [1], [0, 0, 1, 1], [], []>} : vector<256x8xf32>, vector<8x8xf32>, vector<256x8xf32> -> vector<256x8xf32>
    %129 = arith.addf %123, %128 : vector<256x8xf32>
    %130 = vector.extract_strided_slice %80 {offsets = [2, 2, 0], sizes = [16, 16, 8], strides = [1, 1, 1]} : vector<18x24x8xf32> to vector<16x16x8xf32>
    %131 = vector.shape_cast %130 : vector<16x16x8xf32> to vector<256x8xf32>
    %c2_95 = arith.constant 2 : index
    %c2_96 = arith.constant 2 : index
    %c0_97 = arith.constant 0 : index
    %c0_98 = arith.constant 0 : index
    %132 = vector.load %arg5[%c2_95, %c2_96, %c0_97, %c0_98] : memref<3x3x8x8xf32, #tpu.memory_space<vmem>>, vector<1x1x8x8xf32>
    %133 = vector.shape_cast %132 : vector<1x1x8x8xf32> to vector<8x8xf32>
    %cst_99 = arith.constant dense<0.000000e+00> : vector<256x8xf32>
    %134 = tpu.matmul %131, %133, %cst_99 {dimension_numbers = #tpu.dot_dimension_numbers<[1], [0], [0], [1], [0, 0, 1, 1], [], []>} : vector<256x8xf32>, vector<8x8xf32>, vector<256x8xf32> -> vector<256x8xf32>
    %135 = arith.addf %129, %134 : vector<256x8xf32>
    %cst_100 = arith.constant 0.000000e+00 : f32
    %136 = vector.broadcast %cst_100 : f32 to vector<256x8xf32>
    %137 = arith.maximumf %135, %136 : vector<256x8xf32>
    %c0_101 = arith.constant 0 : index
    %c0_102 = arith.constant 0 : index
    %138 = vector.load %arg6[%c0_101, %c0_102] : memref<1x8xf32, #tpu.memory_space<vmem>>, vector<1x8xf32>
    %139 = vector.broadcast %138 : vector<1x8xf32> to vector<256x8xf32>
    %140 = arith.mulf %137, %139 : vector<256x8xf32>
    %c0_103 = arith.constant 0 : index
    %c0_104 = arith.constant 0 : index
    %141 = vector.load %arg7[%c0_103, %c0_104] : memref<1x8xf32, #tpu.memory_space<vmem>>, vector<1x8xf32>
    %142 = vector.broadcast %141 : vector<1x8xf32> to vector<256x8xf32>
    %143 = arith.addf %140, %142 : vector<256x8xf32>
    %144 = vector.shape_cast %143 : vector<256x8xf32> to vector<16x16x8xf32>
    %c0_105 = arith.constant 0 : index
    %c0_106 = arith.constant 0 : index
    %c0_107 = arith.constant 0 : index
    %c0_108 = arith.constant 0 : index
    %145 = vector.load %arg8[%c0_105, %c0_106, %c0_107, %c0_108] : memref<1x16x16x8xf32, #tpu.memory_space<vmem>>, vector<1x16x16x8xf32>
    %146 = vector.shape_cast %145 : vector<1x16x16x8xf32> to vector<16x16x8xf32>
    %147 = vector.shape_cast %144 : vector<16x16x8xf32> to vector<1x16x16x8xf32>
    tpu.vector_store %arg8[%c0_105, %c0_106, %c0_107, %c0_108], %147 {strides = array<i32>} : memref<1x16x16x8xf32, #tpu.memory_space<vmem>>, vector<1x16x16x8xf32>,
    %148 = vector.shape_cast %144 : vector<16x16x8xf32> to vector<8x2x16x8xf32>
    %149 = vector.extract_strided_slice %148 {offsets = [0, 0, 0, 0], sizes = [8, 1, 16, 8], strides = [1, 1, 1, 1]} : vector<8x2x16x8xf32> to vector<8x1x16x8xf32>
    %150 = vector.shape_cast %149 : vector<8x1x16x8xf32> to vector<8x16x8xf32>
    %151 = vector.extract_strided_slice %148 {offsets = [0, 1, 0, 0], sizes = [8, 1, 16, 8], strides = [1, 1, 1, 1]} : vector<8x2x16x8xf32> to vector<8x1x16x8xf32>
    %152 = vector.shape_cast %151 : vector<8x1x16x8xf32> to vector<8x16x8xf32>
    %153 = arith.maximumf %150, %152 : vector<8x16x8xf32>
    %c0_109 = arith.constant 0 : index
    %c0_110 = arith.constant 0 : index
    %c0_111 = arith.constant 0 : index
    %154 = vector.load %arg10[%c0_109, %c0_110, %c0_111] : memref<8x16x8xf32, #tpu.memory_space<vmem>>, vector<8x16x8xf32>
    tpu.vector_store %arg10[%c0_109, %c0_110, %c0_111], %153 {strides = array<i32>} : memref<8x16x8xf32, #tpu.memory_space<vmem>>, vector<8x16x8xf32>,
    %c0_112 = arith.constant 0 : index
    %c0_113 = arith.constant 0 : index
    %c0_114 = arith.constant 0 : index
    %155 = tpu.strided_load %arg10[%c0_112, %c0_113, %c0_114] {strides = array<i32: 1, 2, 1>} : memref<8x16x8xf32, #tpu.memory_space<vmem>>, vector<8x8x8xf32>
    %c0_115 = arith.constant 0 : index
    %c1_116 = arith.constant 1 : index
    %c0_117 = arith.constant 0 : index
    %156 = tpu.strided_load %arg10[%c0_115, %c1_116, %c0_117] {strides = array<i32: 1, 2, 1>} : memref<8x16x8xf32, #tpu.memory_space<vmem>>, vector<8x8x8xf32>
    %157 = arith.maximumf %155, %156 : vector<8x8x8xf32>
    %c0_118 = arith.constant 0 : index
    %c0_119 = arith.constant 0 : index
    %c0_120 = arith.constant 0 : index
    %c0_121 = arith.constant 0 : index
    %158 = vector.load %arg9[%c0_118, %c0_119, %c0_120, %c0_121] : memref<1x8x8x8xf32, #tpu.memory_space<vmem>>, vector<1x8x8x8xf32>
    %159 = vector.shape_cast %158 : vector<1x8x8x8xf32> to vector<8x8x8xf32>
    %160 = vector.shape_cast %157 : vector<8x8x8xf32> to vector<1x8x8x8xf32>
    tpu.vector_store %arg9[%c0_118, %c0_119, %c0_120, %c0_121], %160 {strides = array<i32>} : memref<1x8x8x8xf32, #tpu.memory_space<vmem>>, vector<1x8x8x8xf32>,
    return
  }
  func.func @transform_0(%arg0: i32) -> (i32, i32, i32, i32) {
    %c0_i32 = arith.constant 0 : i32
    %c0_i32_0 = arith.constant 0 : i32
    %c0_i32_1 = arith.constant 0 : i32
    %c0_i32_2 = arith.constant 0 : i32
    return %arg0, %c0_i32, %c0_i32_0, %c0_i32_1 : i32, i32, i32, i32
  }
  func.func @transform_1(%arg0: i32) -> (i32, i32, i32, i32) {
    %c0_i32 = arith.constant 0 : i32
    %c0_i32_0 = arith.constant 0 : i32
    %c0_i32_1 = arith.constant 0 : i32
    %c0_i32_2 = arith.constant 0 : i32
    %c0_i32_3 = arith.constant 0 : i32
    return %c0_i32, %c0_i32_0, %c0_i32_1, %c0_i32_2 : i32, i32, i32, i32
  }
  func.func @transform_2(%arg0: i32) -> (i32, i32) {
    %c0_i32 = arith.constant 0 : i32
    %c0_i32_0 = arith.constant 0 : i32
    %c0_i32_1 = arith.constant 0 : i32
    return %c0_i32, %c0_i32_0 : i32, i32
  }
  func.func @transform_3(%arg0: i32) -> (i32, i32) {
    %c0_i32 = arith.constant 0 : i32
    %c0_i32_0 = arith.constant 0 : i32
    %c0_i32_1 = arith.constant 0 : i32
    return %c0_i32, %c0_i32_0 : i32, i32
  }
  func.func @transform_4(%arg0: i32) -> (i32, i32, i32, i32) {
    %c0_i32 = arith.constant 0 : i32
    %c0_i32_0 = arith.constant 0 : i32
    %c0_i32_1 = arith.constant 0 : i32
    %c0_i32_2 = arith.constant 0 : i32
    %c0_i32_3 = arith.constant 0 : i32
    return %c0_i32, %c0_i32_0, %c0_i32_1, %c0_i32_2 : i32, i32, i32, i32
  }
  func.func @transform_5(%arg0: i32) -> (i32, i32) {
    %c0_i32 = arith.constant 0 : i32
    %c0_i32_0 = arith.constant 0 : i32
    %c0_i32_1 = arith.constant 0 : i32
    return %c0_i32, %c0_i32_0 : i32, i32
  }
  func.func @transform_6(%arg0: i32) -> (i32, i32) {
    %c0_i32 = arith.constant 0 : i32
    %c0_i32_0 = arith.constant 0 : i32
    %c0_i32_1 = arith.constant 0 : i32
    return %c0_i32, %c0_i32_0 : i32, i32
  }
  func.func @transform_7(%arg0: i32) -> (i32, i32, i32, i32) {
    %c0_i32 = arith.constant 0 : i32
    %c0_i32_0 = arith.constant 0 : i32
    %c0_i32_1 = arith.constant 0 : i32
    %c0_i32_2 = arith.constant 0 : i32
    return %arg0, %c0_i32, %c0_i32_0, %c0_i32_1 : i32, i32, i32, i32
  }
  func.func @transform_8(%arg0: i32) -> (i32, i32, i32, i32) {
    %c0_i32 = arith.constant 0 : i32
    %c0_i32_0 = arith.constant 0 : i32
    %c0_i32_1 = arith.constant 0 : i32
    %c0_i32_2 = arith.constant 0 : i32
    return %arg0, %c0_i32, %c0_i32_0, %c0_i32_1 : i32, i32, i32, i32
  }
}

</mosaic_0001>

<bundles_post_ra>
// kernel: tpu_custom_call.1
= control target key start
LH: loop header
LB: loop body
LE: loop exit
PB: predicated region body
PF: predicated region fallthrough
CT: control target
= control target key end

     0   :  { %14 = vsyncpa [#allocation4], 0  ;;  %s14856_s0 = inlined_call_operand.vmem [shape: f32[2,20,26,4], index: 0, kind: input, shape index: {}]   ;;  %s14857_s1 = inlined_call_operand.vmem [shape: f32[3,3,4,8], index: 1, kind: input, shape index: {}]   ;;  %s14858_s2 = inlined_call_operand.vmem [shape: f32[1,8], index: 2, kind: input, shape index: {}]   ;;  %s14859_s3 = inlined_call_operand.vmem [shape: f32[1,8], index: 3, kind: input, shape index: {}]   ;;  %s14860_s4 = inlined_call_operand.vmem [shape: f32[3,3,8,8], index: 4, kind: input, shape index: {}]   ;;  %s14861_s5 = inlined_call_operand.vmem [shape: f32[1,8], index: 5, kind: input, shape index: {}]   ;;  %s14862_s6 = inlined_call_operand.vmem [shape: f32[1,8], index: 6, kind: input, shape index: {}]   ;;  %s14863_s7 = inlined_call_operand.vmem [shape: f32[2,16,16,8], index: 7, kind: output, shape index: {0}]   ;;  %s14864_s8 = inlined_call_operand.hbm [shape: f32[2,8,8,8], index: 8, kind: output, shape index: {1}]  }
   0x1   :  { %16 = vsyncpa [#allocation4 + $0x1], 0  ;;  %s11525_s27 = smov 0   ;;  %s11527_s28 = smov 0  }
   0x2   :  { %s11529_s29 = smov 0   ;;  %s11531_s30 = smov 0  }
   0x3 LB: > { %s11546_s9 = sadd.s32 4294967295, %s11474_s30   ;;  %s7857_s10 = sadd.s32 4294967294, %s11474_s30   ;;  %s11474_s30 = sphi %s11531_s30, %s15438_s30   ;;  %s11470_s29 = sphi %s11529_s29, %s15437_s29   ;;  %s11466_s28 = sphi %s11527_s28, %s15436_s28   ;;  %s11462_s27 = sphi %s11525_s27, %s15435_s27  }
   0x4   : > { %s11550_s11 = sadd.s32 1, %s11474_s30   ;;  %s207_s12 = sadd.s32 1, %s11470_s29 }
   0x5   : > { %s204_s13 = ssub.s32 %s11474_s30, %s11550_s11  ;;  %p217_p0 = scmp.ne.s32.totalorder %s11470_s29, %s11466_s28 }
   0x6   : > { %p205_p1 = scmp.eq.s32.totalorder %s204_s13, 0  ;;  %p218_p2 = scmp.eq.s32.totalorder %s11546_s9, 1 }
   0x7   : > { %p223_p3 = scmp.ne.s32.totalorder %s11466_s28, %s11462_s27  ;;  %p224_p4 = scmp.eq.s32.totalorder %s7857_s10, 1 }
   0x8   : > { %s11561_s14 = scalar_select %p205_p1, %s11470_s29, %s207_s12  }
   0x9   : > { %p11563_p5 = por %p218_p2, %p217_p0  ;;  %p11567_p6 = por %p224_p4, %p223_p3 }
   0xa   : > { %p7860_p7 = scmp.ge.s32.totalorder %s11474_s30, 1  ;;  %p268_p8 = scmp.lt.s32.totalorder %s11474_s30, 3 }
   0xc   : > { %p269_p9 = pnand %p7860_p7, %p268_p8 }
   0xe   : > { %272 = sbr.rel (%p269_p9) target bundleno = 1774 (0x6ee), region = 48 }
  0x15   : > { %v397_v0 = vld [vmem:[%s14857_s1] sm:$0xf]  ;;  %vm708_vm0 = vcmask 1043456   ;;  %p307_p10 = scmp.lt.s32.totalorder %s11546_s9, 1  ;;  %v7976_v1 = vld [vmem:[%s14857_s1 + $0x8] sm:$0xf] }
  0x16   : > { %9546 = vmatprep.subr.msk.mxu0 %vm708_vm0, %v397_v0  ;;  %vm599_vm1 = vcmask 31744   ;;  %v8032_v5 = vld [vmem:[%s14857_s1 + $0xc] sm:$0xf]  ;;  %vm1493_vm2 = vcmask 1045504   ;;  %v11652_v25 = vld [vmem:[%s14857_s1 + $0x10] sm:$0xf] }
  0x17   : > { %9547 = vmatpush3.msk.msra.mxu0 %vm708_vm0, %v397_v0  ;;  %s11583_s21 = scalar_select %p307_p10, %s11546_s9, 1  ;;  %vm470_vm3 = vcmask 1046528   ;;  %vm4941_vm4 = vcmask 64512  }
  0x18   : > { %9629 = vmatprep.subr.msk.mxu0 %vm708_vm0, %v7976_v1  ;;  %s8670_s20 = sshll.u32 %s11546_s9, 10  ;;  %s11477_s10 = smov [#allocation3]  }
  0x19   : > { %s11316_s22 = smul.u32 640, %s11583_s21  ;;  %s8669_s24 = sshll.u32 %s11583_s21, 8 }
  0x1a   : > { %s14638_s17 = scalar_lea.vmem %s14863_s7, %s8669_s24  ;;  %s304_s21 = sand.u32 1, %s11466_s28  }
  0x1b   : > { %s11590_s25 = scalar_lea.vmem %s14856_s0, %s11316_s22  ;;  %s7861_s18 = sshll.u32 %s304_s21, 6 }
  0x1c   : > { %v317_v2 = vld [vmem:[%s11590_s25] sm:$0xff]  ;;  %v318_v3 = vld [vmem:[%s11590_s25 + $0x8] sm:$0xff]  ;;  %v319_v4 = vld [vmem:[%s11590_s25 + $0x10] sm:$0xff]  ;;  %s14688_s19 = scalar_lea.vmem [#allocation3], %s7861_s18  ;;  %s14807_s24 = scalar_lea.hbm %s14864_s8, %s8670_s20 }
  0x1d   : > { %9548 = vmatprep.mubr.msk.f32.mxu0 %vm599_vm1, %v317_v2  ;;  %v11603_v6 = vld [vmem:[%s11590_s25 + $0x20] sm:$0xff]  ;;  %v11606_v7 = vld [vmem:[%s11590_s25 + $0x28] sm:$0xff]  ;;  %v11614_v8 = vld [vmem:[%s11590_s25 + $0x30] sm:$0xff]  ;;  %v1494_v11 = vrot.slane %v317_v2, 2  ;;  %v1495_v12 = vrot.slane %v318_v3, 2  ;;  %v1497_v15 = vrot.slane %v319_v4, 2 }
  0x1e   : > { %9549 = vmatmul.mubr.msk.f32.vlgmr.msra.gmra.mrb[0].mxu0 %vm599_vm1, %v318_v3  ;;  %v11617_v9 = vld [vmem:[%s11590_s25 + $0x40] sm:$0xff]  ;;  %v11624_v10 = vld [vmem:[%s11590_s25 + $0x48] sm:$0xff]  ;;  %v11627_v13 = vld [vmem:[%s11590_s25 + $0x50] sm:$0xff]  ;;  %v1501_v19 = vrot.slane %v11603_v6, 2  ;;  %v1502_v20 = vrot.slane %v11606_v7, 2  ;;  %v1504_v22 = vrot.slane %v11614_v8, 2 }
  0x1f   : > { %9630 = vmatpush3.msk.msra.mxu0 %vm708_vm0, %v7976_v1  ;;  %9551 = vmatprep.mubr.msk.f32.mxu0 %vm599_vm1, %v319_v4  ;;  %v320_v14 = vld [vmem:[%s11590_s25 + $0x18] sm:$0x3]  ;;  %v11635_v16 = vld [vmem:[%s11590_s25 + $0x60] sm:$0xff]  ;;  %v1496_v17 = vsel %vm1493_vm2, %v1494_v11, %v1495_v12  ;;  %v1498_v21 = vsel %vm1493_vm2, %v1495_v12, %v1497_v15  ;;  %v1508_v29 = vrot.slane %v11617_v9, 2  ;;  %v1509_v30 = vrot.slane %v11624_v10, 2  ;;  %v11684_v36 = vld [vmem:[%s11590_s25 + $0x68] sm:$0xff] }
  0x20   : > { %9712 = vmatprep.subr.msk.mxu0 %vm708_vm0, %v8032_v5  ;;  %v1499_v18 = vrot.slane %v320_v14, 2  ;;  %v11647_v24 = vld [vmem:[%s11590_s25 + $0x38] sm:$0x3]  ;;  %v11658_v26 = vsel %vm1493_vm2, %v1501_v19, %v1502_v20  ;;  %v11662_v28 = vsel %vm1493_vm2, %v1502_v20, %v1504_v22  ;;  %v1511_v33 = vrot.slane %v11627_v13, 2  ;;  %v11687_v37 = vld [vmem:[%s11590_s25 + $0x70] sm:$0xff]  ;;  %v11706_v44 = vld [vmem:[%s11590_s25 + $0x80] sm:$0xff] }
  0x21   : > { %15095 = vst [vmem:[#allocation6_spill] sm:$0xff] %v11658_v26  ;;  %v1506_v27 = vrot.slane %v11647_v24, 2  ;;  %15096 = vst [vmem:[#allocation7_spill] sm:$0xff] %v11662_v28  ;;  %v11669_v31 = vld [vmem:[%s11590_s25 + $0x58] sm:$0x3]  ;;  %v11680_v34 = vsel %vm1493_vm2, %v1508_v29, %v1509_v30  ;;  %v1515_v39 = vrot.slane %v11635_v16, 2 }
  0x22   : > { %9552 = vmatmul.mubr.msk.f32.gmra.mrb[2].mxu0 %vm599_vm1, %v11603_v6  ;;  %v1500_v23 = vsel %vm1493_vm2, %v1497_v15, %v1499_v18  ;;  %15097 = vst [vmem:[#allocation8_spill] sm:$0xff] %v11669_v31  ;;  %15099 = vst [vmem:[#allocation10_spill] sm:$0xff] %v11680_v34  ;;  %v1513_v35 = vrot.slane %v11669_v31, 2  ;;  %v11694_v38 = vsel %vm1493_vm2, %v1509_v30, %v1511_v33  ;;  %v1516_v40 = vrot.slane %v11684_v36, 2  ;;  %v11703_v43 = vld [vmem:[%s11590_s25 + $0x78] sm:$0x3] }
  0x23   : > { %9554 = vmatprep.mubr.msk.f32.mxu0 %vm599_vm1, %v11606_v7  ;;  %v11676_v32 = vsel %vm1493_vm2, %v1504_v22, %v1506_v27  ;;  %15100 = vst [vmem:[#allocation11_spill] sm:$0xff] %v11694_v38  ;;  %v1518_v42 = vrot.slane %v11687_v37, 2  ;;  %15102 = vst [vmem:[#allocation13_spill] sm:$0xff] %v11703_v43  ;;  %v11709_v45 = vld [vmem:[%s11590_s25 + $0x88] sm:$0xff]  ;;  %v1520_v47 = vrot.slane %v11703_v43, 2  ;;  %v1522_v49 = vrot.slane %v11706_v44, 2 }
  0x24   : > { %15098 = vst [vmem:[#allocation9_spill] sm:$0xff] %v11676_v32  ;;  %v11699_v41 = vsel %vm1493_vm2, %v1511_v33, %v1513_v35  ;;  %v11716_v46 = vsel %vm1493_vm2, %v1515_v39, %v1516_v40  ;;  %v1523_v50 = vrot.slane %v11709_v45, 2  ;;  %v11725_v51 = vld [vmem:[%s11590_s25 + $0x90] sm:$0xff]  ;;  %v11728_v52 = vld [vmem:[%s11590_s25 + $0x98] sm:$0x3]  ;;  %v11743_v57 = vld [vmem:[%s11590_s25 + $0xa0] sm:$0xff] }
  0x25   : > { %15101 = vst [vmem:[#allocation12_spill] sm:$0xff] %v11699_v41  ;;  %15103 = vst [vmem:[#allocation14_spill] sm:$0xff] %v11716_v46  ;;  %v11720_v48 = vsel %vm1493_vm2, %v1516_v40, %v1518_v42  ;;  %v11735_v53 = vsel %vm1493_vm2, %v1518_v42, %v1520_v47  ;;  %v1525_v54 = vrot.slane %v11725_v51, 2  ;;  %v1527_v56 = vrot.slane %v11728_v52, 2  ;;  %v11746_v58 = vld [vmem:[%s11590_s25 + $0xa8] sm:$0xff]  ;;  %v11749_v59 = vld [vmem:[%s11590_s25 + $0xb0] sm:$0xff] }
  0x26   : > { %9555 = vmatmul.mubr.msk.f32.gmra.mrb[4].mxu0 %vm599_vm1, %v11614_v8  ;;  %15104 = vst [vmem:[#allocation15_spill] sm:$0xff] %v11720_v48  ;;  %15105 = vst [vmem:[#allocation16_spill] sm:$0xff] %v11728_v52  ;;  %v11739_v55 = vsel %vm1493_vm2, %v1522_v49, %v1523_v50  ;;  %v1529_v61 = vrot.slane %v11743_v57, 2  ;;  %v1530_v62 = vrot.slane %v11746_v58, 2  ;;  %v1532_v0 = vrot.slane %v11749_v59, 2  ;;  %v11768_v2 = vld [vmem:[%s11590_s25 + $0xc0] sm:$0xff] }
  0x27   : > { %9557 = vmatprep.mubr.msk.f32.mxu0 %vm599_vm1, %v11617_v9  ;;  %15106 = vst [vmem:[#allocation17_spill] sm:$0xff] %v11735_v53  ;;  %15107 = vst [vmem:[#allocation18_spill] sm:$0xff] %v11739_v55  ;;  %v11756_v60 = vsel %vm1493_vm2, %v1523_v50, %v1525_v54  ;;  %v11761_v63 = vsel %vm1493_vm2, %v1525_v54, %v1527_v56  ;;  %v11765_v1 = vld [vmem:[%s11590_s25 + $0xb8] sm:$0x3]  ;;  %v11771_v3 = vld [vmem:[%s11590_s25 + $0xc8] sm:$0xff]  ;;  %v1536_v12 = vrot.slane %v11768_v2, 2 }
  0x28   : > { %15108 = vst [vmem:[#allocation19_spill] sm:$0xff] %v11756_v60  ;;  %15109 = vst [vmem:[#allocation20_spill] sm:$0xff] %v11761_v63  ;;  %v11778_v4 = vsel %vm1493_vm2, %v1529_v61, %v1530_v62  ;;  %v11782_v11 = vsel %vm1493_vm2, %v1530_v62, %v1532_v0  ;;  %v1537_v14 = vrot.slane %v11771_v3, 2  ;;  %v11787_v15 = vld [vmem:[%s11590_s25 + $0xd0] sm:$0xff]  ;;  %v11805_v22 = vld [vmem:[%s11590_s25 + $0xe0] sm:$0xff]  ;;  %s7770_s22 = sshll.u32 %s14688_s19, 4  ;;  %s14809_s22 = int_to_ptr.vmem [resolvable:$true] %s7770_s22 }
  0x29   : > { %15110 = vst [vmem:[#allocation21_spill] sm:$0xff] %v11765_v1  ;;  %15111 = vst [vmem:[#allocation22_spill] sm:$0xff] %v11778_v4  ;;  %v1539_v19 = vrot.slane %v11787_v15, 2  ;;  %v11811_v27 = vld [vmem:[%s11590_s25 + $0xf0] sm:$0xff]  ;;  %v1543_v30 = vrot.slane %v11805_v22, 2  ;;  %v11830_v42 = vld [vmem:[%s11590_s25 + $0x100] sm:$0xff] }
  0x2a   : > { %9558 = vmatmul.mubr.msk.f32.gmra.mrb[6].mxu0 %vm599_vm1, %v11624_v10  ;;  %15112 = vst [vmem:[#allocation23_spill] sm:$0xff] %v11782_v11  ;;  %v11801_v20 = vsel %vm1493_vm2, %v1536_v12, %v1537_v14  ;;  %v1546_v39 = vrot.slane %v11811_v27, 2  ;;  %v11827_v40 = vld [vmem:[%s11590_s25 + $0xf8] sm:$0x3]  ;;  %v11833_v47 = vld [vmem:[%s11590_s25 + $0x108] sm:$0xff]  ;;  %v1550_v56 = vrot.slane %v11830_v42, 2 }
  0x2b   : > { %9560 = vmatprep.mubr.msk.f32.mxu0 %vm599_vm1, %v11627_v13  ;;  %15115 = vst [vmem:[#allocation26_spill] sm:$0xff] %v11801_v20  ;;  %v11818_v29 = vsel %vm1493_vm2, %v1537_v14, %v1539_v19  ;;  %15118 = vst [vmem:[#allocation29_spill] sm:$0xff] %v11827_v40  ;;  %v1548_v50 = vrot.slane %v11827_v40, 2  ;;  %v1551_v61 = vrot.slane %v11833_v47, 2  ;;  %v11849_v62 = vld [vmem:[%s11590_s25 + $0x110] sm:$0xff]  ;;  %v12081_v40 = vld [vmem:[%s11590_s25 + $0x208] sm:$0xff] }
  0x2c   : > { %15116 = vst [vmem:[#allocation27_spill] sm:$0xff] %v11818_v29  ;;  %v1553_v12 = vrot.slane %v11849_v62, 2  ;;  %15155 = vst [vmem:[#allocation66_spill] sm:$0xff] %v12081_v40  ;;  %v12115_v52 = vld [vmem:[%s11590_s25 + $0x220] sm:$0xff]  ;;  %v12118_v43 = vld [vmem:[%s11590_s25 + $0x228] sm:$0xff]  ;;  %s14815_s26 = scalar_lea.sflag [#allocation4], %s304_s21 }
  0x2d   : > { %v11863_v14 = vsel %vm1493_vm2, %v1550_v56, %v1551_v61  ;;  %15162 = vst [vmem:[#allocation73_spill] sm:$0xff] %v12115_v52  ;;  %15163 = vst [vmem:[#allocation74_spill] sm:$0xff] %v12118_v43  ;;  %v12121_v31 = vld [vmem:[%s11590_s25 + $0x230] sm:$0xff]  ;;  %s11412_s9 = scalar_lea.vmem %s14809_s22, 1024  ;;  %s11416_s12 = sshll.u32 %s11477_s10, 4  ;;  %s11417_s12 = int_to_ptr.vmem [resolvable:$false] %s11416_s12 }
  0x2e   : > { %9561 = vmatmul.mubr.msk.f32.gmra.mrb[8].mxu0 %vm599_vm1, %v11635_v16  ;;  %15123 = vst [vmem:[#allocation34_spill] sm:$0xff] %v11863_v14  ;;  %15164 = vst [vmem:[#allocation75_spill] sm:$0xff] %v12121_v31  ;;  %p11413_p11 = scmp.ne.s32.totalorder %s14809_s22, %s11412_s9  ;;  %s11418_s13 = scalar_lea.vmem %s11417_s12, 2048 }
  0x2f   : > { %9631 = vmatprep.mubr.msk.f32.mxu0 %vm599_vm1, %v1496_v17  ;;  %v11790_v17 = vld [vmem:[%s11590_s25 + $0xd8] sm:$0x3]  ;;  %p11419_p0 = scmp.lt.s32.totalorder %s14809_s22, %s11417_s12  ;;  %p11420_p1 = scmp.lt.s32.totalorder %s11418_s13, %s11412_s9 }
  0x30   : > { %15113 = vst [vmem:[#allocation24_spill] sm:$0xff] %v11790_v17  ;;  %p11414_p12 = pnand %p11413_p11, %p11563_p5 }
  0x31   : > { %p11421_p2 = por %p11420_p1, %p11419_p0 }
  0x32   : > { %9632 = vmatmul.mubr.msk.f32.vlgmr.msra.gmra.mrb[10].mxu0 %vm599_vm1, %v1498_v21  ;;  %v1541_v21 = vrot.slane %v11790_v17, 2  ;;  %v1607_v17 = vrot.slane %v12081_v40, 2  ;;  %p11415_p13 = pneg %p11414_p12 }
  0x33   : > { %9713 = vmatpush3.msk.msra.mxu0 %vm708_vm0, %v8032_v5  ;;  %9634 = vmatprep.mubr.msk.f32.mxu0 %vm599_vm1, %v1500_v23  ;;  %v1534_v5 = vrot.slane %v11765_v1, 2  ;;  %v11808_v23 = vld [vmem:[%s11590_s25 + $0xe8] sm:$0xff]  ;;  %v12097_v1 = vld [vmem:[%s11590_s25 + $0x210] sm:$0xff] }
  0x34   : > { %9795 = vmatprep.subr.msk.mxu0 %vm708_vm0, %v11652_v25  ;;  %v1544_v33 = vrot.slane %v11808_v23, 2  ;;  %v11823_v35 = vsel %vm1493_vm2, %v1539_v19, %v1541_v21  ;;  %v11867_v21 = vld [vmem:[%s11590_s25 + $0x120] sm:$0xff]  ;;  %15158 = vst [vmem:[#allocation69_spill] sm:$0xff] %v12097_v1  ;;  %p11422_p3 = pnand %p11421_p2, %p11415_p13 }
  0x35   : > { %v11797_v18 = vsel %vm1493_vm2, %v1532_v0, %v1534_v5  ;;  %15117 = vst [vmem:[#allocation28_spill] sm:$0xff] %v11823_v35  ;;  %v11852_v0 = vld [vmem:[%s11590_s25 + $0x118] sm:$0x3]  ;;  %v11859_v5 = vsel %vm1493_vm2, %v1546_v39, %v1548_v50  ;;  %v1557_v50 = vrot.slane %v11867_v21, 2 }
  0x36   : > { %9635 = vmatmul.mubr.msk.f32.gmra.mrb[2].mxu0 %vm599_vm1, %v11658_v26  ;;  %15114 = vst [vmem:[#allocation25_spill] sm:$0xff] %v11797_v18  ;;  %v11840_v49 = vsel %vm1493_vm2, %v1543_v30, %v1544_v33  ;;  %v11844_v54 = vsel %vm1493_vm2, %v1544_v33, %v1546_v39  ;;  %15121 = vst [vmem:[#allocation32_spill] sm:$0xff] %v11852_v0  ;;  %v1555_v19 = vrot.slane %v11852_v0, 2  ;;  %v11870_v30 = vld [vmem:[%s11590_s25 + $0x128] sm:$0xff]  ;;  %v11873_v33 = vld [vmem:[%s11590_s25 + $0x130] sm:$0xff] }
  0x37   : > { %9637 = vmatprep.mubr.msk.f32.mxu0 %vm599_vm1, %v11662_v28  ;;  %15119 = vst [vmem:[#allocation30_spill] sm:$0xff] %v11840_v49  ;;  %15120 = vst [vmem:[#allocation31_spill] sm:$0xff] %v11844_v54  ;;  %v11880_v39 = vsel %vm1493_vm2, %v1551_v61, %v1553_v12  ;;  %v1558_v56 = vrot.slane %v11870_v30, 2  ;;  %v12013_v28 = vld [vmem:[%s11590_s25 + $0x1b8] sm:$0x3]  ;;  %v12019_v26 = vld [vmem:[%s11590_s25 + $0x1c8] sm:$0xff] }
  0x38   : > { %15122 = vst [vmem:[#allocation33_spill] sm:$0xff] %v11859_v5  ;;  %15124 = vst [vmem:[#allocation35_spill] sm:$0xff] %v11880_v39  ;;  %v12075_v0 = vld [vmem:[%s11590_s25 + $0x1f8] sm:$0x3] }
  0x39   : > { %v11902_v61 = vsel %vm1493_vm2, %v1557_v50, %v1558_v56  ;;  %15142 = vst [vmem:[#allocation53_spill] sm:$0xff] %v12013_v28  ;;  %15153 = vst [vmem:[#allocation64_spill] sm:$0xff] %v12075_v0 }
  0x3a   : > { %9638 = vmatmul.mubr.msk.f32.gmra.mrb[4].mxu0 %vm599_vm1, %v11676_v32  ;;  %15127 = vst [vmem:[#allocation38_spill] sm:$0xff] %v11902_v61 }
  0x3b   : > { %9640 = vmatprep.mubr.msk.f32.mxu0 %vm599_vm1, %v11680_v34  ;;  %v11994_v34 = vld [vmem:[%s11590_s25 + $0x1a8] sm:$0xff] }
  0x3e   : > { %9641 = vmatmul.mubr.msk.f32.gmra.mrb[6].mxu0 %vm599_vm1, %v11694_v38  ;;  %v11991_v38 = vld [vmem:[%s11590_s25 + $0x1a0] sm:$0xff] }
  0x3f   : > { %9643 = vmatprep.mubr.msk.f32.mxu0 %vm599_vm1, %v11699_v41 }
  0x42   : > { %9644 = vmatmul.mubr.msk.f32.gmra.mrb[8].mxu0 %vm599_vm1, %v11716_v46  ;;  %v11973_v46 = vld [vmem:[%s11590_s25 + $0x190] sm:$0xff] }
  0x43   : > { %9646 = vmatprep.mubr.msk.f32.mxu0 %vm599_vm1, %v11720_v48 }
  0x46   : > { %9647 = vmatmul.mubr.msk.f32.gmra.mrb[12].mxu0 %vm599_vm1, %v11735_v53  ;;  %v11957_v53 = vld [vmem:[%s11590_s25 + $0x188] sm:$0xff] }
  0x47   : > { %9649 = vmatprep.mubr.msk.f32.mxu0 %vm599_vm1, %v11739_v55  ;;  %v11951_v55 = vld [vmem:[%s11590_s25 + $0x178] sm:$0x3]  ;;  %v1579_v48 = vrot.slane %v11957_v53, 2 }
  0x48   : > { %15134 = vst [vmem:[#allocation45_spill] sm:$0xff] %v11951_v55 }
  0x4a   : > { %9650 = vmatmul.mubr.msk.f32.gmra.mrb[14].mxu0 %vm599_vm1, %v11756_v60 }
  0x4b   : > { %9652 = vmatprep.mubr.msk.f32.mxu0 %vm599_vm1, %v11761_v63  ;;  %v11932_v63 = vld [vmem:[%s11590_s25 + $0x168] sm:$0xff] }
  0x4e   : > { %9653 = vmatmul.mubr.msk.f32.gmra.mrb[16].mxu0 %vm599_vm1, %v11778_v4  ;;  %v11929_v4 = vld [vmem:[%s11590_s25 + $0x160] sm:$0xff] }
  0x4f   : > { %9655 = vmatprep.mubr.msk.f32.mxu0 %vm599_vm1, %v11782_v11 }
  0x52   : > { %9656 = vmatmul.mubr.msk.f32.gmra.mrb[18].mxu0 %vm599_vm1, %v11797_v18  ;;  %v11911_v18 = vld [vmem:[%s11590_s25 + $0x150] sm:$0xff] }
  0x53   : > { %9658 = vmatprep.mubr.msk.f32.mxu0 %vm599_vm1, %v11801_v20 }
  0x56   : > { %9659 = vmatmul.mubr.msk.f32.gmra.mrb[20].mxu0 %vm599_vm1, %v11818_v29  ;;  %v11895_v29 = vld [vmem:[%s11590_s25 + $0x148] sm:$0xff] }
  0x57   : > { %9661 = vmatprep.mubr.msk.f32.mxu0 %vm599_vm1, %v11823_v35  ;;  %v11889_v35 = vld [vmem:[%s11590_s25 + $0x138] sm:$0x3]  ;;  %v1565_v20 = vrot.slane %v11895_v29, 2 }
  0x58   : > { %15126 = vst [vmem:[#allocation37_spill] sm:$0xff] %v11889_v35 }
  0x5a   : > { %9662 = vmatmul.mubr.msk.f32.gmra.mrb[22].mxu0 %vm599_vm1, %v11840_v49  ;;  %v1560_v49 = vrot.slane %v11873_v33, 2 }
  0x5b   : > { %9664 = vmatprep.mubr.msk.f32.mxu0 %vm599_vm1, %v11844_v54  ;;  %v11885_v54 = vsel %vm1493_vm2, %v1553_v12, %v1555_v19  ;;  %v1562_v12 = vrot.slane %v11889_v35, 2  ;;  %v12056_v35 = vld [vmem:[%s11590_s25 + $0x1e8] sm:$0xff] }
  0x5c   : > { %15125 = vst [vmem:[#allocation36_spill] sm:$0xff] %v11885_v54  ;;  %v11906_v19 = vsel %vm1493_vm2, %v1558_v56, %v1560_v49  ;;  %v1567_v56 = vrot.slane %v11911_v18, 2  ;;  %15149 = vst [vmem:[#allocation60_spill] sm:$0xff] %v12056_v35 }
  0x5d   : > { %15128 = vst [vmem:[#allocation39_spill] sm:$0xff] %v11906_v19  ;;  %v11921_v50 = vsel %vm1493_vm2, %v1560_v49, %v1562_v12  ;;  %v1572_v12 = vrot.slane %v11932_v63, 2 }
  0x5e   : > { %9665 = vmatmul.mubr.msk.f32.gmra.mrb[24].mxu0 %vm599_vm1, %v11859_v5  ;;  %v11892_v5 = vld [vmem:[%s11590_s25 + $0x140] sm:$0xff]  ;;  %15130 = vst [vmem:[#allocation41_spill] sm:$0xff] %v11921_v50  ;;  %v11942_v49 = vsel %vm1493_vm2, %v1565_v20, %v1567_v56 }
  0x5f   : > { %9667 = vmatprep.mubr.msk.f32.mxu0 %vm599_vm1, %v11863_v14  ;;  %v1564_v14 = vrot.slane %v11892_v5, 2  ;;  %15132 = vst [vmem:[#allocation43_spill] sm:$0xff] %v11942_v49 }
  0x62   : > { %9668 = vmatmul.mubr.msk.f32.gmra.mrb[26].mxu0 %vm599_vm1, %v11880_v39  ;;  %v11914_v39 = vld [vmem:[%s11590_s25 + $0x158] sm:$0x3] }
  0x63   : > { %9670 = vmatprep.mubr.msk.f32.mxu0 %vm599_vm1, %v11885_v54  ;;  %15129 = vst [vmem:[#allocation40_spill] sm:$0xff] %v11914_v39  ;;  %v11925_v54 = vsel %vm1493_vm2, %v1564_v14, %v1565_v20  ;;  %v1569_v11 = vrot.slane %v11914_v39, 2  ;;  %v1571_v14 = vrot.slane %v11929_v4, 2  ;;  %v1576_v20 = vrot.slane %v11951_v55, 2  ;;  %v12035_v55 = vld [vmem:[%s11590_s25 + $0x1d0] sm:$0xff]  ;;  %v12053_v39 = vld [vmem:[%s11590_s25 + $0x1e0] sm:$0xff] }
  0x64   : > { %15131 = vst [vmem:[#allocation42_spill] sm:$0xff] %v11925_v54  ;;  %15148 = vst [vmem:[#allocation59_spill] sm:$0xff] %v12053_v39 }
  0x66   : > { %9671 = vmatmul.mubr.msk.f32.gmra.mrb[28].mxu0 %vm599_vm1, %v11902_v61  ;;  %v11935_v61 = vld [vmem:[%s11590_s25 + $0x170] sm:$0xff] }
  0x67   : > { %9673 = vmatprep.mubr.msk.f32.mxu0 %vm599_vm1, %v11906_v19  ;;  %v11947_v19 = vsel %vm1493_vm2, %v1567_v56, %v1569_v11  ;;  %v1574_v60 = vrot.slane %v11935_v61, 2  ;;  %v11964_v11 = vsel %vm1493_vm2, %v1571_v14, %v1572_v12 }
  0x68   : > { %15133 = vst [vmem:[#allocation44_spill] sm:$0xff] %v11947_v19  ;;  %15135 = vst [vmem:[#allocation46_spill] sm:$0xff] %v11964_v11 }
  0x69   : > { %v11968_v56 = vsel %vm1493_vm2, %v1572_v12, %v1574_v60  ;;  %v11983_v14 = vsel %vm1493_vm2, %v1574_v60, %v1576_v20  ;;  %v1581_v12 = vrot.slane %v11973_v46, 2  ;;  %v1586_v20 = vrot.slane %v11994_v34, 2 }
  0x6a   : > { %9674 = vmatmul.mubr.msk.f32.gmra.mrb[30].mxu0 %vm599_vm1, %v11921_v50  ;;  %v11954_v50 = vld [vmem:[%s11590_s25 + $0x180] sm:$0xff]  ;;  %15136 = vst [vmem:[#allocation47_spill] sm:$0xff] %v11968_v56  ;;  %15138 = vst [vmem:[#allocation49_spill] sm:$0xff] %v11983_v14 }
  0x6b   : > { %9676 = vmatprep.mubr.msk.f32.mxu0 %vm599_vm1, %v11925_v54  ;;  %v1578_v54 = vrot.slane %v11954_v50, 2  ;;  %v12004_v60 = vsel %vm1493_vm2, %v1579_v48, %v1581_v12 }
  0x6c   : > { %15140 = vst [vmem:[#allocation51_spill] sm:$0xff] %v12004_v60 }
  0x6e   : > { %9677 = vmatmul.mubr.msk.f32.gmra.mrb[32].mxu0 %vm599_vm1, %v11942_v49  ;;  %v11976_v49 = vld [vmem:[%s11590_s25 + $0x198] sm:$0x3] }
  0x6f   : > { %9679 = vmatprep.mubr.msk.f32.mxu0 %vm599_vm1, %v11947_v19  ;;  %15137 = vst [vmem:[#allocation48_spill] sm:$0xff] %v11976_v49  ;;  %v11987_v19 = vsel %vm1493_vm2, %v1578_v54, %v1579_v48  ;;  %v1583_v41 = vrot.slane %v11976_v49, 2  ;;  %v1585_v54 = vrot.slane %v11991_v38, 2  ;;  %v1590_v48 = vrot.slane %v12013_v28, 2 }
  0x70   : > { %15139 = vst [vmem:[#allocation50_spill] sm:$0xff] %v11987_v19  ;;  %v1593_v49 = vrot.slane %v12019_v26, 2 }
  0x72   : > { %9680 = vmatmul.mubr.msk.f32.gmra.mrb[34].mxu0 %vm599_vm1, %v11964_v11  ;;  %v11997_v11 = vld [vmem:[%s11590_s25 + $0x1b0] sm:$0xff] }
  0x73   : > { %9682 = vmatprep.mubr.msk.f32.mxu0 %vm599_vm1, %v11968_v56  ;;  %v12009_v56 = vsel %vm1493_vm2, %v1581_v12, %v1583_v41  ;;  %v1588_v32 = vrot.slane %v11997_v11, 2  ;;  %v12026_v41 = vsel %vm1493_vm2, %v1585_v54, %v1586_v20 }
  0x74   : > { %15141 = vst [vmem:[#allocation52_spill] sm:$0xff] %v12009_v56  ;;  %15143 = vst [vmem:[#allocation54_spill] sm:$0xff] %v12026_v41 }
  0x75   : > { %v12030_v12 = vsel %vm1493_vm2, %v1586_v20, %v1588_v32  ;;  %v12045_v54 = vsel %vm1493_vm2, %v1588_v32, %v1590_v48  ;;  %v1595_v20 = vrot.slane %v12035_v55, 2  ;;  %v1600_v48 = vrot.slane %v12056_v35, 2 }
  0x76   : > { %9683 = vmatmul.mubr.msk.f32.gmra.mrb[36].mxu0 %vm599_vm1, %v11983_v14  ;;  %v12016_v14 = vld [vmem:[%s11590_s25 + $0x1c0] sm:$0xff]  ;;  %15144 = vst [vmem:[#allocation55_spill] sm:$0xff] %v12030_v12  ;;  %15146 = vst [vmem:[#allocation57_spill] sm:$0xff] %v12045_v54 }
  0x77   : > { %9685 = vmatprep.mubr.msk.f32.mxu0 %vm599_vm1, %v11987_v19  ;;  %v1592_v19 = vrot.slane %v12016_v14, 2  ;;  %v12066_v32 = vsel %vm1493_vm2, %v1593_v49, %v1595_v20 }
  0x78   : > { %15151 = vst [vmem:[#allocation62_spill] sm:$0xff] %v12066_v32 }
  0x7a   : > { %9686 = vmatmul.mubr.msk.f32.gmra.mrb[38].mxu0 %vm599_vm1, %v12004_v60  ;;  %v12038_v60 = vld [vmem:[%s11590_s25 + $0x1d8] sm:$0x3] }
  0x7b   : > { %9688 = vmatprep.mubr.msk.f32.mxu0 %vm599_vm1, %v12009_v56  ;;  %15145 = vst [vmem:[#allocation56_spill] sm:$0xff] %v12038_v60  ;;  %v12049_v56 = vsel %vm1493_vm2, %v1592_v19, %v1593_v49  ;;  %v1597_v28 = vrot.slane %v12038_v60, 2  ;;  %v1599_v19 = vrot.slane %v12053_v39, 2  ;;  %v1604_v49 = vrot.slane %v12075_v0, 2 }
  0x7c   : > { %15147 = vst [vmem:[#allocation58_spill] sm:$0xff] %v12049_v56 }
  0x7e   : > { %9689 = vmatmul.mubr.msk.f32.gmra.mrb[40].mxu0 %vm599_vm1, %v12026_v41  ;;  %v12059_v41 = vld [vmem:[%s11590_s25 + $0x1f0] sm:$0xff] }
  0x7f   : > { %9691 = vmatprep.mubr.msk.f32.mxu0 %vm599_vm1, %v12030_v12  ;;  %15150 = vst [vmem:[#allocation61_spill] sm:$0xff] %v12059_v41  ;;  %v12071_v12 = vsel %vm1493_vm2, %v1595_v20, %v1597_v28  ;;  %v1602_v60 = vrot.slane %v12059_v41, 2  ;;  %v12088_v28 = vsel %vm1493_vm2, %v1599_v19, %v1600_v48 }
  0x80   : > { %15152 = vst [vmem:[#allocation63_spill] sm:$0xff] %v12071_v12  ;;  %15156 = vst [vmem:[#allocation67_spill] sm:$0xff] %v12088_v28 }
  0x81   : > { %v12092_v20 = vsel %vm1493_vm2, %v1600_v48, %v1602_v60  ;;  %v12107_v19 = vsel %vm1493_vm2, %v1602_v60, %v1604_v49  ;;  %v1609_v48 = vrot.slane %v12097_v1, 2  ;;  %v1614_v49 = vrot.slane %v12118_v43, 2 }
  0x82   : > { %9692 = vmatmul.mubr.msk.f32.gmra.mrb[42].mxu0 %vm599_vm1, %v12045_v54  ;;  %v12078_v54 = vld [vmem:[%s11590_s25 + $0x200] sm:$0xff]  ;;  %15157 = vst [vmem:[#allocation68_spill] sm:$0xff] %v12092_v20  ;;  %15160 = vst [vmem:[#allocation71_spill] sm:$0xff] %v12107_v19 }
  0x83   : > { %9694 = vmatprep.mubr.msk.f32.mxu0 %vm599_vm1, %v12049_v56  ;;  %15154 = vst [vmem:[#allocation65_spill] sm:$0xff] %v12078_v54  ;;  %v1606_v56 = vrot.slane %v12078_v54, 2  ;;  %v12128_v60 = vsel %vm1493_vm2, %v1607_v17, %v1609_v48 }
  0x84   : > { %15165 = vst [vmem:[#allocation76_spill] sm:$0xff] %v12128_v60 }
  0x86   : > { %9695 = vmatmul.mubr.msk.f32.gmra.mrb[44].mxu0 %vm599_vm1, %v12066_v32  ;;  %v12100_v32 = vld [vmem:[%s11590_s25 + $0x218] sm:$0x3] }
  0x87   : > { %9697 = vmatprep.mubr.msk.f32.mxu0 %vm599_vm1, %v12071_v12  ;;  %15159 = vst [vmem:[#allocation70_spill] sm:$0xff] %v12100_v32  ;;  %v12111_v12 = vsel %vm1493_vm2, %v1606_v56, %v1607_v17  ;;  %v1611_v0 = vrot.slane %v12100_v32, 2  ;;  %v1613_v56 = vrot.slane %v12115_v52, 2  ;;  %v12137_v32 = vld [vmem:[%s11590_s25 + $0x238] sm:$0x3] }
  0x88   : > { %15161 = vst [vmem:[#allocation72_spill] sm:$0xff] %v12111_v12 }
  0x89   : > { %v12144_v17 = vsel %vm1493_vm2, %v1613_v56, %v1614_v49  ;;  %v478_v56 = vrot.slane %v11603_v6, 1 }
  0x8a   : > { %9698 = vmatmul.mubr.msk.f32.gmra.mrb[46].mxu0 %vm599_vm1, %v12088_v28  ;;  %v1616_v28 = vrot.slane %v12121_v31, 2  ;;  %15167 = vst [vmem:[#allocation78_spill] sm:$0xff] %v12144_v17 }
  0x8b   : > { %9700 = vmatprep.mubr.msk.f32.mxu0 %vm599_vm1, %v12092_v20  ;;  %v12133_v20 = vsel %vm1493_vm2, %v1609_v48, %v1611_v0  ;;  %v12164_v48 = vld [vmem:[%s14857_s1 + $0x14] sm:$0xf] }
  0x8c   : > { %15166 = vst [vmem:[#allocation77_spill] sm:$0xff] %v12133_v20 }
  0x8e   : > { %9701 = vmatmul.mubr.msk.f32.gmra.mrb[48].mxu0 %vm599_vm1, %v12107_v19  ;;  %v12148_v19 = vsel %vm1493_vm2, %v1614_v49, %v1616_v28  ;;  %v479_v49 = vrot.slane %v11606_v7, 1 }
  0x8f   : > { %9703 = vmatprep.mubr.msk.f32.mxu0 %vm599_vm1, %v12111_v12  ;;  %v1618_v12 = vrot.slane %v12137_v32, 2  ;;  %15168 = vst [vmem:[#allocation79_spill] sm:$0xff] %v12148_v19 }
  0x91   : > { %v12155_v0 = vsel %vm1493_vm2, %v1616_v28, %v1618_v12  ;;  %v12271_v28 = vld [vmem:[%s11590_s25 + $0x240] sm:$0xff] }
  0x92   : > { %9704 = vmatmul.mubr.msk.f32.gmra.mrb[50].mxu0 %vm599_vm1, %v12128_v60  ;;  %15169 = vst [vmem:[#allocation80_spill] sm:$0xff] %v12155_v0  ;;  %v486_v60 = vrot.slane %v11624_v10, 1 }
  0x93   : > { %9706 = vmatprep.mubr.msk.f32.mxu0 %vm599_vm1, %v12133_v20  ;;  %v485_v20 = vrot.slane %v11617_v9, 1 }
  0x96   : > { %9707 = vmatmul.mubr.msk.f32.gmra.mrb[52].mxu0 %vm599_vm1, %v12144_v17 }
  0x97   : > { %9709 = vmatprep.mubr.msk.f32.mxu0 %vm599_vm1, %v12148_v19  ;;  %v12287_v19 = vsel %vm470_vm3, %v478_v56, %v479_v49 }
  0x9a   : > { %9710 = vmatmul.mubr.msk.f32.gmra.mrb[54].mxu0 %vm599_vm1, %v12155_v0  ;;  %v12284_v0 = vld [vmem:[%s11590_s25 + $0x250] sm:$0xff] }
  0x9b   : > { %9714 = vmatprep.mubr.msk.f32.mxu0 %vm599_vm1, %v11603_v6  ;;  %v483_v6 = vrot.slane %v11647_v24, 1  ;;  %v488_v24 = vrot.slane %v11627_v13, 1 }
  0x9e   : > { %9715 = vmatmul.mubr.msk.f32.vlgmr.msra.gmra.mrb[56].mxu0 %vm599_vm1, %v11606_v7 }
  0x9f   : > { %9796 = vmatpush3.msk.msra.mxu0 %vm708_vm0, %v11652_v25  ;;  %9717 = vmatprep.mubr.msk.f32.mxu0 %vm599_vm1, %v11614_v8 }
  0xa0   : > { %9878 = vmatprep.subr.msk.mxu0 %vm708_vm0, %v12164_v48 }
  0xa2   : > { %9718 = vmatmul.mubr.msk.f32.gmra.mrb[2].mxu0 %vm599_vm1, %v11617_v9  ;;  %v12315_v9 = vsel %vm470_vm3, %v485_v20, %v486_v60 }
  0xa3   : > { %9720 = vmatprep.mubr.msk.f32.mxu0 %vm599_vm1, %v11624_v10  ;;  %v15170_v10 = vld [vmem:[#allocation8_spill] sm:$0xff] }
  0xa6   : > { %9721 = vmatmul.mubr.msk.f32.gmra.mrb[4].mxu0 %vm599_vm1, %v11627_v13  ;;  %v12319_v13 = vsel %vm470_vm3, %v486_v60, %v488_v24 }
  0xa7   : > { %9723 = vmatprep.mubr.msk.f32.mxu0 %vm599_vm1, %v11635_v16 }
  0xaa   : > { %9724 = vmatmul.mubr.msk.f32.gmra.mrb[6].mxu0 %vm599_vm1, %v11684_v36 }
  0xab   : > { %9726 = vmatprep.mubr.msk.f32.mxu0 %vm599_vm1, %v11687_v37 }
  0xae   : > { %9727 = vmatmul.mubr.msk.f32.gmra.mrb[8].mxu0 %vm599_vm1, %v11706_v44 }
  0xaf   : > { %9729 = vmatprep.mubr.msk.f32.mxu0 %vm599_vm1, %v11709_v45 }
  0xb2   : > { %9730 = vmatmul.mubr.msk.f32.gmra.mrb[12].mxu0 %vm599_vm1, %v11725_v51 }
  0xb3   : > { %9732 = vmatprep.mubr.msk.f32.mxu0 %vm599_vm1, %v11743_v57 }
  0xb6   : > { %9733 = vmatmul.mubr.msk.f32.gmra.mrb[14].mxu0 %vm599_vm1, %v11746_v58 }
  0xb7   : > { %9735 = vmatprep.mubr.msk.f32.mxu0 %vm599_vm1, %v11749_v59 }
  0xba   : > { %9736 = vmatmul.mubr.msk.f32.gmra.mrb[16].mxu0 %vm599_vm1, %v11768_v2 }
  0xbb   : > { %9738 = vmatprep.mubr.msk.f32.mxu0 %vm599_vm1, %v11771_v3 }
  0xbe   : > { %9739 = vmatmul.mubr.msk.f32.gmra.mrb[18].mxu0 %vm599_vm1, %v11787_v15 }
  0xbf   : > { %9741 = vmatprep.mubr.msk.f32.mxu0 %vm599_vm1, %v11805_v22 }
  0xc2   : > { %9742 = vmatmul.mubr.msk.f32.gmra.mrb[20].mxu0 %vm599_vm1, %v11808_v23 }
  0xc3   : > { %9744 = vmatprep.mubr.msk.f32.mxu0 %vm599_vm1, %v11811_v27 }
  0xc6   : > { %9745 = vmatmul.mubr.msk.f32.gmra.mrb[22].mxu0 %vm599_vm1, %v11830_v42 }
  0xc7   : > { %9747 = vmatprep.mubr.msk.f32.mxu0 %vm599_vm1, %v11833_v47 }
  0xca   : > { %9748 = vmatmul.mubr.msk.f32.gmra.mrb[24].mxu0 %vm599_vm1, %v11849_v62 }
  0xcb   : > { %9750 = vmatprep.mubr.msk.f32.mxu0 %vm599_vm1, %v11867_v21 }
  0xce   : > { %9751 = vmatmul.mubr.msk.f32.gmra.mrb[26].mxu0 %vm599_vm1, %v11870_v30 }
  0xcf   : > { %9753 = vmatprep.mubr.msk.f32.mxu0 %vm599_vm1, %v11873_v33 }
  0xd2   : > { %9754 = vmatmul.mubr.msk.f32.gmra.mrb[28].mxu0 %vm599_vm1, %v11892_v5 }
  0xd3   : > { %9756 = vmatprep.mubr.msk.f32.mxu0 %vm599_vm1, %v11895_v29 }
  0xd6   : > { %9757 = vmatmul.mubr.msk.f32.gmra.mrb[30].mxu0 %vm599_vm1, %v11911_v18 }
  0xd7   : > { %9759 = vmatprep.mubr.msk.f32.mxu0 %vm599_vm1, %v11929_v4 }
  0xda   : > { %9760 = vmatmul.mubr.msk.f32.gmra.mrb[32].mxu0 %vm599_vm1, %v11932_v63 }
  0xdb   : > { %9762 = vmatprep.mubr.msk.f32.mxu0 %vm599_vm1, %v11935_v61 }
  0xde   : > { %9763 = vmatmul.mubr.msk.f32.gmra.mrb[34].mxu0 %vm599_vm1, %v11954_v50 }
  0xdf   : > { %9765 = vmatprep.mubr.msk.f32.mxu0 %vm599_vm1, %v11957_v53 }
  0xe2   : > { %9766 = vmatmul.mubr.msk.f32.gmra.mrb[36].mxu0 %vm599_vm1, %v11973_v46 }
  0xe3   : > { %9768 = vmatprep.mubr.msk.f32.mxu0 %vm599_vm1, %v11991_v38 }
  0xe6   : > { %9769 = vmatmul.mubr.msk.f32.gmra.mrb[38].mxu0 %vm599_vm1, %v11994_v34 }
  0xe7   : > { %9771 = vmatprep.mubr.msk.f32.mxu0 %vm599_vm1, %v11997_v11 }
  0xea   : > { %9772 = vmatmul.mubr.msk.f32.gmra.mrb[40].mxu0 %vm599_vm1, %v12016_v14 }
  0xeb   : > { %9774 = vmatprep.mubr.msk.f32.mxu0 %vm599_vm1, %v12019_v26 }
  0xee   : > { %9775 = vmatmul.mubr.msk.f32.gmra.mrb[42].mxu0 %vm599_vm1, %v12035_v55 }
  0xef   : > { %9777 = vmatprep.mubr.msk.f32.mxu0 %vm599_vm1, %v12053_v39 }
  0xf1   : > { %v9550_v25 = vpop.f32.mrb[0].mxu0 }
  0xf2   : > { %v1224_v12 = vpop.f32.mrb[1].mxu0  ;;  %9778 = vmatmul.mubr.msk.f32.gmra.mrb[44].mxu0 %vm599_vm1, %v12056_v35  ;;  %v12276_v25 = vld [vmem:[%s11590_s25 + $0x248] sm:$0xff] }
  0xf3   : > { %9780 = vmatprep.mubr.msk.f32.mxu0 %vm599_vm1, %v12059_v41  ;;  %v481_v12 = vrot.slane %v11614_v8, 1 }
  0xf5   : > { %v12295_v8 = vsel %vm470_vm3, %v479_v49, %v481_v12  ;;  %v12300_v56 = vsel %vm470_vm3, %v481_v12, %v483_v6  ;;  %v490_v49 = vrot.slane %v15170_v10, 1  ;;  %v492_v12 = vrot.slane %v11635_v16, 1  ;;  %v15171_v16 = vld [vmem:[#allocation13_spill] sm:$0xff] }
  0xf6   : > { %9781 = vmatmul.mubr.msk.f32.gmra.mrb[46].mxu0 %vm599_vm1, %v12078_v54  ;;  %v493_v6 = vrot.slane %v11684_v36, 1  ;;  %v499_v10 = vrot.slane %v11706_v44, 1 }
  0xf7   : > { %9783 = vmatprep.mubr.msk.f32.mxu0 %vm599_vm1, %v12081_v40  ;;  %v12330_v20 = vsel %vm470_vm3, %v488_v24, %v490_v49  ;;  %v500_v24 = vrot.slane %v11709_v45, 1  ;;  %v502_v49 = vrot.slane %v11725_v51, 1  ;;  %v506_v45 = vrot.slane %v11743_v57, 1 }
  0xf8   : > { %v12334_v60 = vsel %vm470_vm3, %v492_v12, %v493_v6 }
  0xf9   : > { %v12355_v12 = vsel %vm470_vm3, %v499_v10, %v500_v24  ;;  %v12359_v44 = vsel %vm470_vm3, %v500_v24, %v502_v49  ;;  %v15173_v24 = vld [vmem:[#allocation21_spill] sm:$0xff] }
  0xfa   : > { %9784 = vmatmul.mubr.msk.f32.gmra.mrb[48].mxu0 %vm599_vm1, %v12097_v1 }
  0xfb   : > { %9786 = vmatprep.mubr.msk.f32.mxu0 %vm599_vm1, %v12115_v52 }
  0xfe   : > { %9787 = vmatmul.mubr.msk.f32.gmra.mrb[50].mxu0 %vm599_vm1, %v12118_v43 }
  0xff   : > { %9789 = vmatprep.mubr.msk.f32.mxu0 %vm599_vm1, %v12121_v31 }
 0x102   : > { %9790 = vmatmul.mubr.msk.f32.gmra.mrb[52].mxu0 %vm599_vm1, %v12271_v28 }
 0x103   : > { %9792 = vmatprep.mubr.msk.f32.mxu0 %vm599_vm1, %v12276_v25 }
 0x105   : > { %v9633_v17 = vpop.f32.mrb[10].mxu0 }
 0x106   : > { %v1799_v7 = vpop.f32.mrb[11].mxu0  ;;  %9793 = vmatmul.mubr.msk.f32.gmra.mrb[58].mxu0 %vm599_vm1, %v12284_v0  ;;  %v12306_v17 = vld [vmem:[%s14857_s1 + $0x18] sm:$0xf] }
 0x107   : > { %9797 = vmatprep.mubr.msk.f32.mxu0 %vm599_vm1, %v12287_v19  ;;  %v497_v7 = vrot.slane %v15171_v16, 1 }
 0x10a   : > { %9798 = vmatmul.mubr.msk.f32.vlgmr.msra.gmra.mrb[60].mxu0 %vm599_vm1, %v12295_v8 }
 0x10b   : > { %9879 = vmatpush3.msk.msra.mxu0 %vm708_vm0, %v12164_v48  ;;  %9800 = vmatprep.mubr.msk.f32.mxu0 %vm599_vm1, %v12300_v56  ;;  %v495_v48 = vrot.slane %v11687_v37, 1 }
 0x10c   : > { %9961 = vmatprep.subr.msk.mxu0 %vm708_vm0, %v12306_v17 }
 0x10d   : > { %v12342_v36 = vsel %vm470_vm3, %v493_v6, %v495_v48  ;;  %v12347_v37 = vsel %vm470_vm3, %v495_v48, %v497_v7  ;;  %v15172_v6 = vld [vmem:[#allocation16_spill] sm:$0xff]  ;;  %v507_v48 = vrot.slane %v11746_v58, 1  ;;  %v509_v7 = vrot.slane %v11749_v59, 1 }
 0x10e   : > { %9801 = vmatmul.mubr.msk.f32.gmra.mrb[2].mxu0 %vm599_vm1, %v12315_v9  ;;  %v504_v16 = vrot.slane %v15172_v6, 1  ;;  %v511_v6 = vrot.slane %v15173_v24, 1  ;;  %v513_v58 = vrot.slane %v11768_v2, 1 }
 0x10f   : > { %9803 = vmatprep.mubr.msk.f32.mxu0 %vm599_vm1, %v12319_v13  ;;  %v12372_v10 = vsel %vm470_vm3, %v506_v45, %v507_v48  ;;  %v12380_v57 = vsel %vm470_vm3, %v507_v48, %v509_v7  ;;  %v15174_v48 = vld [vmem:[#allocation24_spill] sm:$0xff] }
 0x110   : > { %v12368_v51 = vsel %vm470_vm3, %v502_v49, %v504_v16  ;;  %v514_v49 = vrot.slane %v11771_v3, 1  ;;  %v12385_v59 = vsel %vm470_vm3, %v509_v7, %v511_v6  ;;  %v516_v16 = vrot.slane %v11787_v15, 1 }
 0x111   : > { %v518_v24 = vrot.slane %v15174_v48, 1  ;;  %v520_v3 = vrot.slane %v11805_v22, 1  ;;  %v521_v7 = vrot.slane %v11808_v23, 1  ;;  %v523_v6 = vrot.slane %v11811_v27, 1 }
 0x112   : > { %9804 = vmatmul.mubr.msk.f32.gmra.mrb[4].mxu0 %vm599_vm1, %v12330_v20  ;;  %v12393_v45 = vsel %vm470_vm3, %v513_v58, %v514_v49  ;;  %v12397_v2 = vsel %vm470_vm3, %v514_v49, %v516_v16  ;;  %v15175_v49 = vld [vmem:[#allocation29_spill] sm:$0xff]  ;;  %v527_v23 = vrot.slane %v11830_v42, 1 }
 0x113   : > { %9806 = vmatprep.mubr.msk.f32.mxu0 %vm599_vm1, %v12334_v60  ;;  %v12406_v15 = vsel %vm470_vm3, %v516_v16, %v518_v24  ;;  %v12410_v58 = vsel %vm470_vm3, %v520_v3, %v521_v7  ;;  %v525_v48 = vrot.slane %v15175_v49, 1  ;;  %v12418_v22 = vsel %vm470_vm3, %v521_v7, %v523_v6  ;;  %v15176_v7 = vld [vmem:[#allocation32_spill] sm:$0xff] }
 0x114   : > { %v528_v16 = vrot.slane %v11833_v47, 1  ;;  %v530_v24 = vrot.slane %v11849_v62, 1  ;;  %v532_v49 = vrot.slane %v15176_v7, 1  ;;  %v534_v47 = vrot.slane %v11867_v21, 1 }
 0x115   : > { %v12423_v27 = vsel %vm470_vm3, %v523_v6, %v525_v48  ;;  %v535_v6 = vrot.slane %v11870_v30, 1  ;;  %v537_v48 = vrot.slane %v11873_v33, 1  ;;  %v541_v30 = vrot.slane %v11892_v5, 1 }
 0x116   : > { %9807 = vmatmul.mubr.msk.f32.gmra.mrb[6].mxu0 %vm599_vm1, %v12342_v36  ;;  %v12431_v3 = vsel %vm470_vm3, %v527_v23, %v528_v16  ;;  %v12435_v42 = vsel %vm470_vm3, %v528_v16, %v530_v24  ;;  %v12444_v62 = vsel %vm470_vm3, %v530_v24, %v532_v49  ;;  %v15177_v16 = vld [vmem:[#allocation37_spill] sm:$0xff]  ;;  %v542_v24 = vrot.slane %v11895_v29, 1 }
 0x117   : > { %9809 = vmatprep.mubr.msk.f32.mxu0 %vm599_vm1, %v12347_v37  ;;  %v12448_v23 = vsel %vm470_vm3, %v534_v47, %v535_v6  ;;  %v539_v7 = vrot.slane %v15177_v16, 1  ;;  %v12456_v21 = vsel %vm470_vm3, %v535_v6, %v537_v48  ;;  %v544_v49 = vrot.slane %v11911_v18, 1  ;;  %v15178_v6 = vld [vmem:[#allocation40_spill] sm:$0xff] }
 0x118   : > { %v12469_v47 = vsel %vm470_vm3, %v541_v30, %v542_v24  ;;  %v546_v16 = vrot.slane %v15178_v6, 1  ;;  %v548_v29 = vrot.slane %v11929_v4, 1  ;;  %v555_v4 = vrot.slane %v11954_v50, 1 }
 0x119   : > { %v12461_v33 = vsel %vm470_vm3, %v537_v48, %v539_v7  ;;  %v12473_v5 = vsel %vm470_vm3, %v542_v24, %v544_v49  ;;  %v549_v48 = vrot.slane %v11932_v63, 1  ;;  %v551_v7 = vrot.slane %v11935_v61, 1  ;;  %v15179_v24 = vld [vmem:[#allocation45_spill] sm:$0xff] }
 0x11a   : > { %9810 = vmatmul.mubr.msk.f32.gmra.mrb[8].mxu0 %vm599_vm1, %v12355_v12  ;;  %v12482_v18 = vsel %vm470_vm3, %v544_v49, %v546_v16  ;;  %v553_v6 = vrot.slane %v15179_v24, 1  ;;  %v556_v49 = vrot.slane %v11957_v53, 1  ;;  %v558_v16 = vrot.slane %v11973_v46, 1 }
 0x11b   : > { %9812 = vmatprep.mubr.msk.f32.mxu0 %vm599_vm1, %v12359_v44  ;;  %v12486_v30 = vsel %vm470_vm3, %v548_v29, %v549_v48  ;;  %v12494_v63 = vsel %vm470_vm3, %v549_v48, %v551_v7  ;;  %v15180_v48 = vld [vmem:[#allocation48_spill] sm:$0xff]  ;;  %v562_v53 = vrot.slane %v11991_v38, 1  ;;  %v569_v38 = vrot.slane %v12016_v14, 1 }
 0x11c   : > { %v12499_v61 = vsel %vm470_vm3, %v551_v7, %v553_v6  ;;  %v12507_v29 = vsel %vm470_vm3, %v555_v4, %v556_v49  ;;  %v560_v24 = vrot.slane %v15180_v48, 1  ;;  %v12511_v50 = vsel %vm470_vm3, %v556_v49, %v558_v16  ;;  %v15181_v49 = vld [vmem:[#allocation53_spill] sm:$0xff] }
 0x11d   : > { %v563_v7 = vrot.slane %v11994_v34, 1  ;;  %v565_v6 = vrot.slane %v11997_v11, 1  ;;  %v567_v48 = vrot.slane %v15181_v49, 1 }
 0x11e   : > { %9813 = vmatmul.mubr.msk.f32.gmra.mrb[12].mxu0 %vm599_vm1, %v12368_v51  ;;  %v12520_v46 = vsel %vm470_vm3, %v558_v16, %v560_v24  ;;  %v570_v16 = vrot.slane %v12019_v26, 1  ;;  %v572_v24 = vrot.slane %v12035_v55, 1  ;;  %v576_v26 = vrot.slane %v12053_v39, 1 }
 0x11f   : > { %9815 = vmatprep.mubr.msk.f32.mxu0 %vm599_vm1, %v12372_v10  ;;  %v12524_v4 = vsel %vm470_vm3, %v562_v53, %v563_v7  ;;  %v12532_v34 = vsel %vm470_vm3, %v563_v7, %v565_v6  ;;  %v12537_v11 = vsel %vm470_vm3, %v565_v6, %v567_v48  ;;  %v15182_v7 = vld [vmem:[#allocation56_spill] sm:$0xff]  ;;  %v577_v6 = vrot.slane %v12056_v35, 1 }
 0x120   : > { %v12545_v53 = vsel %vm470_vm3, %v569_v38, %v570_v16  ;;  %v574_v49 = vrot.slane %v15182_v7, 1  ;;  %v12549_v14 = vsel %vm470_vm3, %v570_v16, %v572_v24  ;;  %v579_v48 = vrot.slane %v12059_v41, 1  ;;  %v15183_v16 = vld [vmem:[#allocation64_spill] sm:$0xff] }
 0x121   : > { %v12562_v38 = vsel %vm470_vm3, %v576_v26, %v577_v6  ;;  %v581_v7 = vrot.slane %v15183_v16, 1  ;;  %v583_v39 = vrot.slane %v12078_v54, 1  ;;  %v586_v26 = vrot.slane %v12097_v1, 1 }
 0x122   : > { %9816 = vmatmul.mubr.msk.f32.gmra.mrb[14].mxu0 %vm599_vm1, %v12380_v57  ;;  %v12558_v55 = vsel %vm470_vm3, %v572_v24, %v574_v49  ;;  %v12570_v35 = vsel %vm470_vm3, %v577_v6, %v579_v48  ;;  %v584_v24 = vrot.slane %v12081_v40, 1  ;;  %v15184_v6 = vld [vmem:[#allocation70_spill] sm:$0xff] }
 0x123   : > { %9818 = vmatprep.mubr.msk.f32.mxu0 %vm599_vm1, %v12385_v59  ;;  %v12575_v49 = vsel %vm470_vm3, %v579_v48, %v581_v7  ;;  %v588_v41 = vrot.slane %v15184_v6, 1  ;;  %v590_v48 = vrot.slane %v12115_v52, 1  ;;  %v591_v7 = vrot.slane %v12118_v43, 1 }
 0x124   : > { %v12583_v16 = vsel %vm470_vm3, %v583_v39, %v584_v24  ;;  %v12587_v54 = vsel %vm470_vm3, %v584_v24, %v586_v26  ;;  %v593_v39 = vrot.slane %v12121_v31, 1  ;;  %v595_v24 = vrot.slane %v12137_v32, 1  ;;  %v12617_v31 = vld [vmem:[%s11590_s25 + $0x258] sm:$0x3] }
 0x125   : > { %v12596_v1 = vsel %vm470_vm3, %v586_v26, %v588_v41  ;;  %v12600_v6 = vsel %vm470_vm3, %v590_v48, %v591_v7  ;;  %v2526_v43 = vrot.slane %v12271_v28, 1  ;;  %v2527_v52 = vrot.slane %v12276_v25, 1 }
 0x126   : > { %9819 = vmatmul.mubr.msk.f32.gmra.mrb[16].mxu0 %vm599_vm1, %v12393_v45  ;;  %15185 = vst [vmem:[#allocation8_spill] sm:$0xff] %v12596_v1  ;;  %15186 = vst [vmem:[#allocation13_spill] sm:$0xff] %v12600_v6  ;;  %v12610_v41 = vsel %vm470_vm3, %v591_v7, %v593_v39  ;;  %v2529_v26 = vrot.slane %v12284_v0, 1  ;;  %v12614_v48 = vsel %vm470_vm3, %v593_v39, %v595_v24  ;;  %v2531_v40 = vrot.slane %v12617_v31, 1 }
 0x127   : > { %9821 = vmatprep.mubr.msk.f32.mxu0 %vm599_vm1, %v12397_v2  ;;  %15187 = vst [vmem:[#allocation16_spill] sm:$0xff] %v12614_v48  ;;  %v12624_v32 = vsel %vm470_vm3, %v2526_v43, %v2527_v52 }
 0x128   : > { %15188 = vst [vmem:[#allocation21_spill] sm:$0xff] %v12624_v32  ;;  %v12628_v7 = vsel %vm470_vm3, %v2527_v52, %v2529_v26  ;;  %v12635_v39 = vsel %vm470_vm3, %v2529_v26, %v2531_v40  ;;  %v15191_v52 = vld [vmem:[#allocation6_spill] sm:$0xff]  ;;  %v15193_v40 = vld [vmem:[#allocation9_spill] sm:$0xff] }
 0x129   : > { %15189 = vst [vmem:[#allocation24_spill] sm:$0xff] %v12628_v7  ;;  %15190 = vst [vmem:[#allocation29_spill] sm:$0xff] %v12635_v39  ;;  %v15194_v26 = vld [vmem:[#allocation10_spill] sm:$0xff] }
 0x12a   : > { %9822 = vmatmul.mubr.msk.f32.gmra.mrb[18].mxu0 %vm599_vm1, %v12406_v15 }
 0x12b   : > { %9824 = vmatprep.mubr.msk.f32.mxu0 %vm599_vm1, %v12410_v58 }
 0x12e   : > { %9825 = vmatmul.mubr.msk.f32.gmra.mrb[20].mxu0 %vm599_vm1, %v12418_v22 }
 0x12f   : > { %9827 = vmatprep.mubr.msk.f32.mxu0 %vm599_vm1, %v12423_v27 }
 0x132   : > { %9828 = vmatmul.mubr.msk.f32.gmra.mrb[22].mxu0 %vm599_vm1, %v12431_v3 }
 0x133   : > { %9830 = vmatprep.mubr.msk.f32.mxu0 %vm599_vm1, %v12435_v42 }
 0x136   : > { %9831 = vmatmul.mubr.msk.f32.gmra.mrb[24].mxu0 %vm599_vm1, %v12444_v62 }
 0x137   : > { %9833 = vmatprep.mubr.msk.f32.mxu0 %vm599_vm1, %v12448_v23 }
 0x13a   : > { %9834 = vmatmul.mubr.msk.f32.gmra.mrb[26].mxu0 %vm599_vm1, %v12456_v21 }
 0x13b   : > { %9836 = vmatprep.mubr.msk.f32.mxu0 %vm599_vm1, %v12461_v33 }
 0x13e   : > { %9837 = vmatmul.mubr.msk.f32.gmra.mrb[28].mxu0 %vm599_vm1, %v12469_v47 }
 0x13f   : > { %9839 = vmatprep.mubr.msk.f32.mxu0 %vm599_vm1, %v12473_v5 }
 0x142   : > { %9840 = vmatmul.mubr.msk.f32.gmra.mrb[30].mxu0 %vm599_vm1, %v12482_v18 }
 0x143   : > { %9842 = vmatprep.mubr.msk.f32.mxu0 %vm599_vm1, %v12486_v30 }
 0x146   : > { %9843 = vmatmul.mubr.msk.f32.gmra.mrb[32].mxu0 %vm599_vm1, %v12494_v63 }
 0x147   : > { %9845 = vmatprep.mubr.msk.f32.mxu0 %vm599_vm1, %v12499_v61 }
 0x14a   : > { %9846 = vmatmul.mubr.msk.f32.gmra.mrb[34].mxu0 %vm599_vm1, %v12507_v29 }
 0x14b   : > { %9848 = vmatprep.mubr.msk.f32.mxu0 %vm599_vm1, %v12511_v50 }
 0x14e   : > { %9849 = vmatmul.mubr.msk.f32.gmra.mrb[36].mxu0 %vm599_vm1, %v12520_v46 }
 0x14f   : > { %9851 = vmatprep.mubr.msk.f32.mxu0 %vm599_vm1, %v12524_v4 }
 0x152   : > { %9852 = vmatmul.mubr.msk.f32.gmra.mrb[38].mxu0 %vm599_vm1, %v12532_v34 }
 0x153   : > { %9854 = vmatprep.mubr.msk.f32.mxu0 %vm599_vm1, %v12537_v11 }
 0x156   : > { %9855 = vmatmul.mubr.msk.f32.gmra.mrb[40].mxu0 %vm599_vm1, %v12545_v53 }
 0x157   : > { %9857 = vmatprep.mubr.msk.f32.mxu0 %vm599_vm1, %v12549_v14 }
 0x15a   : > { %9858 = vmatmul.mubr.msk.f32.gmra.mrb[42].mxu0 %vm599_vm1, %v12558_v55 }
 0x15b   : > { %9860 = vmatprep.mubr.msk.f32.mxu0 %vm599_vm1, %v12562_v38 }
 0x15e   : > { %9861 = vmatmul.mubr.msk.f32.gmra.mrb[44].mxu0 %vm599_vm1, %v12570_v35 }
 0x15f   : > { %9863 = vmatprep.mubr.msk.f32.mxu0 %vm599_vm1, %v12575_v49 }
 0x162   : > { %9864 = vmatmul.mubr.msk.f32.gmra.mrb[46].mxu0 %vm599_vm1, %v12583_v16 }
 0x163   : > { %9866 = vmatprep.mubr.msk.f32.mxu0 %vm599_vm1, %v12587_v54 }
 0x166   : > { %9867 = vmatmul.mubr.msk.f32.gmra.mrb[48].mxu0 %vm599_vm1, %v12596_v1 }
 0x167   : > { %9869 = vmatprep.mubr.msk.f32.mxu0 %vm599_vm1, %v12600_v6 }
 0x16a   : > { %9870 = vmatmul.mubr.msk.f32.gmra.mrb[50].mxu0 %vm599_vm1, %v12610_v41 }
 0x16b   : > { %9872 = vmatprep.mubr.msk.f32.mxu0 %vm599_vm1, %v12614_v48 }
 0x16d   : > { %v9711_v6 = vpop.f32.mrb[54].mxu0 }
 0x16e   : > { %v2059_v1 = vpop.f32.mrb[55].mxu0  ;;  %9873 = vmatmul.mubr.msk.f32.gmra.mrb[52].mxu0 %vm599_vm1, %v12624_v32  ;;  %v15192_v6 = vld [vmem:[#allocation7_spill] sm:$0xff]  ;;  %v15199_v32 = vld [vmem:[#allocation17_spill] sm:$0xff] }
 0x16f   : > { %9875 = vmatprep.mubr.msk.f32.mxu0 %vm599_vm1, %v12628_v7  ;;  %v12644_v1 = vld [vmem:[%s14857_s1 + $0x1c] sm:$0xf] }
 0x171   : > { %v9716_v24 = vpop.f32.mrb[56].mxu0 }
 0x172   : > { %v2202_v43 = vpop.f32.mrb[57].mxu0  ;;  %9876 = vmatmul.mubr.msk.f32.gmra.mrb[62].mxu0 %vm599_vm1, %v12635_v39  ;;  %v15195_v24 = vld [vmem:[#allocation11_spill] sm:$0xff]  ;;  %v11360_v39 = vld [vmem:[%s11590_s25 + $0x10] sm:$0xff] }
 0x173   : > { %9880 = vmatprep.mubr.msk.f32.mxu0 %vm599_vm1, %v15191_v52  ;;  %v15196_v43 = vld [vmem:[#allocation12_spill] sm:$0xff]  ;;  %v15197_v52 = vld [vmem:[#allocation14_spill] sm:$0xff]  ;;  %v474_v7 = vrot.slane %v11360_v39, 1 }
 0x176   : > { %9881 = vmatmul.mubr.msk.f32.vlgmr.msra.gmra.mrb[64].mxu0 %vm599_vm1, %v15192_v6  ;;  %v15198_v6 = vld [vmem:[#allocation15_spill] sm:$0xff] }
 0x177   : > { %9962 = vmatpush3.msk.msra.mxu0 %vm708_vm0, %v12306_v17  ;;  %9883 = vmatprep.mubr.msk.f32.mxu0 %vm599_vm1, %v15193_v40  ;;  %v11359_v17 = vld [vmem:[%s11590_s25] sm:$0xff] }
 0x178   : > { %10044 = vmatprep.subr.msk.mxu0 %vm708_vm0, %v12644_v1  ;;  %v471_v40 = vrot.slane %v11359_v17, 1 }
 0x17a   : > { %9884 = vmatmul.mubr.msk.f32.gmra.mrb[2].mxu0 %vm599_vm1, %v15194_v26  ;;  %v11361_v26 = vld [vmem:[%s11590_s25 + $0x8] sm:$0xff] }
 0x17b   : > { %9886 = vmatprep.mubr.msk.f32.mxu0 %vm599_vm1, %v15195_v24  ;;  %v472_v48 = vrot.slane %v11361_v26, 1  ;;  %v15200_v24 = vld [vmem:[#allocation18_spill] sm:$0xff]  ;;  %v11362_v26 = vld [vmem:[%s11590_s25 + $0x18] sm:$0x3] }
 0x17d   : > { %v473_v17 = vsel %vm470_vm3, %v471_v40, %v472_v48  ;;  %v475_v39 = vsel %vm470_vm3, %v472_v48, %v474_v7  ;;  %v15203_v48 = vld [vmem:[#allocation22_spill] sm:$0xff]  ;;  %v15204_v40 = vld [vmem:[#allocation23_spill] sm:$0xff] }
 0x17e   : > { %9887 = vmatmul.mubr.msk.f32.gmra.mrb[4].mxu0 %vm599_vm1, %v15196_v43  ;;  %v15201_v43 = vld [vmem:[#allocation19_spill] sm:$0xff]  ;;  %9465 = vmatprep.mubr.msk.f32.mxu1 %vm599_vm1, %v473_v17  ;;  %v15205_v17 = vld [vmem:[#allocation25_spill] sm:$0xff] }
 0x17f   : > { %9889 = vmatprep.mubr.msk.f32.mxu0 %vm599_vm1, %v15197_v52  ;;  %v7865_v52 = vld [vmem:[%s14857_s1 + $0x4] sm:$0xf] }
 0x180   : > { %9463 = vmatprep.subr.msk.mxu1 %vm708_vm0, %v7865_v52 }
 0x181   : > { %9464 = vmatpush3.msk.msra.mxu1 %vm708_vm0, %v7865_v52 }
 0x182   : > { %9890 = vmatmul.mubr.msk.f32.gmra.mrb[6].mxu0 %vm599_vm1, %v15198_v6  ;;  %9466 = vmatmul.mubr.msk.f32.vlgmr.msra.gmra.mrb[0].mxu1 %vm599_vm1, %v475_v39  ;;  %v15212_v39 = vld [vmem:[#allocation34_spill] sm:$0xff] }
 0x183   : > { %9892 = vmatprep.mubr.msk.f32.mxu0 %vm599_vm1, %v15199_v32  ;;  %v11363_v32 = vld [vmem:[%s14857_s1] sm:$0xf] }
 0x184   : > { %10660 = vmatprep.subr.msk.mxu1 %vm708_vm0, %v11363_v32 }
 0x185   : > { %10661 = vmatpush3.msk.msra.mxu1 %vm708_vm0, %v11363_v32  ;;  %v15206_v32 = vld [vmem:[#allocation26_spill] sm:$0xff] }
 0x186   : > { %9893 = vmatmul.mubr.msk.f32.gmra.mrb[8].mxu0 %vm599_vm1, %v15200_v24  ;;  %v476_v24 = vrot.slane %v11362_v26, 1  ;;  %v15213_v26 = vld [vmem:[#allocation35_spill] sm:$0xff] }
 0x187   : > { %9895 = vmatprep.mubr.msk.f32.mxu0 %vm599_vm1, %v15201_v43  ;;  %v15202_v43 = vld [vmem:[#allocation20_spill] sm:$0xff] }
 0x188   : > { %v477_v52 = vsel %vm470_vm3, %v474_v7, %v476_v24  ;;  %v15207_v7 = vld [vmem:[#allocation27_spill] sm:$0xff]  ;;  %v15211_v24 = vld [vmem:[#allocation33_spill] sm:$0xff] }
 0x189   : > { %9468 = vmatprep.mubr.msk.f32.mxu1 %vm599_vm1, %v477_v52  ;;  %v15214_v52 = vld [vmem:[#allocation36_spill] sm:$0xff] }
 0x18a   : > { %9896 = vmatmul.mubr.msk.f32.gmra.mrb[12].mxu0 %vm599_vm1, %v15202_v43  ;;  %9469 = vmatmul.mubr.msk.f32.gmra.mrb[2].mxu1 %vm599_vm1, %v12287_v19  ;;  %v15208_v19 = vld [vmem:[#allocation28_spill] sm:$0xff] }
 0x18b   : > { %9898 = vmatprep.mubr.msk.f32.mxu0 %vm599_vm1, %v15203_v48  ;;  %9471 = vmatprep.mubr.msk.f32.mxu1 %vm599_vm1, %v12295_v8  ;;  %v15209_v8 = vld [vmem:[#allocation30_spill] sm:$0xff]  ;;  %v11398_v48 = vld [vmem:[%s11590_s25 + $0x1a8] sm:$0xff] }
 0x18e   : > { %9899 = vmatmul.mubr.msk.f32.gmra.mrb[14].mxu0 %vm599_vm1, %v15204_v40  ;;  %9472 = vmatmul.mubr.msk.f32.gmra.mrb[4].mxu1 %vm599_vm1, %v12300_v56  ;;  %v15210_v56 = vld [vmem:[#allocation31_spill] sm:$0xff]  ;;  %v11376_v40 = vld [vmem:[%s11590_s25 + $0xc0] sm:$0xff] }
 0x18f   : > { %9901 = vmatprep.mubr.msk.f32.mxu0 %vm599_vm1, %v15205_v17  ;;  %9474 = vmatprep.mubr.msk.f32.mxu1 %vm599_vm1, %v12315_v9  ;;  %v11375_v17 = vld [vmem:[%s11590_s25 + $0xb0] sm:$0xff] }
 0x192   : > { %9902 = vmatmul.mubr.msk.f32.gmra.mrb[16].mxu0 %vm599_vm1, %v15206_v32  ;;  %9475 = vmatmul.mubr.msk.f32.gmra.mrb[6].mxu1 %vm599_vm1, %v12319_v13 }
 0x193   : > { %9904 = vmatprep.mubr.msk.f32.mxu0 %vm599_vm1, %v15207_v7  ;;  %9477 = vmatprep.mubr.msk.f32.mxu1 %vm599_vm1, %v12330_v20 }
 0x196   : > { %9905 = vmatmul.mubr.msk.f32.gmra.mrb[18].mxu0 %vm599_vm1, %v15208_v19  ;;  %9478 = vmatmul.mubr.msk.f32.gmra.mrb[8].mxu1 %vm599_vm1, %v12334_v60 }
 0x197   : > { %9907 = vmatprep.mubr.msk.f32.mxu0 %vm599_vm1, %v15209_v8  ;;  %9480 = vmatprep.mubr.msk.f32.mxu1 %vm599_vm1, %v12342_v36  ;;  %v2936_v8 = vrot.slane %v12284_v0, 2 }
 0x19a   : > { %9908 = vmatmul.mubr.msk.f32.gmra.mrb[20].mxu0 %vm599_vm1, %v15210_v56  ;;  %9481 = vmatmul.mubr.msk.f32.gmra.mrb[10].mxu1 %vm599_vm1, %v12347_v37  ;;  %v2934_v56 = vrot.slane %v12276_v25, 2 }
 0x19b   : > { %9910 = vmatprep.mubr.msk.f32.mxu0 %vm599_vm1, %v15211_v24  ;;  %9483 = vmatprep.mubr.msk.f32.mxu1 %vm599_vm1, %v12355_v12  ;;  %v15215_v24 = vld [vmem:[#allocation38_spill] sm:$0xff] }
 0x19c   : > { %v12854_v7 = vsel %vm1493_vm2, %v2934_v56, %v2936_v8 }
 0x19d   : > { %15243 = vst [vmem:[#allocation37_spill] sm:$0xff] %v12854_v7 }
 0x19e   : > { %9911 = vmatmul.mubr.msk.f32.gmra.mrb[22].mxu0 %vm599_vm1, %v15212_v39  ;;  %9484 = vmatmul.mubr.msk.f32.gmra.mrb[12].mxu1 %vm599_vm1, %v12359_v44  ;;  %v15216_v39 = vld [vmem:[#allocation39_spill] sm:$0xff] }
 0x19f   : > { %9913 = vmatprep.mubr.msk.f32.mxu0 %vm599_vm1, %v15213_v26  ;;  %9486 = vmatprep.mubr.msk.f32.mxu1 %vm599_vm1, %v12368_v51  ;;  %v15217_v26 = vld [vmem:[#allocation41_spill] sm:$0xff] }
 0x1a2   : > { %9914 = vmatmul.mubr.msk.f32.gmra.mrb[24].mxu0 %vm599_vm1, %v15214_v52  ;;  %9487 = vmatmul.mubr.msk.f32.gmra.mrb[14].mxu1 %vm599_vm1, %v12372_v10  ;;  %v15218_v52 = vld [vmem:[#allocation42_spill] sm:$0xff] }
 0x1a3   : > { %9916 = vmatprep.mubr.msk.f32.mxu0 %vm599_vm1, %v15215_v24  ;;  %9489 = vmatprep.mubr.msk.f32.mxu1 %vm599_vm1, %v12380_v57  ;;  %v15219_v24 = vld [vmem:[#allocation43_spill] sm:$0xff] }
 0x1a6   : > { %9917 = vmatmul.mubr.msk.f32.gmra.mrb[26].mxu0 %vm599_vm1, %v15216_v39  ;;  %9490 = vmatmul.mubr.msk.f32.gmra.mrb[16].mxu1 %vm599_vm1, %v12385_v59  ;;  %v15220_v39 = vld [vmem:[#allocation44_spill] sm:$0xff] }
 0x1a7   : > { %9919 = vmatprep.mubr.msk.f32.mxu0 %vm599_vm1, %v15217_v26  ;;  %9492 = vmatprep.mubr.msk.f32.mxu1 %vm599_vm1, %v12393_v45  ;;  %v15221_v26 = vld [vmem:[#allocation46_spill] sm:$0xff] }
 0x1aa   : > { %9920 = vmatmul.mubr.msk.f32.gmra.mrb[28].mxu0 %vm599_vm1, %v15218_v52  ;;  %9493 = vmatmul.mubr.msk.f32.gmra.mrb[18].mxu1 %vm599_vm1, %v12397_v2  ;;  %v15222_v52 = vld [vmem:[#allocation47_spill] sm:$0xff] }
 0x1ab   : > { %9922 = vmatprep.mubr.msk.f32.mxu0 %vm599_vm1, %v15219_v24  ;;  %9495 = vmatprep.mubr.msk.f32.mxu1 %vm599_vm1, %v12406_v15  ;;  %v15223_v24 = vld [vmem:[#allocation49_spill] sm:$0xff] }
 0x1ae   : > { %9923 = vmatmul.mubr.msk.f32.gmra.mrb[30].mxu0 %vm599_vm1, %v15220_v39  ;;  %9496 = vmatmul.mubr.msk.f32.gmra.mrb[20].mxu1 %vm599_vm1, %v12410_v58  ;;  %v15224_v39 = vld [vmem:[#allocation50_spill] sm:$0xff] }
 0x1af   : > { %9925 = vmatprep.mubr.msk.f32.mxu0 %vm599_vm1, %v15221_v26  ;;  %9498 = vmatprep.mubr.msk.f32.mxu1 %vm599_vm1, %v12418_v22  ;;  %v15225_v26 = vld [vmem:[#allocation51_spill] sm:$0xff] }
 0x1b2   : > { %9926 = vmatmul.mubr.msk.f32.gmra.mrb[32].mxu0 %vm599_vm1, %v15222_v52  ;;  %9499 = vmatmul.mubr.msk.f32.gmra.mrb[22].mxu1 %vm599_vm1, %v12423_v27  ;;  %v15226_v52 = vld [vmem:[#allocation52_spill] sm:$0xff] }
 0x1b3   : > { %9928 = vmatprep.mubr.msk.f32.mxu0 %vm599_vm1, %v15223_v24  ;;  %9501 = vmatprep.mubr.msk.f32.mxu1 %vm599_vm1, %v12431_v3  ;;  %v15227_v24 = vld [vmem:[#allocation54_spill] sm:$0xff] }
 0x1b6   : > { %9929 = vmatmul.mubr.msk.f32.gmra.mrb[34].mxu0 %vm599_vm1, %v15224_v39  ;;  %9502 = vmatmul.mubr.msk.f32.gmra.mrb[24].mxu1 %vm599_vm1, %v12435_v42  ;;  %v15228_v39 = vld [vmem:[#allocation55_spill] sm:$0xff] }
 0x1b7   : > { %9931 = vmatprep.mubr.msk.f32.mxu0 %vm599_vm1, %v15225_v26  ;;  %9504 = vmatprep.mubr.msk.f32.mxu1 %vm599_vm1, %v12444_v62  ;;  %v15229_v26 = vld [vmem:[#allocation57_spill] sm:$0xff] }
 0x1ba   : > { %9932 = vmatmul.mubr.msk.f32.gmra.mrb[36].mxu0 %vm599_vm1, %v15226_v52  ;;  %9505 = vmatmul.mubr.msk.f32.gmra.mrb[26].mxu1 %vm599_vm1, %v12448_v23  ;;  %v15230_v52 = vld [vmem:[#allocation58_spill] sm:$0xff] }
 0x1bb   : > { %9934 = vmatprep.mubr.msk.f32.mxu0 %vm599_vm1, %v15227_v24  ;;  %9507 = vmatprep.mubr.msk.f32.mxu1 %vm599_vm1, %v12456_v21  ;;  %v15231_v24 = vld [vmem:[#allocation62_spill] sm:$0xff] }
 0x1be   : > { %9935 = vmatmul.mubr.msk.f32.gmra.mrb[38].mxu0 %vm599_vm1, %v15228_v39  ;;  %9508 = vmatmul.mubr.msk.f32.gmra.mrb[28].mxu1 %vm599_vm1, %v12461_v33  ;;  %v15232_v39 = vld [vmem:[#allocation63_spill] sm:$0xff] }
 0x1bf   : > { %9937 = vmatprep.mubr.msk.f32.mxu0 %vm599_vm1, %v15229_v26  ;;  %9510 = vmatprep.mubr.msk.f32.mxu1 %vm599_vm1, %v12469_v47  ;;  %v15233_v26 = vld [vmem:[#allocation67_spill] sm:$0xff] }
 0x1c2   : > { %9938 = vmatmul.mubr.msk.f32.gmra.mrb[40].mxu0 %vm599_vm1, %v15230_v52  ;;  %9511 = vmatmul.mubr.msk.f32.gmra.mrb[30].mxu1 %vm599_vm1, %v12473_v5  ;;  %v15234_v52 = vld [vmem:[#allocation68_spill] sm:$0xff] }
 0x1c3   : > { %9940 = vmatprep.mubr.msk.f32.mxu0 %vm599_vm1, %v15231_v24  ;;  %9513 = vmatprep.mubr.msk.f32.mxu1 %vm599_vm1, %v12482_v18  ;;  %v15235_v24 = vld [vmem:[#allocation71_spill] sm:$0xff] }
 0x1c6   : > { %9941 = vmatmul.mubr.msk.f32.gmra.mrb[42].mxu0 %vm599_vm1, %v15232_v39  ;;  %9514 = vmatmul.mubr.msk.f32.gmra.mrb[32].mxu1 %vm599_vm1, %v12486_v30  ;;  %v15236_v39 = vld [vmem:[#allocation72_spill] sm:$0xff] }
 0x1c7   : > { %9943 = vmatprep.mubr.msk.f32.mxu0 %vm599_vm1, %v15233_v26  ;;  %9516 = vmatprep.mubr.msk.f32.mxu1 %vm599_vm1, %v12494_v63  ;;  %v15237_v26 = vld [vmem:[#allocation76_spill] sm:$0xff] }
 0x1ca   : > { %9944 = vmatmul.mubr.msk.f32.gmra.mrb[44].mxu0 %vm599_vm1, %v15234_v52  ;;  %9517 = vmatmul.mubr.msk.f32.gmra.mrb[34].mxu1 %vm599_vm1, %v12499_v61  ;;  %v15238_v52 = vld [vmem:[#allocation77_spill] sm:$0xff] }
 0x1cb   : > { %9946 = vmatprep.mubr.msk.f32.mxu0 %vm599_vm1, %v15235_v24  ;;  %9519 = vmatprep.mubr.msk.f32.mxu1 %vm599_vm1, %v12507_v29  ;;  %v2933_v24 = vrot.slane %v12271_v28, 2 }
 0x1cd   : > { %v12850_v19 = vsel %vm1493_vm2, %v2933_v24, %v2934_v56  ;;  %v11364_v24 = vld [vmem:[%s11590_s25 + $0x40] sm:$0xff] }
 0x1ce   : > { %9947 = vmatmul.mubr.msk.f32.gmra.mrb[46].mxu0 %vm599_vm1, %v15236_v39  ;;  %9520 = vmatmul.mubr.msk.f32.gmra.mrb[36].mxu1 %vm599_vm1, %v12511_v50  ;;  %v15239_v39 = vld [vmem:[#allocation78_spill] sm:$0xff]  ;;  %15242 = vst [vmem:[#allocation32_spill] sm:$0xff] %v12850_v19 }
 0x1cf   : > { %9949 = vmatprep.mubr.msk.f32.mxu0 %vm599_vm1, %v15237_v26  ;;  %9522 = vmatprep.mubr.msk.f32.mxu1 %vm599_vm1, %v12520_v46  ;;  %v15240_v26 = vld [vmem:[#allocation79_spill] sm:$0xff] }
 0x1d2   : > { %9950 = vmatmul.mubr.msk.f32.gmra.mrb[48].mxu0 %vm599_vm1, %v15238_v52  ;;  %9523 = vmatmul.mubr.msk.f32.gmra.mrb[38].mxu1 %vm599_vm1, %v12524_v4  ;;  %v15241_v52 = vld [vmem:[#allocation80_spill] sm:$0xff] }
 0x1d3   : > { %9952 = vmatprep.mubr.msk.f32.mxu0 %vm599_vm1, %v15239_v39  ;;  %9525 = vmatprep.mubr.msk.f32.mxu1 %vm599_vm1, %v12532_v34  ;;  %v2938_v39 = vrot.slane %v12617_v31, 2 }
 0x1d5   : > { %v12865_v31 = vsel %vm1493_vm2, %v2936_v8, %v2938_v39  ;;  %v12878_v8 = vld [vmem:[%s14857_s1 + $0x20] sm:$0xf]  ;;  %v11365_v39 = vld [vmem:[%s11590_s25 + $0x48] sm:$0xff] }
 0x1d6   : > { %9953 = vmatmul.mubr.msk.f32.gmra.mrb[50].mxu0 %vm599_vm1, %v15240_v26  ;;  %9526 = vmatmul.mubr.msk.f32.gmra.mrb[40].mxu1 %vm599_vm1, %v12537_v11  ;;  %15244 = vst [vmem:[#allocation40_spill] sm:$0xff] %v12865_v31 }
 0x1d7   : > { %9955 = vmatprep.mubr.msk.f32.mxu0 %vm599_vm1, %v15241_v52  ;;  %9528 = vmatprep.mubr.msk.f32.mxu1 %vm599_vm1, %v12545_v53  ;;  %v11374_v52 = vld [vmem:[%s11590_s25 + $0xa8] sm:$0xff] }
 0x1d9   : > { %v9794_v32 = vpop.f32.mrb[58].mxu0 }
 0x1da   : > { %v2462_v26 = vpop.f32.mrb[59].mxu0  ;;  %9956 = vmatmul.mubr.msk.f32.gmra.mrb[52].mxu0 %vm599_vm1, %v12850_v19  ;;  %9529 = vmatmul.mubr.msk.f32.gmra.mrb[42].mxu1 %vm599_vm1, %v12549_v14  ;;  %v11373_v19 = vld [vmem:[%s11590_s25 + $0xa0] sm:$0xff] }
 0x1db   : > { %9958 = vmatprep.mubr.msk.f32.mxu0 %vm599_vm1, %v12854_v7  ;;  %9531 = vmatprep.mubr.msk.f32.mxu1 %vm599_vm1, %v12558_v55  ;;  %v11366_v26 = vld [vmem:[%s11590_s25 + $0x50] sm:$0xff] }
 0x1dc   : > { %v15247_v7 = vld [vmem:[#allocation16_spill] sm:$0xff] }
 0x1dd   : > { %v9799_v56 = vpop.f32.mrb[60].mxu0 }
 0x1de   : > { %v2610_v32 = vpop.f32.mrb[61].mxu0  ;;  %9959 = vmatmul.mubr.msk.f32.gmra.mrb[66].mxu0 %vm599_vm1, %v12865_v31  ;;  %9532 = vmatmul.mubr.msk.f32.gmra.mrb[44].mxu1 %vm599_vm1, %v12562_v38  ;;  %v11367_v56 = vld [vmem:[%s11590_s25 + $0x60] sm:$0xff]  ;;  %v11372_v31 = vld [vmem:[%s11590_s25 + $0x90] sm:$0xff] }
 0x1df   : > { %9963 = vmatprep.mubr.msk.f32.mxu0 %vm599_vm1, %v11364_v24  ;;  %9534 = vmatprep.mubr.msk.f32.mxu1 %vm599_vm1, %v12570_v35  ;;  %v11368_v32 = vld [vmem:[%s11590_s25 + $0x68] sm:$0xff]  ;;  %v15245_v24 = vld [vmem:[#allocation8_spill] sm:$0xff] }
 0x1e2   : > { %9964 = vmatmul.mubr.msk.f32.vlgmr.msra.gmra.mrb[68].mxu0 %vm599_vm1, %v11365_v39  ;;  %9535 = vmatmul.mubr.msk.f32.gmra.mrb[46].mxu1 %vm599_vm1, %v12575_v49  ;;  %v11370_v39 = vld [vmem:[%s11590_s25 + $0x80] sm:$0xff] }
 0x1e3   : > { %10045 = vmatpush3.msk.msra.mxu0 %vm708_vm0, %v12644_v1  ;;  %9966 = vmatprep.mubr.msk.f32.mxu0 %vm599_vm1, %v11366_v26  ;;  %v11369_v1 = vld [vmem:[%s11590_s25 + $0x70] sm:$0xff]  ;;  %v15246_v26 = vld [vmem:[#allocation13_spill] sm:$0xff] }
 0x1e4   : > { %10127 = vmatprep.subr.msk.mxu0 %vm708_vm0, %v12878_v8  ;;  %9537 = vmatprep.mubr.msk.f32.mxu1 %vm599_vm1, %v12583_v16 }
 0x1e6   : > { %9967 = vmatmul.mubr.msk.f32.gmra.mrb[2].mxu0 %vm599_vm1, %v11367_v56  ;;  %9538 = vmatmul.mubr.msk.f32.gmra.mrb[48].mxu1 %vm599_vm1, %v12587_v54  ;;  %v11371_v56 = vld [vmem:[%s11590_s25 + $0x88] sm:$0xff] }
 0x1e7   : > { %9969 = vmatprep.mubr.msk.f32.mxu0 %vm599_vm1, %v11368_v32  ;;  %9540 = vmatprep.mubr.msk.f32.mxu1 %vm599_vm1, %v15245_v24 }
 0x1ea   : > { %9970 = vmatmul.mubr.msk.f32.gmra.mrb[4].mxu0 %vm599_vm1, %v11369_v1  ;;  %9541 = vmatmul.mubr.msk.f32.gmra.mrb[50].mxu1 %vm599_vm1, %v15246_v26 }
 0x1eb   : > { %9972 = vmatprep.mubr.msk.f32.mxu0 %vm599_vm1, %v11370_v39  ;;  %9543 = vmatprep.mubr.msk.f32.mxu1 %vm599_vm1, %v12610_v41 }
 0x1ee   : > { %9973 = vmatmul.mubr.msk.f32.gmra.mrb[6].mxu0 %vm599_vm1, %v11371_v56  ;;  %9544 = vmatmul.mubr.msk.f32.gmra.mrb[52].mxu1 %vm599_vm1, %v15247_v7 }
 0x1ef   : > { %9975 = vmatprep.mubr.msk.f32.mxu0 %vm599_vm1, %v11372_v31  ;;  %9563 = vmatprep.mubr.msk.f32.mxu1 %vm599_vm1, %v11368_v32  ;;  %v11377_v32 = vld [vmem:[%s11590_s25 + $0xc8] sm:$0xff] }
 0x1f2   : > { %9976 = vmatmul.mubr.msk.f32.gmra.mrb[8].mxu0 %vm599_vm1, %v11373_v19  ;;  %9564 = vmatmul.mubr.msk.f32.vlgmr.msra.gmra.mrb[10].mxu1 %vm599_vm1, %v11369_v1  ;;  %v11378_v1 = vld [vmem:[%s11590_s25 + $0xd0] sm:$0xff] }
 0x1f3   : > { %9978 = vmatprep.mubr.msk.f32.mxu0 %vm599_vm1, %v11374_v52  ;;  %9566 = vmatprep.mubr.msk.f32.mxu1 %vm599_vm1, %v11370_v39  ;;  %v11379_v39 = vld [vmem:[%s11590_s25 + $0xe0] sm:$0xff] }
 0x1f6   : > { %9979 = vmatmul.mubr.msk.f32.gmra.mrb[12].mxu0 %vm599_vm1, %v11375_v17  ;;  %9567 = vmatmul.mubr.msk.f32.gmra.mrb[12].mxu1 %vm599_vm1, %v11371_v56  ;;  %v11380_v56 = vld [vmem:[%s11590_s25 + $0xe8] sm:$0xff] }
 0x1f7   : > { %9981 = vmatprep.mubr.msk.f32.mxu0 %vm599_vm1, %v11376_v40  ;;  %9569 = vmatprep.mubr.msk.f32.mxu1 %vm599_vm1, %v11372_v31  ;;  %v11381_v31 = vld [vmem:[%s11590_s25 + $0xf0] sm:$0xff] }
 0x1fa   : > { %9982 = vmatmul.mubr.msk.f32.gmra.mrb[14].mxu0 %vm599_vm1, %v11377_v32  ;;  %9570 = vmatmul.mubr.msk.f32.gmra.mrb[14].mxu1 %vm599_vm1, %v11373_v19  ;;  %v11382_v19 = vld [vmem:[%s11590_s25 + $0x100] sm:$0xff] }
 0x1fb   : > { %9984 = vmatprep.mubr.msk.f32.mxu0 %vm599_vm1, %v11378_v1  ;;  %9572 = vmatprep.mubr.msk.f32.mxu1 %vm599_vm1, %v11374_v52  ;;  %v11383_v52 = vld [vmem:[%s11590_s25 + $0x108] sm:$0xff] }
 0x1fe   : > { %9985 = vmatmul.mubr.msk.f32.gmra.mrb[16].mxu0 %vm599_vm1, %v11379_v39  ;;  %9573 = vmatmul.mubr.msk.f32.gmra.mrb[16].mxu1 %vm599_vm1, %v11375_v17  ;;  %v11384_v17 = vld [vmem:[%s11590_s25 + $0x110] sm:$0xff] }
 0x1ff   : > { %9987 = vmatprep.mubr.msk.f32.mxu0 %vm599_vm1, %v11380_v56  ;;  %9575 = vmatprep.mubr.msk.f32.mxu1 %vm599_vm1, %v11376_v40  ;;  %v11385_v40 = vld [vmem:[%s11590_s25 + $0x120] sm:$0xff] }
 0x202   : > { %9988 = vmatmul.mubr.msk.f32.gmra.mrb[18].mxu0 %vm599_vm1, %v11381_v31  ;;  %9576 = vmatmul.mubr.msk.f32.gmra.mrb[18].mxu1 %vm599_vm1, %v11377_v32  ;;  %v11386_v32 = vld [vmem:[%s11590_s25 + $0x128] sm:$0xff] }
 0x203   : > { %9990 = vmatprep.mubr.msk.f32.mxu0 %vm599_vm1, %v11382_v19  ;;  %9578 = vmatprep.mubr.msk.f32.mxu1 %vm599_vm1, %v11378_v1  ;;  %v11387_v1 = vld [vmem:[%s11590_s25 + $0x130] sm:$0xff] }
 0x206   : > { %9991 = vmatmul.mubr.msk.f32.gmra.mrb[20].mxu0 %vm599_vm1, %v11383_v52  ;;  %9579 = vmatmul.mubr.msk.f32.gmra.mrb[20].mxu1 %vm599_vm1, %v11379_v39  ;;  %v11388_v39 = vld [vmem:[%s11590_s25 + $0x140] sm:$0xff] }
 0x207   : > { %9993 = vmatprep.mubr.msk.f32.mxu0 %vm599_vm1, %v11384_v17  ;;  %9581 = vmatprep.mubr.msk.f32.mxu1 %vm599_vm1, %v11380_v56  ;;  %v11389_v56 = vld [vmem:[%s11590_s25 + $0x148] sm:$0xff] }
 0x20a   : > { %9994 = vmatmul.mubr.msk.f32.gmra.mrb[22].mxu0 %vm599_vm1, %v11385_v40  ;;  %9582 = vmatmul.mubr.msk.f32.gmra.mrb[22].mxu1 %vm599_vm1, %v11381_v31  ;;  %v11390_v31 = vld [vmem:[%s11590_s25 + $0x150] sm:$0xff] }
 0x20b   : > { %9996 = vmatprep.mubr.msk.f32.mxu0 %vm599_vm1, %v11386_v32  ;;  %9584 = vmatprep.mubr.msk.f32.mxu1 %vm599_vm1, %v11382_v19  ;;  %v11391_v19 = vld [vmem:[%s11590_s25 + $0x160] sm:$0xff] }
 0x20e   : > { %9997 = vmatmul.mubr.msk.f32.gmra.mrb[24].mxu0 %vm599_vm1, %v11387_v1  ;;  %9585 = vmatmul.mubr.msk.f32.gmra.mrb[24].mxu1 %vm599_vm1, %v11383_v52  ;;  %v11392_v52 = vld [vmem:[%s11590_s25 + $0x168] sm:$0xff] }
 0x20f   : > { %9999 = vmatprep.mubr.msk.f32.mxu0 %vm599_vm1, %v11388_v39  ;;  %9587 = vmatprep.mubr.msk.f32.mxu1 %vm599_vm1, %v11384_v17  ;;  %v11393_v17 = vld [vmem:[%s11590_s25 + $0x170] sm:$0xff] }
 0x212   : > { %10000 = vmatmul.mubr.msk.f32.gmra.mrb[26].mxu0 %vm599_vm1, %v11389_v56  ;;  %9588 = vmatmul.mubr.msk.f32.gmra.mrb[26].mxu1 %vm599_vm1, %v11385_v40  ;;  %v11394_v40 = vld [vmem:[%s11590_s25 + $0x180] sm:$0xff] }
 0x213   : > { %10002 = vmatprep.mubr.msk.f32.mxu0 %vm599_vm1, %v11390_v31  ;;  %9590 = vmatprep.mubr.msk.f32.mxu1 %vm599_vm1, %v11386_v32  ;;  %v11395_v32 = vld [vmem:[%s11590_s25 + $0x188] sm:$0xff] }
 0x216   : > { %10003 = vmatmul.mubr.msk.f32.gmra.mrb[28].mxu0 %vm599_vm1, %v11391_v19  ;;  %9591 = vmatmul.mubr.msk.f32.gmra.mrb[28].mxu1 %vm599_vm1, %v11387_v1  ;;  %v11396_v1 = vld [vmem:[%s11590_s25 + $0x190] sm:$0xff] }
 0x217   : > { %10005 = vmatprep.mubr.msk.f32.mxu0 %vm599_vm1, %v11392_v52  ;;  %9593 = vmatprep.mubr.msk.f32.mxu1 %vm599_vm1, %v11388_v39  ;;  %v11397_v39 = vld [vmem:[%s11590_s25 + $0x1a0] sm:$0xff] }
 0x21a   : > { %10006 = vmatmul.mubr.msk.f32.gmra.mrb[30].mxu0 %vm599_vm1, %v11393_v17  ;;  %9594 = vmatmul.mubr.msk.f32.gmra.mrb[30].mxu1 %vm599_vm1, %v11389_v56  ;;  %v11399_v56 = vld [vmem:[%s11590_s25 + $0x1b0] sm:$0xff] }
 0x21b   : > { %10008 = vmatprep.mubr.msk.f32.mxu0 %vm599_vm1, %v11394_v40  ;;  %9596 = vmatprep.mubr.msk.f32.mxu1 %vm599_vm1, %v11390_v31  ;;  %v11400_v31 = vld [vmem:[%s11590_s25 + $0x1c0] sm:$0xff] }
 0x21e   : > { %10009 = vmatmul.mubr.msk.f32.gmra.mrb[32].mxu0 %vm599_vm1, %v11395_v32  ;;  %9597 = vmatmul.mubr.msk.f32.gmra.mrb[32].mxu1 %vm599_vm1, %v11391_v19  ;;  %v11401_v19 = vld [vmem:[%s11590_s25 + $0x1c8] sm:$0xff] }
 0x21f   : > { %10011 = vmatprep.mubr.msk.f32.mxu0 %vm599_vm1, %v11396_v1  ;;  %9599 = vmatprep.mubr.msk.f32.mxu1 %vm599_vm1, %v11392_v52  ;;  %v11402_v52 = vld [vmem:[%s11590_s25 + $0x1d0] sm:$0xff] }
 0x222   : > { %10012 = vmatmul.mubr.msk.f32.gmra.mrb[34].mxu0 %vm599_vm1, %v11397_v39  ;;  %9600 = vmatmul.mubr.msk.f32.gmra.mrb[34].mxu1 %vm599_vm1, %v11393_v17  ;;  %v15248_v17 = vld [vmem:[#allocation59_spill] sm:$0xff] }
 0x223   : > { %10014 = vmatprep.mubr.msk.f32.mxu0 %vm599_vm1, %v11398_v48  ;;  %9602 = vmatprep.mubr.msk.f32.mxu1 %vm599_vm1, %v11394_v40  ;;  %v15249_v40 = vld [vmem:[#allocation60_spill] sm:$0xff] }
 0x226   : > { %10015 = vmatmul.mubr.msk.f32.gmra.mrb[36].mxu0 %vm599_vm1, %v11399_v56  ;;  %9603 = vmatmul.mubr.msk.f32.gmra.mrb[36].mxu1 %vm599_vm1, %v11395_v32  ;;  %v15250_v32 = vld [vmem:[#allocation61_spill] sm:$0xff] }
 0x227   : > { %10017 = vmatprep.mubr.msk.f32.mxu0 %vm599_vm1, %v11400_v31  ;;  %9605 = vmatprep.mubr.msk.f32.mxu1 %vm599_vm1, %v11396_v1  ;;  %v15251_v1 = vld [vmem:[#allocation65_spill] sm:$0xff] }
 0x22a   : > { %10018 = vmatmul.mubr.msk.f32.gmra.mrb[38].mxu0 %vm599_vm1, %v11401_v19  ;;  %9606 = vmatmul.mubr.msk.f32.gmra.mrb[38].mxu1 %vm599_vm1, %v11397_v39  ;;  %v15252_v39 = vld [vmem:[#allocation66_spill] sm:$0xff] }
 0x22b   : > { %10020 = vmatprep.mubr.msk.f32.mxu0 %vm599_vm1, %v11402_v52  ;;  %9608 = vmatprep.mubr.msk.f32.mxu1 %vm599_vm1, %v11398_v48  ;;  %v15253_v48 = vld [vmem:[#allocation69_spill] sm:$0xff] }
 0x22e   : > { %10021 = vmatmul.mubr.msk.f32.gmra.mrb[40].mxu0 %vm599_vm1, %v15248_v17  ;;  %9609 = vmatmul.mubr.msk.f32.gmra.mrb[40].mxu1 %vm599_vm1, %v11399_v56  ;;  %v11403_v56 = vld [vmem:[%s11590_s25 + $0x1e0] sm:$0xff]  ;;  %v15254_v17 = vld [vmem:[#allocation73_spill] sm:$0xff] }
 0x22f   : > { %10023 = vmatprep.mubr.msk.f32.mxu0 %vm599_vm1, %v15249_v40  ;;  %9611 = vmatprep.mubr.msk.f32.mxu1 %vm599_vm1, %v11400_v31  ;;  %v11404_v31 = vld [vmem:[%s11590_s25 + $0x1e8] sm:$0xff]  ;;  %v11405_v40 = vld [vmem:[%s11590_s25 + $0x1f0] sm:$0xff] }
 0x232   : > { %10024 = vmatmul.mubr.msk.f32.gmra.mrb[42].mxu0 %vm599_vm1, %v15250_v32  ;;  %9612 = vmatmul.mubr.msk.f32.gmra.mrb[42].mxu1 %vm599_vm1, %v11401_v19  ;;  %v15255_v19 = vld [vmem:[#allocation74_spill] sm:$0xff] }
 0x233   : > { %10026 = vmatprep.mubr.msk.f32.mxu0 %vm599_vm1, %v15251_v1  ;;  %9614 = vmatprep.mubr.msk.f32.mxu1 %vm599_vm1, %v11402_v52  ;;  %v15256_v52 = vld [vmem:[#allocation75_spill] sm:$0xff]  ;;  %v11406_v32 = vld [vmem:[%s11590_s25 + $0x200] sm:$0xff] }
 0x234   : > { %v11407_v1 = vld [vmem:[%s11590_s25 + $0x208] sm:$0xff] }
 0x236   : > { %10027 = vmatmul.mubr.msk.f32.gmra.mrb[44].mxu0 %vm599_vm1, %v15252_v39  ;;  %9615 = vmatmul.mubr.msk.f32.gmra.mrb[44].mxu1 %vm599_vm1, %v11403_v56  ;;  %v13050_v39 = vld [vmem:[%s11590_s25 + $0x260] sm:$0xff]  ;;  %v13053_v56 = vld [vmem:[%s11590_s25 + $0x268] sm:$0xff] }
 0x237   : > { %10029 = vmatprep.mubr.msk.f32.mxu0 %vm599_vm1, %v15253_v48  ;;  %9617 = vmatprep.mubr.msk.f32.mxu1 %vm599_vm1, %v11404_v31  ;;  %15257 = vst [vmem:[#allocation45_spill] sm:$0xff] %v13053_v56 }
 0x23a   : > { %10030 = vmatmul.mubr.msk.f32.gmra.mrb[46].mxu0 %vm599_vm1, %v15254_v17  ;;  %9618 = vmatmul.mubr.msk.f32.gmra.mrb[46].mxu1 %vm599_vm1, %v11405_v40  ;;  %v15276_v40 = vld [vmem:[#allocation33_spill] sm:$0xff] }
 0x23b   : > { %10032 = vmatprep.mubr.msk.f32.mxu0 %vm599_vm1, %v15255_v19  ;;  %9620 = vmatprep.mubr.msk.f32.mxu1 %vm599_vm1, %v11406_v32 }
 0x23e   : > { %10033 = vmatmul.mubr.msk.f32.gmra.mrb[48].mxu0 %vm599_vm1, %v15256_v52  ;;  %9621 = vmatmul.mubr.msk.f32.gmra.mrb[48].mxu1 %vm599_vm1, %v11407_v1 }
 0x23f   : > { %10035 = vmatprep.mubr.msk.f32.mxu0 %vm599_vm1, %v12271_v28  ;;  %9623 = vmatprep.mubr.msk.f32.mxu1 %vm599_vm1, %v15253_v48 }
 0x242   : > { %10036 = vmatmul.mubr.msk.f32.gmra.mrb[50].mxu0 %vm599_vm1, %v12276_v25  ;;  %9624 = vmatmul.mubr.msk.f32.gmra.mrb[50].mxu1 %vm599_vm1, %v15254_v17  ;;  %v13064_v25 = vld [vmem:[%s11590_s25 + $0x270] sm:$0xff] }
 0x243   : > { %10038 = vmatprep.mubr.msk.f32.mxu0 %vm599_vm1, %v12284_v0  ;;  %9626 = vmatprep.mubr.msk.f32.mxu1 %vm599_vm1, %v15255_v19 }
 0x245   : > { %v9877_v31 = vpop.f32.mrb[62].mxu0 }
 0x246   : > { %v2870_v28 = vpop.f32.mrb[63].mxu0  ;;  %10039 = vmatmul.mubr.msk.f32.gmra.mrb[52].mxu0 %vm599_vm1, %v13050_v39  ;;  %9627 = vmatmul.mubr.msk.f32.gmra.mrb[54].mxu1 %vm599_vm1, %v15256_v52  ;;  %v15277_v52 = vld [vmem:[#allocation34_spill] sm:$0xff]  ;;  %v15278_v31 = vld [vmem:[#allocation35_spill] sm:$0xff] }
 0x247   : > { %10041 = vmatprep.mubr.msk.f32.mxu0 %vm599_vm1, %v13053_v56  ;;  %v15279_v28 = vld [vmem:[#allocation36_spill] sm:$0xff] }
 0x249   : > { %v9882_v0 = vpop.f32.mrb[64].mxu0 }
 0x24a   : > { %v3017_v48 = vpop.f32.mrb[65].mxu0  ;;  %10042 = vmatmul.mubr.msk.f32.gmra.mrb[70].mxu0 %vm599_vm1, %v13064_v25 }
 0x24b   : > { %10046 = vmatprep.mubr.msk.f32.mxu0 %vm599_vm1, %v12315_v9  ;;  %v15280_v48 = vld [vmem:[#allocation38_spill] sm:$0xff] }
 0x24e   : > { %10047 = vmatmul.mubr.msk.f32.vlgmr.msra.gmra.mrb[72].mxu0 %vm599_vm1, %v12319_v13 }
 0x24f   : > { %10128 = vmatpush3.msk.msra.mxu0 %vm708_vm0, %v12878_v8  ;;  %10049 = vmatprep.mubr.msk.f32.mxu0 %vm599_vm1, %v12330_v20 }
 0x252   : > { %10050 = vmatmul.mubr.msk.f32.gmra.mrb[2].mxu0 %vm599_vm1, %v12334_v60  ;;  %v8370_v60 = vld [vmem:[%s14860_s4 + $0x8] sm:$0xff] }
 0x253   : > { %10052 = vmatprep.mubr.msk.f32.mxu0 %vm599_vm1, %v12342_v36  ;;  %10210 = vmatprep.subr.mxu1 %v8370_v60 }
 0x254   : > { %10211 = vmatpush3.msra.mxu1 %v8370_v60 }
 0x255   : > { %v9467_v9 = vpop.f32.mrb[0].mxu1 }
 0x256   : > { %10053 = vmatmul.mubr.msk.f32.gmra.mrb[4].mxu0 %vm599_vm1, %v12347_v37  ;;  %v778_v13 = vpop.f32.mrb[1].mxu1  ;;  %v15281_v9 = vld [vmem:[#allocation39_spill] sm:$0xff] }
 0x257   : > { %10055 = vmatprep.mubr.msk.f32.mxu0 %vm599_vm1, %v12355_v12 }
 0x25a   : > { %10056 = vmatmul.mubr.msk.f32.gmra.mrb[6].mxu0 %vm599_vm1, %v12359_v44 }
 0x25b   : > { %10058 = vmatprep.mubr.msk.f32.mxu0 %vm599_vm1, %v12368_v51 }
 0x25d   : > { %v13160_v20 = vpop.f32.mrb[2].mxu1 }
 0x25e   : > { %10059 = vmatmul.mubr.msk.f32.gmra.mrb[8].mxu0 %vm599_vm1, %v12372_v10  ;;  %v788_v36 = vpop.f32.mrb[3].mxu1  ;;  %v3744_v10 = vrot.slane %v13050_v39, 1 }
 0x25f   : > { %10061 = vmatprep.mubr.msk.f32.mxu0 %vm599_vm1, %v12380_v57  ;;  %v3745_v57 = vrot.slane %v13053_v56, 1  ;;  %v15282_v36 = vld [vmem:[#allocation41_spill] sm:$0xff] }
 0x262   : > { %10062 = vmatmul.mubr.msk.f32.gmra.mrb[12].mxu0 %vm599_vm1, %v12385_v59  ;;  %v15258_v59 = vld [vmem:[#allocation21_spill] sm:$0xff] }
 0x263   : > { %10064 = vmatprep.mubr.msk.f32.mxu0 %vm599_vm1, %v12393_v45  ;;  %v3747_v45 = vrot.slane %v13064_v25, 1 }
 0x266   : > { %10065 = vmatmul.mubr.msk.f32.gmra.mrb[14].mxu0 %vm599_vm1, %v12397_v2  ;;  %v396_v2 = vld [vmem:[%s11590_s25 + $0x278] sm:$0x3] }
 0x267   : > { %10067 = vmatprep.mubr.msk.f32.mxu0 %vm599_vm1, %v12406_v15  ;;  %v15259_v15 = vld [vmem:[#allocation24_spill] sm:$0xff] }
 0x26a   : > { %10068 = vmatmul.mubr.msk.f32.gmra.mrb[16].mxu0 %vm599_vm1, %v12410_v58  ;;  %v15260_v58 = vld [vmem:[#allocation29_spill] sm:$0xff] }
 0x26b   : > { %10070 = vmatprep.mubr.msk.f32.mxu0 %vm599_vm1, %v12418_v22  ;;  %v3746_v22 = vsel %vm470_vm3, %v3744_v10, %v3745_v57  ;;  %v15283_v10 = vld [vmem:[#allocation42_spill] sm:$0xff] }
 0x26e   : > { %10071 = vmatmul.mubr.msk.f32.gmra.mrb[18].mxu0 %vm599_vm1, %v12423_v27  ;;  %v3749_v27 = vrot.slane %v396_v2, 1  ;;  %v15285_v2 = vld [vmem:[#allocation44_spill] sm:$0xff] }
 0x26f   : > { %10073 = vmatprep.mubr.msk.f32.mxu0 %vm599_vm1, %v12431_v3  ;;  %v3748_v3 = vsel %vm470_vm3, %v3745_v57, %v3747_v45 }
 0x272   : > { %10074 = vmatmul.mubr.msk.f32.gmra.mrb[20].mxu0 %vm599_vm1, %v12435_v42 }
 0x273   : > { %10076 = vmatprep.mubr.msk.f32.mxu0 %vm599_vm1, %v12444_v62 }
 0x276   : > { %10077 = vmatmul.mubr.msk.f32.gmra.mrb[22].mxu0 %vm599_vm1, %v12448_v23  ;;  %v3750_v23 = vsel %vm470_vm3, %v3747_v45, %v3749_v27  ;;  %v15284_v45 = vld [vmem:[#allocation43_spill] sm:$0xff] }
 0x277   : > { %10079 = vmatprep.mubr.msk.f32.mxu0 %vm599_vm1, %v12456_v21  ;;  %v15287_v27 = vld [vmem:[#allocation47_spill] sm:$0xff] }
 0x27a   : > { %10080 = vmatmul.mubr.msk.f32.gmra.mrb[24].mxu0 %vm599_vm1, %v12461_v33 }
 0x27b   : > { %10082 = vmatprep.mubr.msk.f32.mxu0 %vm599_vm1, %v12469_v47  ;;  %v15261_v47 = vld [vmem:[#allocation10_spill] sm:$0xff] }
 0x27e   : > { %10083 = vmatmul.mubr.msk.f32.gmra.mrb[26].mxu0 %vm599_vm1, %v12473_v5  ;;  %v15262_v5 = vld [vmem:[#allocation11_spill] sm:$0xff] }
 0x27f   : > { %10085 = vmatprep.mubr.msk.f32.mxu0 %vm599_vm1, %v12482_v18  ;;  %v15263_v18 = vld [vmem:[#allocation12_spill] sm:$0xff] }
 0x282   : > { %10086 = vmatmul.mubr.msk.f32.gmra.mrb[28].mxu0 %vm599_vm1, %v12486_v30  ;;  %v15264_v30 = vld [vmem:[#allocation14_spill] sm:$0xff] }
 0x283   : > { %10088 = vmatprep.mubr.msk.f32.mxu0 %vm599_vm1, %v12494_v63  ;;  %v15265_v63 = vld [vmem:[#allocation17_spill] sm:$0xff] }
 0x286   : > { %10089 = vmatmul.mubr.msk.f32.gmra.mrb[30].mxu0 %vm599_vm1, %v12499_v61  ;;  %v15266_v61 = vld [vmem:[#allocation18_spill] sm:$0xff] }
 0x287   : > { %10091 = vmatprep.mubr.msk.f32.mxu0 %vm599_vm1, %v12507_v29 }
 0x28a   : > { %10092 = vmatmul.mubr.msk.f32.gmra.mrb[32].mxu0 %vm599_vm1, %v12511_v50 }
 0x28b   : > { %10094 = vmatprep.mubr.msk.f32.mxu0 %vm599_vm1, %v12520_v46  ;;  %v15267_v46 = vld [vmem:[#allocation19_spill] sm:$0xff] }
 0x28e   : > { %10095 = vmatmul.mubr.msk.f32.gmra.mrb[34].mxu0 %vm599_vm1, %v12524_v4 }
 0x28f   : > { %10097 = vmatprep.mubr.msk.f32.mxu0 %vm599_vm1, %v12532_v34 }
 0x292   : > { %10098 = vmatmul.mubr.msk.f32.gmra.mrb[36].mxu0 %vm599_vm1, %v12537_v11  ;;  %v15268_v11 = vld [vmem:[#allocation22_spill] sm:$0xff] }
 0x293   : > { %10100 = vmatprep.mubr.msk.f32.mxu0 %vm599_vm1, %v12545_v53  ;;  %v15269_v53 = vld [vmem:[#allocation23_spill] sm:$0xff] }
 0x296   : > { %10101 = vmatmul.mubr.msk.f32.gmra.mrb[38].mxu0 %vm599_vm1, %v12549_v14 }
 0x297   : > { %10103 = vmatprep.mubr.msk.f32.mxu0 %vm599_vm1, %v12558_v55 }
 0x29a   : > { %10104 = vmatmul.mubr.msk.f32.gmra.mrb[40].mxu0 %vm599_vm1, %v12562_v38  ;;  %v15270_v38 = vld [vmem:[#allocation25_spill] sm:$0xff] }
 0x29b   : > { %10106 = vmatprep.mubr.msk.f32.mxu0 %vm599_vm1, %v12570_v35  ;;  %v13167_v35 = vpop.f32.mrb[4].mxu1 }
 0x29c   : > { %v13169_v37 = vpop.f32.mrb[5].mxu1 }
 0x29e   : > { %10107 = vmatmul.mubr.msk.f32.gmra.mrb[42].mxu0 %vm599_vm1, %v12575_v49  ;;  %v15271_v49 = vld [vmem:[#allocation26_spill] sm:$0xff] }
 0x29f   : > { %10109 = vmatprep.mubr.msk.f32.mxu0 %vm599_vm1, %v12583_v16 }
 0x2a2   : > { %10110 = vmatmul.mubr.msk.f32.gmra.mrb[44].mxu0 %vm599_vm1, %v12587_v54  ;;  %v13173_v54 = vpop.f32.mrb[6].mxu1 }
 0x2a3   : > { %10112 = vmatprep.mubr.msk.f32.mxu0 %vm599_vm1, %v15245_v24  ;;  %v13177_v12 = vpop.f32.mrb[7].mxu1  ;;  %v15274_v24 = vld [vmem:[#allocation30_spill] sm:$0xff] }
 0x2a4   : > { %v13179_v44 = vpop.f32.mrb[8].mxu1 }
 0x2a5   : > { %v13181_v51 = vpop.f32.mrb[9].mxu1 }
 0x2a6   : > { %10113 = vmatmul.mubr.msk.f32.gmra.mrb[46].mxu0 %vm599_vm1, %v15246_v26  ;;  %v15275_v26 = vld [vmem:[#allocation31_spill] sm:$0xff] }
 0x2a7   : > { %10115 = vmatprep.mubr.msk.f32.mxu0 %vm599_vm1, %v12610_v41 }
 0x2aa   : > { %10116 = vmatmul.mubr.msk.f32.gmra.mrb[48].mxu0 %vm599_vm1, %v15247_v7 }
 0x2ab   : > { %10118 = vmatprep.mubr.msk.f32.mxu0 %vm599_vm1, %v15258_v59 }
 0x2ae   : > { %10119 = vmatmul.mubr.msk.f32.gmra.mrb[50].mxu0 %vm599_vm1, %v15259_v15 }
 0x2af   : > { %10121 = vmatprep.mubr.msk.f32.mxu0 %vm599_vm1, %v15260_v58 }
 0x2b1   : > { %v9960_v42 = vpop.f32.mrb[66].mxu0 }
 0x2b2   : > { %v3277_v62 = vpop.f32.mrb[67].mxu0  ;;  %10122 = vmatmul.mubr.msk.f32.gmra.mrb[52].mxu0 %vm599_vm1, %v3746_v22  ;;  %v15286_v22 = vld [vmem:[#allocation46_spill] sm:$0xff] }
 0x2b3   : > { %10124 = vmatprep.mubr.msk.f32.mxu0 %vm599_vm1, %v3748_v3  ;;  %v15288_v62 = vld [vmem:[#allocation49_spill] sm:$0xff] }
 0x2b5   : > { %v9965_v21 = vpop.f32.mrb[68].mxu0 }
 0x2b6   : > { %v3420_v33 = vpop.f32.mrb[69].mxu0  ;;  %10125 = vmatmul.mubr.msk.f32.gmra.mrb[74].mxu0 %vm599_vm1, %v3750_v23  ;;  %v15289_v23 = vld [vmem:[#allocation50_spill] sm:$0xff] }
 0x2b7   : > { %10129 = vmatprep.mubr.msk.f32.mxu0 %vm599_vm1, %v15261_v47  ;;  %v15290_v47 = vld [vmem:[#allocation51_spill] sm:$0xff] }
 0x2ba   : > { %10130 = vmatmul.mubr.msk.f32.vlgmr.msra.gmra.mrb[76].mxu0 %vm599_vm1, %v15262_v5  ;;  %v15291_v5 = vld [vmem:[#allocation52_spill] sm:$0xff] }
 0x2bb   : > { %10132 = vmatprep.mubr.msk.f32.mxu0 %vm599_vm1, %v15263_v18 }
 0x2be   : > { %10133 = vmatmul.mubr.msk.f32.gmra.mrb[2].mxu0 %vm599_vm1, %v15264_v30 }
 0x2bf   : > { %10135 = vmatprep.mubr.msk.f32.mxu0 %vm599_vm1, %v15198_v6  ;;  %v15273_v6 = vld [vmem:[#allocation28_spill] sm:$0xff] }
 0x2c1   : > { %v9545_v29 = vpop.f32.mrb[52].mxu1 }
 0x2c2   : > { %10136 = vmatmul.mubr.msk.f32.gmra.mrb[4].mxu0 %vm599_vm1, %v15265_v63  ;;  %v1038_v50 = vpop.f32.mrb[53].mxu1  ;;  %v15292_v63 = vld [vmem:[#allocation54_spill] sm:$0xff] }
 0x2c3   : > { %10138 = vmatprep.mubr.msk.f32.mxu0 %vm599_vm1, %v15266_v61  ;;  %v15293_v61 = vld [vmem:[#allocation55_spill] sm:$0xff] }
 0x2c5   : > { %v13219_v4 = vpop.f32.mrb[10].mxu1 }
 0x2c6   : > { %10139 = vmatmul.mubr.msk.f32.gmra.mrb[6].mxu0 %vm599_vm1, %v15267_v46  ;;  %v13221_v34 = vpop.f32.mrb[11].mxu1  ;;  %v15294_v46 = vld [vmem:[#allocation57_spill] sm:$0xff] }
 0x2c7   : > { %10141 = vmatprep.mubr.msk.f32.mxu0 %vm599_vm1, %v15202_v43  ;;  %v15272_v43 = vld [vmem:[#allocation27_spill] sm:$0xff] }
 0x2c9   : > { %v13227_v14 = vpop.f32.mrb[12].mxu1 }
 0x2ca   : > { %10142 = vmatmul.mubr.msk.f32.gmra.mrb[8].mxu0 %vm599_vm1, %v15268_v11  ;;  %v13229_v55 = vpop.f32.mrb[13].mxu1  ;;  %v15295_v11 = vld [vmem:[#allocation58_spill] sm:$0xff] }
 0x2cb   : > { %10144 = vmatprep.mubr.msk.f32.mxu0 %vm599_vm1, %v15269_v53 }
 0x2cd   : > { %v13235_v16 = vpop.f32.mrb[14].mxu1 }
 0x2ce   : > { %10145 = vmatmul.mubr.msk.f32.gmra.mrb[12].mxu0 %vm599_vm1, %v15270_v38  ;;  %v13237_v41 = vpop.f32.mrb[15].mxu1 }
 0x2cf   : > { %10147 = vmatprep.mubr.msk.f32.mxu0 %vm599_vm1, %v15271_v49  ;;  %v15296_v49 = vld [vmem:[#allocation62_spill] sm:$0xff] }
 0x2d1   : > { %v13243_v7 = vpop.f32.mrb[16].mxu1 }
 0x2d2   : > { %10148 = vmatmul.mubr.msk.f32.gmra.mrb[14].mxu0 %vm599_vm1, %v15272_v43  ;;  %v13245_v8 = vpop.f32.mrb[17].mxu1  ;;  %v15297_v43 = vld [vmem:[#allocation63_spill] sm:$0xff] }
 0x2d3   : > { %10150 = vmatprep.mubr.msk.f32.mxu0 %vm599_vm1, %v15273_v6 }
 0x2d5   : > { %v13251_v17 = vpop.f32.mrb[18].mxu1 }
 0x2d6   : > { %10151 = vmatmul.mubr.msk.f32.gmra.mrb[16].mxu0 %vm599_vm1, %v15274_v24  ;;  %v13253_v19 = vpop.f32.mrb[19].mxu1 }
 0x2d7   : > { %10153 = vmatprep.mubr.msk.f32.mxu0 %vm599_vm1, %v15275_v26  ;;  %v15298_v26 = vld [vmem:[#allocation67_spill] sm:$0xff] }
 0x2d9   : > { %v13259_v32 = vpop.f32.mrb[20].mxu1 }
 0x2da   : > { %10154 = vmatmul.mubr.msk.f32.gmra.mrb[18].mxu0 %vm599_vm1, %v15276_v40  ;;  %v13261_v1 = vpop.f32.mrb[21].mxu1  ;;  %v15299_v40 = vld [vmem:[#allocation68_spill] sm:$0xff] }
 0x2db   : > { %10156 = vmatprep.mubr.msk.f32.mxu0 %vm599_vm1, %v15277_v52 }
 0x2dd   : > { %v13267_v25 = vpop.f32.mrb[22].mxu1 }
 0x2de   : > { %10157 = vmatmul.mubr.msk.f32.gmra.mrb[20].mxu0 %vm599_vm1, %v15278_v31  ;;  %v13269_v0 = vpop.f32.mrb[23].mxu1 }
 0x2df   : > { %10159 = vmatprep.mubr.msk.f32.mxu0 %vm599_vm1, %v15279_v28  ;;  %v15300_v28 = vld [vmem:[#allocation71_spill] sm:$0xff] }
 0x2e1   : > { %v13275_v13 = vpop.f32.mrb[24].mxu1 }
 0x2e2   : > { %10160 = vmatmul.mubr.msk.f32.gmra.mrb[22].mxu0 %vm599_vm1, %v15280_v48  ;;  %v13277_v60 = vpop.f32.mrb[25].mxu1  ;;  %v15301_v48 = vld [vmem:[#allocation72_spill] sm:$0xff] }
 0x2e3   : > { %10162 = vmatprep.mubr.msk.f32.mxu0 %vm599_vm1, %v15281_v9 }
 0x2e5   : > { %v13283_v57 = vpop.f32.mrb[26].mxu1 }
 0x2e6   : > { %10163 = vmatmul.mubr.msk.f32.gmra.mrb[24].mxu0 %vm599_vm1, %v15282_v36  ;;  %v13285_v59 = vpop.f32.mrb[27].mxu1 }
 0x2e7   : > { %10165 = vmatprep.mubr.msk.f32.mxu0 %vm599_vm1, %v15283_v10  ;;  %v15302_v10 = vld [vmem:[#allocation76_spill] sm:$0xff] }
 0x2e9   : > { %v13291_v15 = vpop.f32.mrb[28].mxu1 }
 0x2ea   : > { %10166 = vmatmul.mubr.msk.f32.gmra.mrb[26].mxu0 %vm599_vm1, %v15284_v45  ;;  %v13293_v58 = vpop.f32.mrb[29].mxu1  ;;  %v15303_v45 = vld [vmem:[#allocation77_spill] sm:$0xff] }
 0x2eb   : > { %10168 = vmatprep.mubr.msk.f32.mxu0 %vm599_vm1, %v15285_v2 }
 0x2ed   : > { %v13299_v3 = vpop.f32.mrb[30].mxu1 }
 0x2ee   : > { %10169 = vmatmul.mubr.msk.f32.gmra.mrb[28].mxu0 %vm599_vm1, %v15286_v22  ;;  %v13301_v42 = vpop.f32.mrb[31].mxu1 }
 0x2ef   : > { %10171 = vmatprep.mubr.msk.f32.mxu0 %vm599_vm1, %v15287_v27  ;;  %v15304_v27 = vld [vmem:[#allocation78_spill] sm:$0xff] }
 0x2f1   : > { %v13307_v21 = vpop.f32.mrb[32].mxu1 }
 0x2f2   : > { %10172 = vmatmul.mubr.msk.f32.gmra.mrb[30].mxu0 %vm599_vm1, %v15288_v62  ;;  %v13309_v33 = vpop.f32.mrb[33].mxu1  ;;  %v15305_v62 = vld [vmem:[#allocation79_spill] sm:$0xff] }
 0x2f3   : > { %10174 = vmatprep.mubr.msk.f32.mxu0 %vm599_vm1, %v15289_v23 }
 0x2f5   : > { %v13315_v18 = vpop.f32.mrb[34].mxu1 }
 0x2f6   : > { %10175 = vmatmul.mubr.msk.f32.gmra.mrb[32].mxu0 %vm599_vm1, %v15290_v47  ;;  %v13317_v30 = vpop.f32.mrb[35].mxu1 }
 0x2f7   : > { %10177 = vmatprep.mubr.msk.f32.mxu0 %vm599_vm1, %v15291_v5  ;;  %v15306_v5 = vld [vmem:[#allocation80_spill] sm:$0xff] }
 0x2f9   : > { %v13323_v29 = vpop.f32.mrb[36].mxu1 }
 0x2fa   : > { %10178 = vmatmul.mubr.msk.f32.gmra.mrb[34].mxu0 %vm599_vm1, %v15292_v63  ;;  %v13325_v50 = vpop.f32.mrb[37].mxu1  ;;  %v4151_v63 = vrot.slane %v13050_v39, 2 }
 0x2fb   : > { %10180 = vmatprep.mubr.msk.f32.mxu0 %vm599_vm1, %v15293_v61  ;;  %v15004_v61 = vrot.slane %v13053_v56, 2 }
 0x2fd   : > { %v13331_v53 = vpop.f32.mrb[38].mxu1 }
 0x2fe   : > { %10181 = vmatmul.mubr.msk.f32.gmra.mrb[36].mxu0 %vm599_vm1, %v15294_v46  ;;  %v13333_v38 = vpop.f32.mrb[39].mxu1  ;;  %v15307_v46 = vld [vmem:[#allocation32_spill] sm:$0xff] }
 0x2ff   : > { %10183 = vmatprep.mubr.msk.f32.mxu0 %vm599_vm1, %v15295_v11 }
 0x301   : > { %v13339_v6 = vpop.f32.mrb[40].mxu1 }
 0x302   : > { %10184 = vmatmul.mubr.msk.f32.gmra.mrb[38].mxu0 %vm599_vm1, %v15296_v49  ;;  %v13341_v24 = vpop.f32.mrb[41].mxu1 }
 0x303   : > { %10186 = vmatprep.mubr.msk.f32.mxu0 %vm599_vm1, %v15297_v43  ;;  %v15309_v43 = vld [vmem:[#allocation37_spill] sm:$0xff] }
 0x305   : > { %v13347_v52 = vpop.f32.mrb[42].mxu1 }
 0x306   : > { %10187 = vmatmul.mubr.msk.f32.gmra.mrb[40].mxu0 %vm599_vm1, %v15298_v26  ;;  %v13349_v31 = vpop.f32.mrb[43].mxu1  ;;  %v15310_v26 = vld [vmem:[#allocation40_spill] sm:$0xff] }
 0x307   : > { %10189 = vmatprep.mubr.msk.f32.mxu0 %vm599_vm1, %v15299_v40  ;;  %v4153_v40 = vsel %vm1493_vm2, %v4151_v63, %v15004_v61  ;;  %v4810_v63 = vld [vmem:[%s14860_s4] sm:$0xff] }
 0x308   : > { %10260 = vmatprep.subr.mxu1 %v4810_v63 }
 0x309   : > { %v13355_v9 = vpop.f32.mrb[44].mxu1 }
 0x30a   : > { %10190 = vmatmul.mubr.msk.f32.gmra.mrb[42].mxu0 %vm599_vm1, %v15300_v28  ;;  %v13357_v36 = vpop.f32.mrb[45].mxu1  ;;  %v15005_v28 = vmov 0.0  }
 0x30b   : > { %10192 = vmatprep.mubr.msk.f32.mxu0 %vm599_vm1, %v15301_v48  ;;  %v13391_v39 = vrot.slane %v15005_v28, 1 }
 0x30d   : > { %v13363_v2 = vpop.f32.mrb[46].mxu1  ;;  %15311 = vst [vmem:[#allocation53_spill] sm:$0xff] %v13391_v39  ;;  %10212 = vmatprep.mubr.msk.f32.mxu1 %vm4941_vm4, %v13391_v39 }
 0x30e   : > { %10193 = vmatmul.mubr.msk.f32.gmra.mrb[44].mxu0 %vm599_vm1, %v15302_v10  ;;  %v13365_v22 = vpop.f32.mrb[47].mxu1  ;;  %10213 = vmatmul.mubr.msk.f32.vlgmr.msra.gmra.mrb[56].mxu1 %vm4941_vm4, %v13391_v39 }
 0x30f   : > { %10195 = vmatprep.mubr.msk.f32.mxu0 %vm599_vm1, %v15303_v45  ;;  %10261 = vmatpush3.msra.mxu1 %v4810_v63 }
 0x311   : > { %v13371_v23 = vpop.f32.mrb[48].mxu1 }
 0x312   : > { %10196 = vmatmul.mubr.msk.f32.gmra.mrb[46].mxu0 %vm599_vm1, %v15304_v27  ;;  %v13373_v47 = vpop.f32.mrb[49].mxu1 }
 0x313   : > { %10198 = vmatprep.mubr.msk.f32.mxu0 %vm599_vm1, %v15305_v62 }
 0x315   : > { %v9625_v11 = vpop.f32.mrb[50].mxu1 }
 0x316   : > { %10199 = vmatmul.mubr.msk.f32.gmra.mrb[48].mxu0 %vm599_vm1, %v15306_v5  ;;  %v13381_v49 = vpop.f32.mrb[51].mxu1 }
 0x317   : > { %10201 = vmatprep.mubr.msk.f32.mxu0 %vm599_vm1, %v15307_v46  ;;  %15308 = vst [vmem:[#allocation48_spill] sm:$0xff] %v13381_v49  ;;  %v13404_v46 = vld [vmem:[%s14860_s4 + $0x10] sm:$0xff] }
 0x318   : > { %15312 = vst [vmem:[#allocation56_spill] sm:$0xff] %v13404_v46  ;;  %10310 = vmatprep.subr.mxu1 %v13404_v46 }
 0x319   : > { %v9628_v48 = vpop.f32.mrb[54].mxu1 }
 0x31a   : > { %10202 = vmatmul.mubr.msk.f32.gmra.mrb[50].mxu0 %vm599_vm1, %v15309_v43  ;;  %v1484_v45 = vpop.f32.mrb[55].mxu1  ;;  %v4734_v48 = vlaneseq }
 0x31b   : > { %10204 = vmatprep.mubr.msk.f32.mxu0 %vm599_vm1, %v15310_v26 }
 0x31c   : > { %v13413_v63 = vshrl.u32 %v4734_v48, 7 }
 0x31d   : > { %v10043_v10 = vpop.f32.mrb[70].mxu0 }
 0x31e   : > { %v3680_v27 = vpop.f32.mrb[71].mxu0  ;;  %10205 = vmatmul.mubr.msk.f32.gmra.mrb[52].mxu0 %vm599_vm1, %v4153_v40  ;;  %vm4738_vm5 = vcmp.ge.s32.totalorder %v13413_v63, 1 }
 0x321   : > { %v10048_v62 = vpop.f32.mrb[72].mxu0 }
 0x322   : > { %v3828_v5 = vpop.f32.mrb[73].mxu0  ;;  %v13411_v62 = vld [vmem:[%s14858_s2] ss:$0 sm:$0xff] }
 0x389   : > { %v10126_v11 = vpop.f32.mrb[74].mxu0 }
 0x38a   : > { %v4088_v43 = vpop.f32.mrb[75].mxu0  ;;  %v13418_v11 = vld [vmem:[%s14859_s3] ss:$0 sm:$0xff] }
 0x38d   : > { %v10131_v26 = vpop.f32.mrb[76].mxu0 }
 0x38e   : > { %v4235_v40 = vpop.f32.mrb[77].mxu0 }
 0x391   : > { %v10134_v10 = vpop.f32.mrb[2].mxu0 }
 0x392   : > { %v10662_v45 = vadd.f32 %v10134_v10, %v13160_v20  ;;  %v4245_v27 = vpop.f32.mrb[3].mxu0  ;;  %v13423_v10 = vadd.s32 16, %v13413_v63 }
 0x394   : > { %v4561_v5 = vmax.f32 %v10662_v45, 0.0  ;;  %vm4749_vm6 = vcmp.le.s32.totalorder %v13423_v10, 16 }
 0x395   : > { %v10137_v43 = vpop.f32.mrb[4].mxu0 }
 0x396   : > { %v4622_v26 = vmul.f32 %v13411_v62, %v4561_v5  ;;  %v10663_v40 = vadd.f32 %v10137_v43, %v13167_v35  ;;  %v4255_v20 = vpop.f32.mrb[5].mxu0 }
 0x397   : > { %v10664_v27 = vadd.f32 %v4255_v20, %v13169_v37 }
 0x398   : > { %v4683_v45 = vadd.f32 %v13418_v11, %v4622_v26  ;;  %v4563_v48 = vmax.f32 %v10663_v40, 0.0 }
 0x399   : > { %v4562_v61 = vmax.f32 %v10664_v27, 0.0  ;;  %v10140_v28 = vpop.f32.mrb[6].mxu0 }
 0x39a   : > { %v4624_v39 = vmul.f32 %v13411_v62, %v4563_v48  ;;  %v10665_v56 = vadd.f32 %v10140_v28, %v13173_v54  ;;  %v4265_v5 = vpop.f32.mrb[7].mxu0  ;;  %v13432_v35 = vsel %vm4738_vm5, %v4683_v45, 0.0 }
 0x39b   : > { %v4623_v37 = vmul.f32 %v13411_v62, %v4562_v61  ;;  %v10666_v43 = vadd.f32 %v4265_v5, %v13177_v12  ;;  %v4864_v61 = vrot.slane %v13432_v35, 1 }
 0x39c   : > { %v4685_v26 = vadd.f32 %v13418_v11, %v4624_v39  ;;  %v4565_v40 = vmax.f32 %v10665_v56, 0.0 }
 0x39d   : > { %v13439_v20 = vadd.f32 %v13418_v11, %v4623_v37  ;;  %v4564_v27 = vmax.f32 %v10666_v43, 0.0  ;;  %v10143_v48 = vpop.f32.mrb[8].mxu0 }
 0x39e   : > { %v13443_v54 = vsel %vm4749_vm6, %v4685_v26, 0.0  ;;  %v4626_v28 = vmul.f32 %v13411_v62, %v4565_v40  ;;  %v10667_v45 = vadd.f32 %v10143_v48, %v13179_v44  ;;  %v4275_v46 = vpop.f32.mrb[9].mxu0 }
 0x39f   : > { %v4625_v12 = vmul.f32 %v13411_v62, %v4564_v27  ;;  %v10668_v56 = vadd.f32 %v4275_v46, %v13181_v51  ;;  %v4865_v39 = vrot.slane %v13439_v20, 1  ;;  %v4867_v5 = vrot.slane %v13443_v54, 1 }
 0x3a0   : > { %v13453_v37 = vadd.f32 %v13418_v11, %v4626_v28  ;;  %v4567_v43 = vmax.f32 %v10667_v45, 0.0 }
 0x3a1   : > { %v4686_v26 = vadd.f32 %v13418_v11, %v4625_v12  ;;  %v4566_v40 = vmax.f32 %v10668_v56, 0.0  ;;  %v10146_v49 = vpop.f32.mrb[12].mxu0  ;;  %v13457_v44 = vsel %vm470_vm3, %v4864_v61, %v4865_v39  ;;  %v13460_v48 = vsel %vm470_vm3, %v4865_v39, %v4867_v5 }
 0x3a2   : > { %15313 = vst [vmem:[#allocation64_spill] sm:$0xff] %v13457_v44  ;;  %15314 = vst [vmem:[#allocation70_spill] sm:$0xff] %v13460_v48  ;;  %v4628_v51 = vmul.f32 %v13411_v62, %v4567_v43  ;;  %v10669_v46 = vadd.f32 %v10146_v49, %v13219_v4  ;;  %v4285_v27 = vpop.f32.mrb[13].mxu0  ;;  %10215 = vmatprep.mubr.msk.f32.mxu1 %vm4941_vm4, %v13457_v44  ;;  %v4870_v49 = vrot.slane %v13453_v37, 1 }
 0x3a3   : > { %v13468_v28 = vsel %vm4738_vm5, %v4686_v26, 0.0  ;;  %v4627_v45 = vmul.f32 %v13411_v62, %v4566_v40  ;;  %v10670_v61 = vadd.f32 %v4285_v27, %v13221_v34  ;;  %10216 = vmatmul.mubr.msk.f32.gmra.mrb[58].mxu1 %vm4941_vm4, %v13460_v48 }
 0x3a4   : > { %v4689_v12 = vadd.f32 %v13418_v11, %v4628_v51  ;;  %v4569_v56 = vmax.f32 %v10669_v46, 0.0  ;;  %v4869_v4 = vrot.slane %v13468_v28, 1 }
 0x3a5   : > { %v4688_v39 = vadd.f32 %v13418_v11, %v4627_v45  ;;  %v4568_v5 = vmax.f32 %v10670_v61, 0.0  ;;  %v10149_v43 = vpop.f32.mrb[14].mxu0 }
 0x3a6   : > { %v13480_v26 = vsel %vm4738_vm5, %v4689_v12, 0.0  ;;  %v4630_v34 = vmul.f32 %v13411_v62, %v4569_v56  ;;  %v10671_v40 = vadd.f32 %v10149_v43, %v13227_v14  ;;  %v4295_v27 = vpop.f32.mrb[15].mxu0  ;;  %v13485_v51 = vsel %vm470_vm3, %v4869_v4, %v4870_v49 }
 0x3a7   : > { %15315 = vst [vmem:[#allocation6_spill] sm:$0xff] %v13485_v51  ;;  %v13489_v46 = vsel %vm4749_vm6, %v4688_v39, 0.0  ;;  %v4629_v45 = vmul.f32 %v13411_v62, %v4568_v5  ;;  %v10672_v61 = vadd.f32 %v4295_v27, %v13229_v55  ;;  %10218 = vmatprep.mubr.msk.f32.mxu1 %vm4941_vm4, %v13485_v51  ;;  %v4874_v39 = vrot.slane %v13480_v26, 1 }
 0x3a8   : > { %v4691_v12 = vadd.f32 %v13418_v11, %v4630_v34  ;;  %v4571_v56 = vmax.f32 %v10671_v40, 0.0  ;;  %v4872_v14 = vrot.slane %v13489_v46, 1 }
 0x3a9   : > { %v13498_v43 = vadd.f32 %v13418_v11, %v4629_v45  ;;  %v4570_v4 = vmax.f32 %v10672_v61, 0.0  ;;  %v10152_v48 = vpop.f32.mrb[16].mxu0 }
 0x3aa   : > { %v13503_v5 = vsel %vm4749_vm6, %v4691_v12, 0.0  ;;  %v4632_v55 = vmul.f32 %v13411_v62, %v4571_v56  ;;  %v10673_v27 = vadd.f32 %v10152_v48, %v13235_v16  ;;  %v4305_v51 = vpop.f32.mrb[17].mxu0  ;;  %v13508_v34 = vsel %vm470_vm3, %v4870_v49, %v4872_v14 }
 0x3ab   : > { %15316 = vst [vmem:[#allocation7_spill] sm:$0xff] %v13508_v34  ;;  %v4631_v40 = vmul.f32 %v13411_v62, %v4570_v4  ;;  %v10674_v45 = vadd.f32 %v4305_v51, %v13237_v41  ;;  %10219 = vmatmul.mubr.msk.f32.gmra.mrb[60].mxu1 %vm4941_vm4, %v13508_v34  ;;  %v4875_v61 = vrot.slane %v13498_v43, 1  ;;  %v4877_v12 = vrot.slane %v13503_v5, 1 }
 0x3ac   : > { %v13517_v44 = vadd.f32 %v13418_v11, %v4632_v55  ;;  %v4573_v56 = vmax.f32 %v10673_v27, 0.0 }
 0x3ad   : > { %v4692_v16 = vadd.f32 %v13418_v11, %v4631_v40  ;;  %v4572_v48 = vmax.f32 %v10674_v45, 0.0  ;;  %v10155_v49 = vpop.f32.mrb[18].mxu0  ;;  %v13521_v14 = vsel %vm470_vm3, %v4874_v39, %v4875_v61  ;;  %v13524_v41 = vsel %vm470_vm3, %v4875_v61, %v4877_v12 }
 0x3ae   : > { %15317 = vst [vmem:[#allocation9_spill] sm:$0xff] %v13521_v14  ;;  %15318 = vst [vmem:[#allocation15_spill] sm:$0xff] %v13524_v41  ;;  %v4634_v51 = vmul.f32 %v13411_v62, %v4573_v56  ;;  %v10675_v4 = vadd.f32 %v10155_v49, %v13243_v7  ;;  %v4315_v34 = vpop.f32.mrb[19].mxu0  ;;  %10221 = vmatprep.mubr.msk.f32.mxu1 %vm4941_vm4, %v13521_v14  ;;  %v4880_v61 = vrot.slane %v13517_v44, 1  ;;  %v15362_v63 = vld [vmem:[#allocation6_spill] sm:$0xff] }
 0x3af   : > { %v13532_v55 = vsel %vm4738_vm5, %v4692_v16, 0.0  ;;  %v4633_v27 = vmul.f32 %v13411_v62, %v4572_v48  ;;  %v10676_v39 = vadd.f32 %v4315_v34, %v13245_v8  ;;  %10222 = vmatmul.mubr.msk.f32.gmra.mrb[62].mxu1 %vm4941_vm4, %v13524_v41 }
 0x3b0   : > { %v4695_v40 = vadd.f32 %v13418_v11, %v4634_v51  ;;  %v4575_v45 = vmax.f32 %v10675_v4, 0.0  ;;  %v4879_v7 = vrot.slane %v13532_v55, 1 }
 0x3b1   : > { %v4694_v12 = vadd.f32 %v13418_v11, %v4633_v27  ;;  %v4574_v56 = vmax.f32 %v10676_v39, 0.0  ;;  %v10158_v49 = vpop.f32.mrb[20].mxu0 }
 0x3b2   : > { %v13544_v16 = vsel %vm4738_vm5, %v4695_v40, 0.0  ;;  %v4636_v8 = vmul.f32 %v13411_v62, %v4575_v45  ;;  %v10677_v34 = vadd.f32 %v10158_v49, %v13251_v17  ;;  %v4325_v48 = vpop.f32.mrb[21].mxu0  ;;  %v13549_v51 = vsel %vm470_vm3, %v4879_v7, %v4880_v61 }
 0x3b3   : > { %15319 = vst [vmem:[#allocation20_spill] sm:$0xff] %v13549_v51  ;;  %v13553_v4 = vsel %vm4749_vm6, %v4694_v12, 0.0  ;;  %v4635_v27 = vmul.f32 %v13411_v62, %v4574_v56  ;;  %v10678_v39 = vadd.f32 %v4325_v48, %v13253_v19  ;;  %10224 = vmatprep.mubr.msk.f32.mxu1 %vm4941_vm4, %v13549_v51  ;;  %v4884_v12 = vrot.slane %v13544_v16, 1 }
 0x3b4   : > { %v4697_v40 = vadd.f32 %v13418_v11, %v4636_v8  ;;  %v4577_v45 = vmax.f32 %v10677_v34, 0.0  ;;  %v4882_v17 = vrot.slane %v13553_v4, 1 }
 0x3b5   : > { %v13562_v49 = vadd.f32 %v13418_v11, %v4635_v27  ;;  %v4576_v7 = vmax.f32 %v10678_v39, 0.0  ;;  %v10161_v41 = vpop.f32.mrb[22].mxu0 }
 0x3b6   : > { %v13567_v56 = vsel %vm4749_vm6, %v4697_v40, 0.0  ;;  %v4638_v19 = vmul.f32 %v13411_v62, %v4577_v45  ;;  %v10679_v48 = vadd.f32 %v10161_v41, %v13259_v32  ;;  %v4335_v51 = vpop.f32.mrb[23].mxu0  ;;  %v13572_v8 = vsel %vm470_vm3, %v4880_v61, %v4882_v17 }
 0x3b7   : > { %15320 = vst [vmem:[#allocation8_spill] sm:$0xff] %v13572_v8  ;;  %v4637_v34 = vmul.f32 %v13411_v62, %v4576_v7  ;;  %v10680_v27 = vadd.f32 %v4335_v51, %v13261_v1  ;;  %10225 = vmatmul.mubr.msk.f32.gmra.mrb[64].mxu1 %vm4941_vm4, %v13572_v8  ;;  %v4885_v39 = vrot.slane %v13562_v49, 1  ;;  %v4887_v40 = vrot.slane %v13567_v56, 1 }
 0x3b8   : > { %v13581_v14 = vadd.f32 %v13418_v11, %v4638_v19  ;;  %v4579_v45 = vmax.f32 %v10679_v48, 0.0 }
 0x3b9   : > { %v4698_v32 = vadd.f32 %v13418_v11, %v4637_v34  ;;  %v4578_v41 = vmax.f32 %v10680_v27, 0.0  ;;  %v10164_v61 = vpop.f32.mrb[24].mxu0  ;;  %v13585_v17 = vsel %vm470_vm3, %v4884_v12, %v4885_v39  ;;  %v13588_v1 = vsel %vm470_vm3, %v4885_v39, %v4887_v40 }
 0x3ba   : > { %15321 = vst [vmem:[#allocation13_spill] sm:$0xff] %v13585_v17  ;;  %15322 = vst [vmem:[#allocation16_spill] sm:$0xff] %v13588_v1  ;;  %v4640_v51 = vmul.f32 %v13411_v62, %v4579_v45  ;;  %v10681_v7 = vadd.f32 %v10164_v61, %v13267_v25  ;;  %v4345_v8 = vpop.f32.mrb[25].mxu0  ;;  %10227 = vmatprep.mubr.msk.f32.mxu1 %vm4941_vm4, %v13585_v17  ;;  %v4890_v39 = vrot.slane %v13581_v14, 1 }
 0x3bb   : > { %v13596_v19 = vsel %vm4738_vm5, %v4698_v32, 0.0  ;;  %v4639_v48 = vmul.f32 %v13411_v62, %v4578_v41  ;;  %v10682_v12 = vadd.f32 %v4345_v8, %v13269_v0  ;;  %10228 = vmatmul.mubr.msk.f32.gmra.mrb[66].mxu1 %vm4941_vm4, %v13588_v1 }
 0x3bc   : > { %v4701_v34 = vadd.f32 %v13418_v11, %v4640_v51  ;;  %v4581_v27 = vmax.f32 %v10681_v7, 0.0  ;;  %v4889_v25 = vrot.slane %v13596_v19, 1 }
 0x3bd   : > { %v4700_v40 = vadd.f32 %v13418_v11, %v4639_v48  ;;  %v4580_v45 = vmax.f32 %v10682_v12, 0.0  ;;  %v10167_v61 = vpop.f32.mrb[26].mxu0 }
 0x3be   : > { %v13608_v32 = vsel %vm4738_vm5, %v4701_v34, 0.0  ;;  %v4642_v0 = vmul.f32 %v13411_v62, %v4581_v27  ;;  %v10683_v8 = vadd.f32 %v10167_v61, %v13275_v13  ;;  %v4355_v41 = vpop.f32.mrb[27].mxu0  ;;  %v13613_v51 = vsel %vm470_vm3, %v4889_v25, %v4890_v39 }
 0x3bf   : > { %15323 = vst [vmem:[#allocation59_spill] sm:$0xff] %v13613_v51  ;;  %v13617_v7 = vsel %vm4749_vm6, %v4700_v40, 0.0  ;;  %v4641_v48 = vmul.f32 %v13411_v62, %v4580_v45  ;;  %v10684_v12 = vadd.f32 %v4355_v41, %v13277_v60  ;;  %10230 = vmatprep.mubr.msk.f32.mxu1 %vm4941_vm4, %v13613_v51  ;;  %v4894_v40 = vrot.slane %v13608_v32, 1 }
 0x3c0   : > { %v4703_v34 = vadd.f32 %v13418_v11, %v4642_v0  ;;  %v4583_v27 = vmax.f32 %v10683_v8, 0.0  ;;  %v4892_v13 = vrot.slane %v13617_v7, 1 }
 0x3c1   : > { %v13626_v61 = vadd.f32 %v13418_v11, %v4641_v48  ;;  %v4582_v25 = vmax.f32 %v10684_v12, 0.0  ;;  %v10170_v1 = vpop.f32.mrb[28].mxu0 }
 0x3c2   : > { %v13631_v45 = vsel %vm4749_vm6, %v4703_v34, 0.0  ;;  %v4644_v60 = vmul.f32 %v13411_v62, %v4583_v27  ;;  %v10685_v41 = vadd.f32 %v10170_v1, %v13283_v57  ;;  %v4365_v51 = vpop.f32.mrb[29].mxu0  ;;  %v13636_v0 = vsel %vm470_vm3, %v4890_v39, %v4892_v13 }
 0x3c3   : > { %15324 = vst [vmem:[#allocation60_spill] sm:$0xff] %v13636_v0  ;;  %v4643_v8 = vmul.f32 %v13411_v62, %v4582_v25  ;;  %v10686_v48 = vadd.f32 %v4365_v51, %v13285_v59  ;;  %10231 = vmatmul.mubr.msk.f32.gmra.mrb[68].mxu1 %vm4941_vm4, %v13636_v0  ;;  %v4895_v12 = vrot.slane %v13626_v61, 1  ;;  %v4897_v34 = vrot.slane %v13631_v45, 1 }
 0x3c4   : > { %v13645_v17 = vadd.f32 %v13418_v11, %v4644_v60  ;;  %v4585_v27 = vmax.f32 %v10685_v41, 0.0 }
 0x3c5   : > { %v4704_v57 = vadd.f32 %v13418_v11, %v4643_v8  ;;  %v4584_v1 = vmax.f32 %v10686_v48, 0.0  ;;  %v10173_v39 = vpop.f32.mrb[30].mxu0  ;;  %v13649_v13 = vsel %vm470_vm3, %v4894_v40, %v4895_v12  ;;  %v13652_v59 = vsel %vm470_vm3, %v4895_v12, %v4897_v34 }
 0x3c6   : > { %15325 = vst [vmem:[#allocation61_spill] sm:$0xff] %v13649_v13  ;;  %15326 = vst [vmem:[#allocation65_spill] sm:$0xff] %v13652_v59  ;;  %v4646_v51 = vmul.f32 %v13411_v62, %v4585_v27  ;;  %v10687_v25 = vadd.f32 %v10173_v39, %v13291_v15  ;;  %v4375_v0 = vpop.f32.mrb[31].mxu0  ;;  %10233 = vmatprep.mubr.msk.f32.mxu1 %vm4941_vm4, %v13649_v13  ;;  %v4900_v12 = vrot.slane %v13645_v17, 1 }
 0x3c7   : > { %v13660_v60 = vsel %vm4738_vm5, %v4704_v57, 0.0  ;;  %v4645_v41 = vmul.f32 %v13411_v62, %v4584_v1  ;;  %v10688_v40 = vadd.f32 %v4375_v0, %v13293_v58  ;;  %10234 = vmatmul.mubr.msk.f32.gmra.mrb[70].mxu1 %vm4941_vm4, %v13652_v59 }
 0x3c8   : > { %v4707_v8 = vadd.f32 %v13418_v11, %v4646_v51  ;;  %v4587_v48 = vmax.f32 %v10687_v25, 0.0  ;;  %v4899_v15 = vrot.slane %v13660_v60, 1 }
 0x3c9   : > { %v4706_v34 = vadd.f32 %v13418_v11, %v4645_v41  ;;  %v4586_v27 = vmax.f32 %v10688_v40, 0.0  ;;  %v10176_v39 = vpop.f32.mrb[32].mxu0 }
 0x3ca   : > { %v13672_v57 = vsel %vm4738_vm5, %v4707_v8, 0.0  ;;  %v4648_v58 = vmul.f32 %v13411_v62, %v4587_v48  ;;  %v10689_v0 = vadd.f32 %v10176_v39, %v13299_v3  ;;  %v4385_v1 = vpop.f32.mrb[33].mxu0  ;;  %v13677_v51 = vsel %vm470_vm3, %v4899_v15, %v4900_v12 }
 0x3cb   : > { %15327 = vst [vmem:[#allocation66_spill] sm:$0xff] %v13677_v51  ;;  %v13681_v25 = vsel %vm4749_vm6, %v4706_v34, 0.0  ;;  %v4647_v41 = vmul.f32 %v13411_v62, %v4586_v27  ;;  %v10690_v40 = vadd.f32 %v4385_v1, %v13301_v42  ;;  %10236 = vmatprep.mubr.msk.f32.mxu1 %vm4941_vm4, %v13677_v51  ;;  %v4904_v34 = vrot.slane %v13672_v57, 1 }
 0x3cc   : > { %v4709_v8 = vadd.f32 %v13418_v11, %v4648_v58  ;;  %v4589_v48 = vmax.f32 %v10689_v0, 0.0  ;;  %v4902_v3 = vrot.slane %v13681_v25, 1 }
 0x3cd   : > { %v13690_v39 = vadd.f32 %v13418_v11, %v4647_v41  ;;  %v4588_v15 = vmax.f32 %v10690_v40, 0.0  ;;  %v10179_v59 = vpop.f32.mrb[34].mxu0 }
 0x3ce   : > { %v13695_v27 = vsel %vm4749_vm6, %v4709_v8, 0.0  ;;  %v4650_v42 = vmul.f32 %v13411_v62, %v4589_v48  ;;  %v10691_v1 = vadd.f32 %v10179_v59, %v13307_v21  ;;  %v4395_v51 = vpop.f32.mrb[35].mxu0  ;;  %v13700_v58 = vsel %vm470_vm3, %v4900_v12, %v4902_v3 }
 0x3cf   : > { %15328 = vst [vmem:[#allocation69_spill] sm:$0xff] %v13700_v58  ;;  %v4649_v0 = vmul.f32 %v13411_v62, %v4588_v15  ;;  %v10692_v41 = vadd.f32 %v4395_v51, %v13309_v33  ;;  %10237 = vmatmul.mubr.msk.f32.gmra.mrb[72].mxu1 %vm4941_vm4, %v13700_v58  ;;  %v4905_v40 = vrot.slane %v13690_v39, 1  ;;  %v4907_v8 = vrot.slane %v13695_v27, 1 }
 0x3d0   : > { %v13709_v13 = vadd.f32 %v13418_v11, %v4650_v42  ;;  %v4591_v48 = vmax.f32 %v10691_v1, 0.0 }
 0x3d1   : > { %v4710_v21 = vadd.f32 %v13418_v11, %v4649_v0  ;;  %v4590_v59 = vmax.f32 %v10692_v41, 0.0  ;;  %v10182_v12 = vpop.f32.mrb[36].mxu0  ;;  %v13713_v3 = vsel %vm470_vm3, %v4904_v34, %v4905_v40  ;;  %v13716_v33 = vsel %vm470_vm3, %v4905_v40, %v4907_v8 }
 0x3d2   : > { %15329 = vst [vmem:[#allocation73_spill] sm:$0xff] %v13713_v3  ;;  %15330 = vst [vmem:[#allocation74_spill] sm:$0xff] %v13716_v33  ;;  %v4652_v51 = vmul.f32 %v13411_v62, %v4591_v48  ;;  %v10693_v15 = vadd.f32 %v10182_v12, %v13315_v18  ;;  %v4405_v58 = vpop.f32.mrb[37].mxu0  ;;  %10239 = vmatprep.mubr.msk.f32.mxu1 %vm4941_vm4, %v13713_v3  ;;  %v4910_v40 = vrot.slane %v13709_v13, 1 }
 0x3d3   : > { %v13724_v42 = vsel %vm4738_vm5, %v4710_v21, 0.0  ;;  %v4651_v1 = vmul.f32 %v13411_v62, %v4590_v59  ;;  %v10694_v34 = vadd.f32 %v4405_v58, %v13317_v30  ;;  %10240 = vmatmul.mubr.msk.f32.gmra.mrb[74].mxu1 %vm4941_vm4, %v13716_v33 }
 0x3d4   : > { %v4713_v0 = vadd.f32 %v13418_v11, %v4652_v51  ;;  %v4593_v41 = vmax.f32 %v10693_v15, 0.0  ;;  %v4909_v18 = vrot.slane %v13724_v42, 1 }
 0x3d5   : > { %v4712_v8 = vadd.f32 %v13418_v11, %v4651_v1  ;;  %v4592_v48 = vmax.f32 %v10694_v34, 0.0  ;;  %v10185_v12 = vpop.f32.mrb[38].mxu0 }
 0x3d6   : > { %v13736_v21 = vsel %vm4738_vm5, %v4713_v0, 0.0  ;;  %v4654_v30 = vmul.f32 %v13411_v62, %v4593_v41  ;;  %v10695_v58 = vadd.f32 %v10185_v12, %v13323_v29  ;;  %v4415_v59 = vpop.f32.mrb[39].mxu0  ;;  %v13741_v51 = vsel %vm470_vm3, %v4909_v18, %v4910_v40 }
 0x3d7   : > { %15331 = vst [vmem:[#allocation75_spill] sm:$0xff] %v13741_v51  ;;  %v13745_v15 = vsel %vm4749_vm6, %v4712_v8, 0.0  ;;  %v4653_v1 = vmul.f32 %v13411_v62, %v4592_v48  ;;  %v10696_v34 = vadd.f32 %v4415_v59, %v13325_v50  ;;  %10242 = vmatprep.mubr.msk.f32.mxu1 %vm4941_vm4, %v13741_v51  ;;  %v4914_v8 = vrot.slane %v13736_v21, 1 }
 0x3d8   : > { %v4715_v0 = vadd.f32 %v13418_v11, %v4654_v30  ;;  %v4595_v41 = vmax.f32 %v10695_v58, 0.0  ;;  %v4912_v29 = vrot.slane %v13745_v15, 1 }
 0x3d9   : > { %v13754_v12 = vadd.f32 %v13418_v11, %v4653_v1  ;;  %v4594_v18 = vmax.f32 %v10696_v34, 0.0  ;;  %v10188_v33 = vpop.f32.mrb[40].mxu0 }
 0x3da   : > { %v13759_v48 = vsel %vm4749_vm6, %v4715_v0, 0.0  ;;  %v4656_v50 = vmul.f32 %v13411_v62, %v4595_v41  ;;  %v10697_v59 = vadd.f32 %v10188_v33, %v13331_v53  ;;  %v4425_v51 = vpop.f32.mrb[41].mxu0  ;;  %v13764_v30 = vsel %vm470_vm3, %v4910_v40, %v4912_v29 }
 0x3db   : > { %15332 = vst [vmem:[#allocation21_spill] sm:$0xff] %v13764_v30  ;;  %v4655_v58 = vmul.f32 %v13411_v62, %v4594_v18  ;;  %v10698_v1 = vadd.f32 %v4425_v51, %v13333_v38  ;;  %10243 = vmatmul.mubr.msk.f32.gmra.mrb[76].mxu1 %vm4941_vm4, %v13764_v30  ;;  %v4915_v34 = vrot.slane %v13754_v12, 1  ;;  %v4917_v0 = vrot.slane %v13759_v48, 1 }
 0x3dc   : > { %v13773_v3 = vadd.f32 %v13418_v11, %v4656_v50  ;;  %v4597_v41 = vmax.f32 %v10697_v59, 0.0 }
 0x3dd   : > { %v4716_v53 = vadd.f32 %v13418_v11, %v4655_v58  ;;  %v4596_v33 = vmax.f32 %v10698_v1, 0.0  ;;  %v10191_v40 = vpop.f32.mrb[42].mxu0  ;;  %v13777_v29 = vsel %vm470_vm3, %v4914_v8, %v4915_v34  ;;  %v13780_v38 = vsel %vm470_vm3, %v4915_v34, %v4917_v0 }
 0x3de   : > { %15333 = vst [vmem:[#allocation24_spill] sm:$0xff] %v13777_v29  ;;  %15334 = vst [vmem:[#allocation29_spill] sm:$0xff] %v13780_v38  ;;  %v4658_v51 = vmul.f32 %v13411_v62, %v4597_v41  ;;  %v10699_v18 = vadd.f32 %v10191_v40, %v13339_v6  ;;  %v4435_v30 = vpop.f32.mrb[43].mxu0  ;;  %10245 = vmatprep.mubr.msk.f32.mxu1 %vm4941_vm4, %v13777_v29  ;;  %v4920_v34 = vrot.slane %v13773_v3, 1 }
 0x3df   : > { %v13788_v50 = vsel %vm4738_vm5, %v4716_v53, 0.0  ;;  %v4657_v59 = vmul.f32 %v13411_v62, %v4596_v33  ;;  %v10700_v8 = vadd.f32 %v4435_v30, %v13341_v24  ;;  %10246 = vmatmul.mubr.msk.f32.gmra.mrb[78].mxu1 %vm4941_vm4, %v13780_v38 }
 0x3e0   : > { %v4719_v58 = vadd.f32 %v13418_v11, %v4658_v51  ;;  %v4599_v1 = vmax.f32 %v10699_v18, 0.0  ;;  %v4919_v6 = vrot.slane %v13788_v50, 1 }
 0x3e1   : > { %v4718_v0 = vadd.f32 %v13418_v11, %v4657_v59  ;;  %v4598_v41 = vmax.f32 %v10700_v8, 0.0  ;;  %v10194_v40 = vpop.f32.mrb[44].mxu0 }
 0x3e2   : > { %v13800_v53 = vsel %vm4738_vm5, %v4719_v58, 0.0  ;;  %v4660_v24 = vmul.f32 %v13411_v62, %v4599_v1  ;;  %v10701_v30 = vadd.f32 %v10194_v40, %v13347_v52  ;;  %v4445_v33 = vpop.f32.mrb[45].mxu0  ;;  %v13805_v51 = vsel %vm470_vm3, %v4919_v6, %v4920_v34 }
 0x3e3   : > { %15335 = vst [vmem:[#allocation10_spill] sm:$0xff] %v13805_v51  ;;  %v13809_v18 = vsel %vm4749_vm6, %v4718_v0, 0.0  ;;  %v4659_v59 = vmul.f32 %v13411_v62, %v4598_v41  ;;  %v10702_v8 = vadd.f32 %v4445_v33, %v13349_v31  ;;  %10248 = vmatprep.mubr.msk.f32.mxu1 %vm4941_vm4, %v13805_v51  ;;  %v4924_v0 = vrot.slane %v13800_v53, 1 }
 0x3e4   : > { %v4721_v58 = vadd.f32 %v13418_v11, %v4660_v24  ;;  %v4601_v1 = vmax.f32 %v10701_v30, 0.0  ;;  %v4922_v52 = vrot.slane %v13809_v18, 1 }
 0x3e5   : > { %v13818_v40 = vadd.f32 %v13418_v11, %v4659_v59  ;;  %v4600_v6 = vmax.f32 %v10702_v8, 0.0  ;;  %v10197_v38 = vpop.f32.mrb[46].mxu0 }
 0x3e6   : > { %v13823_v41 = vsel %vm4749_vm6, %v4721_v58, 0.0  ;;  %v4662_v31 = vmul.f32 %v13411_v62, %v4601_v1  ;;  %v10703_v33 = vadd.f32 %v10197_v38, %v13355_v9  ;;  %v4455_v51 = vpop.f32.mrb[47].mxu0  ;;  %v13828_v24 = vsel %vm470_vm3, %v4920_v34, %v4922_v52 }
 0x3e7   : > { %15336 = vst [vmem:[#allocation11_spill] sm:$0xff] %v13828_v24  ;;  %v4661_v30 = vmul.f32 %v13411_v62, %v4600_v6  ;;  %v10704_v59 = vadd.f32 %v4455_v51, %v13357_v36  ;;  %10249 = vmatmul.mubr.msk.f32.gmra.mrb[80].mxu1 %vm4941_vm4, %v13828_v24  ;;  %v4925_v8 = vrot.slane %v13818_v40, 1  ;;  %v4927_v58 = vrot.slane %v13823_v41, 1 }
 0x3e8   : > { %v13837_v29 = vadd.f32 %v13418_v11, %v4662_v31  ;;  %v4603_v1 = vmax.f32 %v10703_v33, 0.0 }
 0x3e9   : > { %v4722_v9 = vadd.f32 %v13418_v11, %v4661_v30  ;;  %v4602_v38 = vmax.f32 %v10704_v59, 0.0  ;;  %v10200_v34 = vpop.f32.mrb[48].mxu0  ;;  %v13841_v52 = vsel %vm470_vm3, %v4924_v0, %v4925_v8  ;;  %v13844_v36 = vsel %vm470_vm3, %v4925_v8, %v4927_v58 }
 0x3ea   : > { %15337 = vst [vmem:[#allocation12_spill] sm:$0xff] %v13844_v36  ;;  %v4664_v51 = vmul.f32 %v13411_v62, %v4603_v1  ;;  %v10705_v6 = vadd.f32 %v10200_v34, %v13363_v2  ;;  %v4465_v24 = vpop.f32.mrb[49].mxu0  ;;  %10251 = vmatprep.mubr.msk.f32.mxu1 %vm4941_vm4, %v13841_v52  ;;  %v4930_v8 = vrot.slane %v13837_v29, 1 }
 0x3eb   : > { %v13852_v31 = vsel %vm4738_vm5, %v4722_v9, 0.0  ;;  %v4663_v33 = vmul.f32 %v13411_v62, %v4602_v38  ;;  %v10706_v0 = vadd.f32 %v4465_v24, %v13365_v22  ;;  %10252 = vmatmul.mubr.msk.f32.gmra.mrb[82].mxu1 %vm4941_vm4, %v13844_v36 }
 0x3ec   : > { %v4725_v30 = vadd.f32 %v13418_v11, %v4664_v51  ;;  %v4605_v59 = vmax.f32 %v10705_v6, 0.0  ;;  %v4929_v2 = vrot.slane %v13852_v31, 1 }
 0x3ed   : > { %v4724_v58 = vadd.f32 %v13418_v11, %v4663_v33  ;;  %v4604_v1 = vmax.f32 %v10706_v0, 0.0  ;;  %v10203_v34 = vpop.f32.mrb[50].mxu0 }
 0x3ee   : > { %v4666_v9 = vmul.f32 %v13411_v62, %v4605_v59  ;;  %v13864_v38 = vadd.f32 %v10203_v34, %v13371_v23  ;;  %v4475_v22 = vpop.f32.mrb[51].mxu0  ;;  %v13867_v24 = vsel %vm470_vm3, %v4929_v2, %v4930_v8  ;;  %v13881_v23 = vsel %vm4738_vm5, %v4725_v30, 0.0 }
 0x3ef   : > { %v13871_v51 = vsel %vm4749_vm6, %v4724_v58, 0.0  ;;  %v4665_v6 = vmul.f32 %v13411_v62, %v4604_v1  ;;  %v13875_v36 = vadd.f32 %v4475_v22, %v13373_v47  ;;  %10254 = vmatprep.mubr.msk.f32.mxu1 %vm4941_vm4, %v13867_v24  ;;  %v15339_v1 = vld [vmem:[#allocation48_spill] sm:$0xff]  ;;  %v4934_v30 = vrot.slane %v13881_v23, 1 }
 0x3f0   : > { %v4727_v33 = vadd.f32 %v13418_v11, %v4666_v9  ;;  %v4932_v0 = vrot.slane %v13871_v51, 1 }
 0x3f1   : > { %v13886_v59 = vadd.f32 %v13418_v11, %v4665_v6  ;;  %v10206_v2 = vpop.f32.mrb[52].mxu0 }
 0x3f2   : > { %v13890_v62 = vsel %vm4749_vm6, %v4727_v33, 0.0  ;;  %v4485_v47 = vpop.f32.mrb[53].mxu0  ;;  %v13893_v58 = vsel %vm470_vm3, %v4930_v8, %v4932_v0  ;;  %v15342_v8 = vmov 0.0   ;;  %v8466_v33 = vld [vmem:[%s14860_s4 + $0x18] sm:$0xff]  ;;  %v15343_v0 = vld [vmem:[#allocation56_spill] sm:$0xff] }
 0x3f3   : > { %15338 = vst [vmem:[#allocation14_spill] sm:$0xff] %v13886_v59  ;;  %v13896_v34 = vadd.f32 %v4485_v47, %v15339_v1  ;;  %10255 = vmatmul.mubr.msk.f32.gmra.mrb[84].mxu1 %vm4941_vm4, %v13893_v58  ;;  %v4935_v11 = vrot.slane %v13886_v59, 1  ;;  %v4937_v9 = vrot.slane %v13890_v62, 1  ;;  %v13978_v2 = vrot.slane %v15342_v8, 2 }
 0x3f4   : > { %v5526_v47 = vrot.slane %v13439_v20, 2  ;;  %v5525_v1 = vrot.slane %v13432_v35, 2 }
 0x3f5   : > { %v13904_v22 = vsel %vm470_vm3, %v4934_v30, %v4935_v11  ;;  %v13907_v6 = vsel %vm470_vm3, %v4935_v11, %v4937_v9  ;;  %15344 = vst [vmem:[#allocation19_spill] sm:$0xff] %v13978_v2  ;;  %v5528_v30 = vrot.slane %v13443_v54, 2  ;;  %v13990_v11 = vld [vmem:[%s14860_s4 + $0x20] sm:$0xff] }
 0x3f6   : > { %15340 = vst [vmem:[#allocation17_spill] sm:$0xff] %v13904_v22  ;;  %15341 = vst [vmem:[#allocation18_spill] sm:$0xff] %v13907_v6  ;;  %10257 = vmatprep.mubr.msk.f32.mxu1 %vm4941_vm4, %v13904_v22  ;;  %v13995_v9 = vsel %vm1493_vm2, %v5525_v1, %v5526_v47 }
 0x3f7   : > { %10258 = vmatmul.mubr.msk.f32.gmra.mrb[86].mxu1 %vm4941_vm4, %v13907_v6  ;;  %15345 = vst [vmem:[#allocation22_spill] sm:$0xff] %v13995_v9  ;;  %v14003_v54 = vsel %vm1493_vm2, %v5526_v47, %v5528_v30  ;;  %v5533_v6 = vrot.slane %v13489_v46, 2  ;;  %v5538_v47 = vrot.slane %v13503_v5, 2  ;;  %v5540_v30 = vrot.slane %v13532_v55, 2 }
 0x3f8   : > { %10262 = vmatprep.mubr.f32.mxu1 %v15342_v8 }
 0x3fb   : > { %10263 = vmatmul.mubr.f32.vlgmr.msra.gmra.mrb[56].mxu1 %v15342_v8  ;;  %v5531_v8 = vrot.slane %v13453_v37, 2 }
 0x3fc   : > { %10311 = vmatpush3.msra.mxu1 %v15343_v0  ;;  %10265 = vmatprep.mubr.msk.f32.mxu1 %vm4941_vm4, %v13432_v35  ;;  %v5530_v0 = vrot.slane %v13468_v28, 2 }
 0x3fd   : > { %10360 = vmatprep.subr.mxu1 %v8466_v33 }
 0x3fe   : > { %v14009_v1 = vsel %vm1493_vm2, %v5530_v0, %v5531_v8  ;;  %v5541_v0 = vrot.slane %v13517_v44, 2 }
 0x3ff   : > { %10266 = vmatmul.mubr.msk.f32.gmra.mrb[58].mxu1 %vm4941_vm4, %v13439_v20  ;;  %15346 = vst [vmem:[#allocation23_spill] sm:$0xff] %v14009_v1 }
 0x400   : > { %10268 = vmatprep.mubr.msk.f32.mxu1 %vm4941_vm4, %v13468_v28  ;;  %v14035_v5 = vsel %vm1493_vm2, %v5540_v30, %v5541_v0  ;;  %v5551_v30 = vrot.slane %v13581_v14, 2 }
 0x401   : > { %15348 = vst [vmem:[#allocation26_spill] sm:$0xff] %v14035_v5 }
 0x403   : > { %10269 = vmatmul.mubr.msk.f32.gmra.mrb[60].mxu1 %vm4941_vm4, %v13453_v37 }
 0x404   : > { %10271 = vmatprep.mubr.msk.f32.mxu1 %vm4941_vm4, %v13480_v26 }
 0x407   : > { %10272 = vmatmul.mubr.msk.f32.gmra.mrb[62].mxu1 %vm4941_vm4, %v13498_v43 }
 0x408   : > { %10274 = vmatprep.mubr.msk.f32.mxu1 %vm4941_vm4, %v13532_v55 }
 0x40b   : > { %10275 = vmatmul.mubr.msk.f32.gmra.mrb[64].mxu1 %vm4941_vm4, %v13517_v44 }
 0x40c   : > { %10277 = vmatprep.mubr.msk.f32.mxu1 %vm4941_vm4, %v13544_v16 }
 0x40f   : > { %10278 = vmatmul.mubr.msk.f32.gmra.mrb[66].mxu1 %vm4941_vm4, %v13562_v49 }
 0x410   : > { %10280 = vmatprep.mubr.msk.f32.mxu1 %vm4941_vm4, %v13596_v19 }
 0x413   : > { %10281 = vmatmul.mubr.msk.f32.gmra.mrb[68].mxu1 %vm4941_vm4, %v13581_v14 }
 0x414   : > { %10283 = vmatprep.mubr.msk.f32.mxu1 %vm4941_vm4, %v13608_v32 }
 0x417   : > { %10284 = vmatmul.mubr.msk.f32.gmra.mrb[70].mxu1 %vm4941_vm4, %v13626_v61 }
 0x418   : > { %10286 = vmatprep.mubr.msk.f32.mxu1 %vm4941_vm4, %v13660_v60 }
 0x41b   : > { %10287 = vmatmul.mubr.msk.f32.gmra.mrb[72].mxu1 %vm4941_vm4, %v13645_v17 }
 0x41c   : > { %10289 = vmatprep.mubr.msk.f32.mxu1 %vm4941_vm4, %v13672_v57 }
 0x41f   : > { %10290 = vmatmul.mubr.msk.f32.gmra.mrb[74].mxu1 %vm4941_vm4, %v13690_v39 }
 0x420   : > { %10292 = vmatprep.mubr.msk.f32.mxu1 %vm4941_vm4, %v13724_v42 }
 0x423   : > { %10293 = vmatmul.mubr.msk.f32.gmra.mrb[76].mxu1 %vm4941_vm4, %v13709_v13 }
 0x424   : > { %10295 = vmatprep.mubr.msk.f32.mxu1 %vm4941_vm4, %v13736_v21 }
 0x427   : > { %10296 = vmatmul.mubr.msk.f32.gmra.mrb[78].mxu1 %vm4941_vm4, %v13754_v12 }
 0x428   : > { %10298 = vmatprep.mubr.msk.f32.mxu1 %vm4941_vm4, %v13788_v50 }
 0x42b   : > { %10299 = vmatmul.mubr.msk.f32.gmra.mrb[80].mxu1 %vm4941_vm4, %v13773_v3 }
 0x42c   : > { %10301 = vmatprep.mubr.msk.f32.mxu1 %vm4941_vm4, %v13800_v53 }
 0x42f   : > { %10302 = vmatmul.mubr.msk.f32.gmra.mrb[82].mxu1 %vm4941_vm4, %v13818_v40 }
 0x430   : > { %10304 = vmatprep.mubr.msk.f32.mxu1 %vm4941_vm4, %v13852_v31 }
 0x433   : > { %10305 = vmatmul.mubr.msk.f32.gmra.mrb[84].mxu1 %vm4941_vm4, %v13837_v29 }
 0x434   : > { %10307 = vmatprep.mubr.msk.f32.mxu1 %vm4941_vm4, %v13881_v23 }
 0x437   : > { %10308 = vmatmul.mubr.msk.f32.gmra.mrb[86].mxu1 %vm4941_vm4, %v13886_v59 }
 0x438   : > { %10312 = vmatprep.mubr.msk.f32.mxu1 %vm4941_vm4, %v13978_v2 }
 0x43b   : > { %10313 = vmatmul.mubr.msk.f32.vlgmr.msra.gmra.mrb[56].mxu1 %vm4941_vm4, %v13978_v2  ;;  %v5535_v2 = vrot.slane %v13480_v26, 2 }
 0x43c   : > { %10361 = vmatpush3.msra.mxu1 %v8466_v33  ;;  %10315 = vmatprep.mubr.msk.f32.mxu1 %vm4941_vm4, %v13995_v9  ;;  %v5536_v33 = vrot.slane %v13498_v43, 2  ;;  %v14016_v9 = vsel %vm1493_vm2, %v5531_v8, %v5533_v6  ;;  %v5543_v6 = vrot.slane %v13553_v4, 2  ;;  %v5546_v8 = vrot.slane %v13562_v49, 2 }
 0x43d   : > { %10410 = vmatprep.subr.mxu1 %v13990_v11 }
 0x43e   : > { %v14022_v46 = vsel %vm1493_vm2, %v5535_v2, %v5536_v33  ;;  %v5545_v2 = vrot.slane %v13544_v16, 2 }
 0x43f   : > { %10316 = vmatmul.mubr.msk.f32.gmra.mrb[58].mxu1 %vm4941_vm4, %v14003_v54  ;;  %15347 = vst [vmem:[#allocation25_spill] sm:$0xff] %v14022_v46 }
 0x440   : > { %10318 = vmatprep.mubr.msk.f32.mxu1 %vm4941_vm4, %v14009_v1  ;;  %v14029_v1 = vsel %vm1493_vm2, %v5536_v33, %v5538_v47  ;;  %v5548_v33 = vrot.slane %v13567_v56, 2  ;;  %v14048_v4 = vsel %vm1493_vm2, %v5545_v2, %v5546_v8  ;;  %v5550_v47 = vrot.slane %v13596_v19, 2 }
 0x441   : > { %15349 = vst [vmem:[#allocation27_spill] sm:$0xff] %v14048_v4  ;;  %v5555_v2 = vrot.slane %v13608_v32, 2 }
 0x442   : > { %v14061_v56 = vsel %vm1493_vm2, %v5550_v47, %v5551_v30  ;;  %v5561_v47 = vrot.slane %v13645_v17, 2 }
 0x443   : > { %10319 = vmatmul.mubr.msk.f32.gmra.mrb[60].mxu1 %vm4941_vm4, %v14016_v9  ;;  %15350 = vst [vmem:[#allocation28_spill] sm:$0xff] %v14061_v56 }
 0x444   : > { %10321 = vmatprep.mubr.msk.f32.mxu1 %vm4941_vm4, %v14022_v46  ;;  %v14042_v46 = vsel %vm1493_vm2, %v5541_v0, %v5543_v6  ;;  %v5553_v0 = vrot.slane %v13617_v7, 2  ;;  %v5556_v6 = vrot.slane %v13626_v61, 2 }
 0x446   : > { %v14074_v7 = vsel %vm1493_vm2, %v5555_v2, %v5556_v6  ;;  %v5565_v2 = vrot.slane %v13672_v57, 2 }
 0x447   : > { %10322 = vmatmul.mubr.msk.f32.gmra.mrb[62].mxu1 %vm4941_vm4, %v14029_v1  ;;  %15351 = vst [vmem:[#allocation30_spill] sm:$0xff] %v14074_v7 }
 0x448   : > { %10324 = vmatprep.mubr.msk.f32.mxu1 %vm4941_vm4, %v14035_v5  ;;  %v14055_v5 = vsel %vm1493_vm2, %v5546_v8, %v5548_v33  ;;  %v5558_v8 = vrot.slane %v13631_v45, 2  ;;  %v5560_v33 = vrot.slane %v13660_v60, 2 }
 0x44a   : > { %v14087_v45 = vsel %vm1493_vm2, %v5560_v33, %v5561_v47  ;;  %v5571_v33 = vrot.slane %v13709_v13, 2 }
 0x44b   : > { %10325 = vmatmul.mubr.msk.f32.gmra.mrb[64].mxu1 %vm4941_vm4, %v14042_v46  ;;  %15352 = vst [vmem:[#allocation31_spill] sm:$0xff] %v14087_v45 }
 0x44c   : > { %10327 = vmatprep.mubr.msk.f32.mxu1 %vm4941_vm4, %v14048_v4  ;;  %v14068_v4 = vsel %vm1493_vm2, %v5551_v30, %v5553_v0  ;;  %v5563_v30 = vrot.slane %v13681_v25, 2  ;;  %v5566_v0 = vrot.slane %v13690_v39, 2 }
 0x44e   : > { %v14100_v25 = vsel %vm1493_vm2, %v5565_v2, %v5566_v0  ;;  %v5575_v2 = vrot.slane %v13736_v21, 2 }
 0x44f   : > { %10328 = vmatmul.mubr.msk.f32.gmra.mrb[66].mxu1 %vm4941_vm4, %v14055_v5  ;;  %15353 = vst [vmem:[#allocation33_spill] sm:$0xff] %v14100_v25 }
 0x450   : > { %10330 = vmatprep.mubr.msk.f32.mxu1 %vm4941_vm4, %v14061_v56  ;;  %v14081_v56 = vsel %vm1493_vm2, %v5556_v6, %v5558_v8  ;;  %v5568_v6 = vrot.slane %v13695_v27, 2  ;;  %v5570_v8 = vrot.slane %v13724_v42, 2 }
 0x452   : > { %v14113_v27 = vsel %vm1493_vm2, %v5570_v8, %v5571_v33  ;;  %v5581_v8 = vrot.slane %v13773_v3, 2 }
 0x453   : > { %10331 = vmatmul.mubr.msk.f32.gmra.mrb[68].mxu1 %vm4941_vm4, %v14068_v4  ;;  %15354 = vst [vmem:[#allocation34_spill] sm:$0xff] %v14113_v27 }
 0x454   : > { %10333 = vmatprep.mubr.msk.f32.mxu1 %vm4941_vm4, %v14074_v7  ;;  %v14094_v7 = vsel %vm1493_vm2, %v5561_v47, %v5563_v30  ;;  %v5573_v47 = vrot.slane %v13745_v15, 2  ;;  %v5576_v30 = vrot.slane %v13754_v12, 2 }
 0x456   : > { %v14126_v15 = vsel %vm1493_vm2, %v5575_v2, %v5576_v30  ;;  %v5585_v2 = vrot.slane %v13800_v53, 2 }
 0x457   : > { %10334 = vmatmul.mubr.msk.f32.gmra.mrb[70].mxu1 %vm4941_vm4, %v14081_v56  ;;  %15355 = vst [vmem:[#allocation35_spill] sm:$0xff] %v14126_v15 }
 0x458   : > { %10336 = vmatprep.mubr.msk.f32.mxu1 %vm4941_vm4, %v14087_v45  ;;  %v14107_v45 = vsel %vm1493_vm2, %v5566_v0, %v5568_v6  ;;  %v5578_v0 = vrot.slane %v13759_v48, 2  ;;  %v5580_v6 = vrot.slane %v13788_v50, 2 }
 0x45a   : > { %v14139_v48 = vsel %vm1493_vm2, %v5580_v6, %v5581_v8  ;;  %v5591_v6 = vrot.slane %v13837_v29, 2 }
 0x45b   : > { %10337 = vmatmul.mubr.msk.f32.gmra.mrb[72].mxu1 %vm4941_vm4, %v14094_v7  ;;  %15356 = vst [vmem:[#allocation36_spill] sm:$0xff] %v14139_v48 }
 0x45c   : > { %10339 = vmatprep.mubr.msk.f32.mxu1 %vm4941_vm4, %v14100_v25  ;;  %v14120_v25 = vsel %vm1493_vm2, %v5571_v33, %v5573_v47  ;;  %v5583_v33 = vrot.slane %v13809_v18, 2  ;;  %v5586_v47 = vrot.slane %v13818_v40, 2 }
 0x45e   : > { %v14152_v18 = vsel %vm1493_vm2, %v5585_v2, %v5586_v47  ;;  %v5595_v2 = vrot.slane %v13881_v23, 2 }
 0x45f   : > { %10340 = vmatmul.mubr.msk.f32.gmra.mrb[74].mxu1 %vm4941_vm4, %v14107_v45  ;;  %15358 = vst [vmem:[#allocation39_spill] sm:$0xff] %v14152_v18 }
 0x460   : > { %10342 = vmatprep.mubr.msk.f32.mxu1 %vm4941_vm4, %v14113_v27  ;;  %v14133_v27 = vsel %vm1493_vm2, %v5576_v30, %v5578_v0  ;;  %v5588_v30 = vrot.slane %v13823_v41, 2  ;;  %v5590_v0 = vrot.slane %v13852_v31, 2 }
 0x462   : > { %v14165_v41 = vsel %vm1493_vm2, %v5590_v0, %v5591_v6  ;;  %v4607_v0 = vmax.f32 %v13864_v38, 0.0 }
 0x463   : > { %10343 = vmatmul.mubr.msk.f32.gmra.mrb[76].mxu1 %vm4941_vm4, %v14120_v25  ;;  %15359 = vst [vmem:[#allocation41_spill] sm:$0xff] %v14165_v41 }
 0x464   : > { %10345 = vmatprep.mubr.msk.f32.mxu1 %vm4941_vm4, %v14126_v15  ;;  %v14146_v15 = vsel %vm1493_vm2, %v5581_v8, %v5583_v33  ;;  %v5593_v8 = vrot.slane %v13871_v51, 2  ;;  %v5596_v33 = vrot.slane %v13886_v59, 2 }
 0x465   : > { %15357 = vst [vmem:[#allocation38_spill] sm:$0xff] %v14146_v15 }
 0x466   : > { %v14178_v51 = vsel %vm1493_vm2, %v5595_v2, %v5596_v33  ;;  %v15360_v2 = vld [vmem:[#allocation64_spill] sm:$0xff] }
 0x467   : > { %10346 = vmatmul.mubr.msk.f32.gmra.mrb[78].mxu1 %vm4941_vm4, %v14133_v27 }
 0x468   : > { %10348 = vmatprep.mubr.msk.f32.mxu1 %vm4941_vm4, %v14139_v48  ;;  %v14159_v48 = vsel %vm1493_vm2, %v5586_v47, %v5588_v30  ;;  %v5598_v47 = vrot.slane %v13890_v62, 2  ;;  %v8532_v62 = vld [vmem:[%s14860_s4 + $0x28] sm:$0xff] }
 0x46a   : > { %v14183_v30 = vsel %vm1493_vm2, %v5596_v33, %v5598_v47  ;;  %v8565_v47 = vld [vmem:[%s14860_s4 + $0x30] sm:$0xff] }
 0x46b   : > { %10349 = vmatmul.mubr.msk.f32.gmra.mrb[80].mxu1 %vm4941_vm4, %v14146_v15 }
 0x46c   : > { %10351 = vmatprep.mubr.msk.f32.mxu1 %vm4941_vm4, %v14152_v18  ;;  %v14172_v18 = vsel %vm1493_vm2, %v5591_v6, %v5593_v8 }
 0x46f   : > { %10352 = vmatmul.mubr.msk.f32.gmra.mrb[82].mxu1 %vm4941_vm4, %v14159_v48 }
 0x470   : > { %10354 = vmatprep.mubr.msk.f32.mxu1 %vm4941_vm4, %v14165_v41 }
 0x473   : > { %10355 = vmatmul.mubr.msk.f32.gmra.mrb[84].mxu1 %vm4941_vm4, %v14172_v18 }
 0x474   : > { %10357 = vmatprep.mubr.msk.f32.mxu1 %vm4941_vm4, %v14178_v51 }
 0x477   : > { %10358 = vmatmul.mubr.msk.f32.gmra.mrb[86].mxu1 %vm4941_vm4, %v14183_v30 }
 0x478   : > { %10362 = vmatprep.mubr.msk.f32.mxu1 %vm4941_vm4, %v13432_v35  ;;  %v4606_v35 = vmax.f32 %v13875_v36, 0.0  ;;  %v11409_v36 = vld [vmem:[%s14859_s3] ss:$0 sm:$0xff] }
 0x47b   : > { %10363 = vmatmul.mubr.msk.f32.vlgmr.msra.gmra.mrb[56].mxu1 %vm4941_vm4, %v13439_v20  ;;  %v11408_v20 = vld [vmem:[%s14858_s2] ss:$0 sm:$0xff] }
 0x47c   : > { %10411 = vmatpush3.msra.mxu1 %v13990_v11  ;;  %10365 = vmatprep.mubr.msk.f32.mxu1 %vm4941_vm4, %v13468_v28  ;;  %v4667_v11 = vmul.f32 %v11408_v20, %v4606_v35  ;;  %v4668_v8 = vmul.f32 %v11408_v20, %v4607_v0  ;;  %v15361_v35 = vld [vmem:[#allocation70_spill] sm:$0xff]  ;;  %v15364_v0 = vld [vmem:[#allocation9_spill] sm:$0xff] }
 0x47d   : > { %10460 = vmatprep.subr.mxu1 %v8532_v62 }
 0x47e   : > { %v4728_v6 = vadd.f32 %v11409_v36, %v4667_v11  ;;  %v14265_v38 = vadd.f32 %v11409_v36, %v4668_v8  ;;  %v15363_v11 = vld [vmem:[#allocation7_spill] sm:$0xff]  ;;  %v15366_v8 = vld [vmem:[#allocation20_spill] sm:$0xff] }
 0x47f   : > { %10366 = vmatmul.mubr.msk.f32.gmra.mrb[58].mxu1 %vm4941_vm4, %v13453_v37 }
 0x480   : > { %10368 = vmatprep.mubr.msk.f32.mxu1 %vm4941_vm4, %v13480_v26  ;;  %v14261_v33 = vsel %vm4738_vm5, %v4728_v6, 0.0  ;;  %v15365_v6 = vld [vmem:[#allocation15_spill] sm:$0xff] }
 0x483   : > { %10369 = vmatmul.mubr.msk.f32.gmra.mrb[60].mxu1 %vm4941_vm4, %v13498_v43 }
 0x484   : > { %10371 = vmatprep.mubr.msk.f32.mxu1 %vm4941_vm4, %v13532_v55 }
 0x487   : > { %10372 = vmatmul.mubr.msk.f32.gmra.mrb[62].mxu1 %vm4941_vm4, %v13517_v44 }
 0x488   : > { %10374 = vmatprep.mubr.msk.f32.mxu1 %vm4941_vm4, %v13544_v16 }
 0x48b   : > { %10375 = vmatmul.mubr.msk.f32.gmra.mrb[64].mxu1 %vm4941_vm4, %v13562_v49 }
 0x48c   : > { %10377 = vmatprep.mubr.msk.f32.mxu1 %vm4941_vm4, %v13596_v19 }
 0x48f   : > { %10378 = vmatmul.mubr.msk.f32.gmra.mrb[66].mxu1 %vm4941_vm4, %v13581_v14 }
 0x490   : > { %10380 = vmatprep.mubr.msk.f32.mxu1 %vm4941_vm4, %v13608_v32 }
 0x493   : > { %10381 = vmatmul.mubr.msk.f32.gmra.mrb[68].mxu1 %vm4941_vm4, %v13626_v61 }
 0x494   : > { %10383 = vmatprep.mubr.msk.f32.mxu1 %vm4941_vm4, %v13660_v60 }
 0x497   : > { %10384 = vmatmul.mubr.msk.f32.gmra.mrb[70].mxu1 %vm4941_vm4, %v13645_v17 }
 0x498   : > { %10386 = vmatprep.mubr.msk.f32.mxu1 %vm4941_vm4, %v13672_v57 }
 0x49b   : > { %10387 = vmatmul.mubr.msk.f32.gmra.mrb[72].mxu1 %vm4941_vm4, %v13690_v39 }
 0x49c   : > { %10389 = vmatprep.mubr.msk.f32.mxu1 %vm4941_vm4, %v13724_v42 }
 0x49f   : > { %10390 = vmatmul.mubr.msk.f32.gmra.mrb[74].mxu1 %vm4941_vm4, %v13709_v13 }
 0x4a0   : > { %10392 = vmatprep.mubr.msk.f32.mxu1 %vm4941_vm4, %v13736_v21 }
 0x4a3   : > { %10393 = vmatmul.mubr.msk.f32.gmra.mrb[76].mxu1 %vm4941_vm4, %v13754_v12 }
 0x4a4   : > { %10395 = vmatprep.mubr.msk.f32.mxu1 %vm4941_vm4, %v13788_v50 }
 0x4a7   : > { %10396 = vmatmul.mubr.msk.f32.gmra.mrb[78].mxu1 %vm4941_vm4, %v13773_v3 }
 0x4a8   : > { %10398 = vmatprep.mubr.msk.f32.mxu1 %vm4941_vm4, %v13800_v53 }
 0x4ab   : > { %10399 = vmatmul.mubr.msk.f32.gmra.mrb[80].mxu1 %vm4941_vm4, %v13818_v40 }
 0x4ac   : > { %10401 = vmatprep.mubr.msk.f32.mxu1 %vm4941_vm4, %v13852_v31 }
 0x4af   : > { %10402 = vmatmul.mubr.msk.f32.gmra.mrb[82].mxu1 %vm4941_vm4, %v13837_v29 }
 0x4b0   : > { %10404 = vmatprep.mubr.msk.f32.mxu1 %vm4941_vm4, %v13881_v23 }
 0x4b3   : > { %10405 = vmatmul.mubr.msk.f32.gmra.mrb[84].mxu1 %vm4941_vm4, %v13886_v59  ;;  %v15383_v59 = vld [vmem:[#allocation11_spill] sm:$0xff] }
 0x4b4   : > { %10407 = vmatprep.mubr.msk.f32.mxu1 %vm4941_vm4, %v14261_v33 }
 0x4b7   : > { %10408 = vmatmul.mubr.msk.f32.gmra.mrb[86].mxu1 %vm4941_vm4, %v14265_v38 }
 0x4b8   : > { %10412 = vmatprep.mubr.msk.f32.mxu1 %vm4941_vm4, %v15360_v2  ;;  %v15367_v2 = vld [vmem:[#allocation8_spill] sm:$0xff] }
 0x4bb   : > { %10413 = vmatmul.mubr.msk.f32.vlgmr.msra.gmra.mrb[56].mxu1 %vm4941_vm4, %v15361_v35  ;;  %v15369_v35 = vld [vmem:[#allocation16_spill] sm:$0xff] }
 0x4bc   : > { %10461 = vmatpush3.msra.mxu1 %v8532_v62  ;;  %10415 = vmatprep.mubr.msk.f32.mxu1 %vm4941_vm4, %v15362_v63  ;;  %v15368_v62 = vld [vmem:[#allocation13_spill] sm:$0xff]  ;;  %v15370_v63 = vld [vmem:[#allocation59_spill] sm:$0xff] }
 0x4bd   : > { %10510 = vmatprep.subr.mxu1 %v8565_v47 }
 0x4bf   : > { %10416 = vmatmul.mubr.msk.f32.gmra.mrb[58].mxu1 %vm4941_vm4, %v15363_v11  ;;  %v15371_v11 = vld [vmem:[#allocation60_spill] sm:$0xff] }
 0x4c0   : > { %10418 = vmatprep.mubr.msk.f32.mxu1 %vm4941_vm4, %v15364_v0  ;;  %v15372_v0 = vld [vmem:[#allocation61_spill] sm:$0xff] }
 0x4c3   : > { %10419 = vmatmul.mubr.msk.f32.gmra.mrb[60].mxu1 %vm4941_vm4, %v15365_v6  ;;  %v15373_v6 = vld [vmem:[#allocation65_spill] sm:$0xff] }
 0x4c4   : > { %10421 = vmatprep.mubr.msk.f32.mxu1 %vm4941_vm4, %v15366_v8  ;;  %v15374_v8 = vld [vmem:[#allocation66_spill] sm:$0xff] }
 0x4c7   : > { %10422 = vmatmul.mubr.msk.f32.gmra.mrb[62].mxu1 %vm4941_vm4, %v15367_v2  ;;  %v15375_v2 = vld [vmem:[#allocation69_spill] sm:$0xff] }
 0x4c8   : > { %10424 = vmatprep.mubr.msk.f32.mxu1 %vm4941_vm4, %v15368_v62  ;;  %v15376_v62 = vld [vmem:[#allocation73_spill] sm:$0xff] }
 0x4cb   : > { %10425 = vmatmul.mubr.msk.f32.gmra.mrb[64].mxu1 %vm4941_vm4, %v15369_v35  ;;  %v15377_v35 = vld [vmem:[#allocation74_spill] sm:$0xff] }
 0x4cc   : > { %10427 = vmatprep.mubr.msk.f32.mxu1 %vm4941_vm4, %v15370_v63  ;;  %v15378_v63 = vld [vmem:[#allocation75_spill] sm:$0xff] }
 0x4cf   : > { %10428 = vmatmul.mubr.msk.f32.gmra.mrb[66].mxu1 %vm4941_vm4, %v15371_v11  ;;  %v15379_v11 = vld [vmem:[#allocation21_spill] sm:$0xff] }
 0x4d0   : > { %10430 = vmatprep.mubr.msk.f32.mxu1 %vm4941_vm4, %v15372_v0  ;;  %v15380_v0 = vld [vmem:[#allocation24_spill] sm:$0xff] }
 0x4d3   : > { %10431 = vmatmul.mubr.msk.f32.gmra.mrb[68].mxu1 %vm4941_vm4, %v15373_v6  ;;  %v15381_v6 = vld [vmem:[#allocation29_spill] sm:$0xff] }
 0x4d4   : > { %10433 = vmatprep.mubr.msk.f32.mxu1 %vm4941_vm4, %v15374_v8  ;;  %v4608_v8 = vmax.f32 %v13896_v34, 0.0 }
 0x4d7   : > { %10434 = vmatmul.mubr.msk.f32.gmra.mrb[70].mxu1 %vm4941_vm4, %v15375_v2  ;;  %v15382_v2 = vld [vmem:[#allocation10_spill] sm:$0xff] }
 0x4d8   : > { %10436 = vmatprep.mubr.msk.f32.mxu1 %vm4941_vm4, %v15376_v62  ;;  %v4669_v62 = vmul.f32 %v11408_v20, %v4608_v8  ;;  %v6190_v20 = vrot.slane %v14265_v38, 1  ;;  %v15385_v8 = vld [vmem:[#allocation18_spill] sm:$0xff] }
 0x4db   : > { %10437 = vmatmul.mubr.msk.f32.gmra.mrb[72].mxu1 %vm4941_vm4, %v15377_v35 }
 0x4dc   : > { %10439 = vmatprep.mubr.msk.f32.mxu1 %vm4941_vm4, %v15378_v63  ;;  %v4730_v63 = vadd.f32 %v11409_v36, %v4669_v62 }
 0x4de   : > { %v4806_v34 = vsel %vm4749_vm6, %v4730_v63, 0.0  ;;  %v15386_v63 = vld [vmem:[#allocation22_spill] sm:$0xff] }
 0x4df   : > { %10440 = vmatmul.mubr.msk.f32.gmra.mrb[74].mxu1 %vm4941_vm4, %v15379_v11  ;;  %v15384_v11 = vld [vmem:[#allocation12_spill] sm:$0xff]  ;;  %v6192_v36 = vrot.slane %v4806_v34, 1 }
 0x4e0   : > { %10442 = vmatprep.mubr.msk.f32.mxu1 %vm4941_vm4, %v15380_v0 }
 0x4e1   : > { %v14343_v10 = vsel %vm470_vm3, %v6190_v20, %v6192_v36  ;;  %v15389_v36 = vld [vmem:[#allocation26_spill] sm:$0xff] }
 0x4e3   : > { %10443 = vmatmul.mubr.msk.f32.gmra.mrb[76].mxu1 %vm4941_vm4, %v15381_v6  ;;  %v6189_v6 = vrot.slane %v14261_v33, 1 }
 0x4e4   : > { %10445 = vmatprep.mubr.msk.f32.mxu1 %vm4941_vm4, %v15382_v2 }
 0x4e5   : > { %v14338_v62 = vsel %vm470_vm3, %v6189_v6, %v6190_v20  ;;  %v15387_v6 = vld [vmem:[#allocation23_spill] sm:$0xff]  ;;  %v15388_v20 = vld [vmem:[#allocation25_spill] sm:$0xff] }
 0x4e7   : > { %10446 = vmatmul.mubr.msk.f32.gmra.mrb[78].mxu1 %vm4941_vm4, %v15383_v59 }
 0x4e8   : > { %10448 = vmatprep.mubr.msk.f32.mxu1 %vm4941_vm4, %v13841_v52 }
 0x4eb   : > { %10449 = vmatmul.mubr.msk.f32.gmra.mrb[80].mxu1 %vm4941_vm4, %v15384_v11 }
 0x4ec   : > { %10451 = vmatprep.mubr.msk.f32.mxu1 %vm4941_vm4, %v13867_v24 }
 0x4ef   : > { %10452 = vmatmul.mubr.msk.f32.gmra.mrb[82].mxu1 %vm4941_vm4, %v13893_v58 }
 0x4f0   : > { %10454 = vmatprep.mubr.msk.f32.mxu1 %vm4941_vm4, %v13904_v22  ;;  %v8596_v22 = vld [vmem:[%s14860_s4 + $0x38] sm:$0xff] }
 0x4f3   : > { %10455 = vmatmul.mubr.msk.f32.gmra.mrb[84].mxu1 %vm4941_vm4, %v15385_v8 }
 0x4f4   : > { %10457 = vmatprep.mubr.msk.f32.mxu1 %vm4941_vm4, %v14338_v62 }
 0x4f7   : > { %10458 = vmatmul.mubr.msk.f32.gmra.mrb[86].mxu1 %vm4941_vm4, %v14343_v10 }
 0x4f8   : > { %10462 = vmatprep.mubr.msk.f32.mxu1 %vm4941_vm4, %v15386_v63  ;;  %v15392_v63 = vld [vmem:[#allocation30_spill] sm:$0xff] }
 0x4fb   : > { %10463 = vmatmul.mubr.msk.f32.vlgmr.msra.gmra.mrb[56].mxu1 %vm4941_vm4, %v14003_v54  ;;  %v15390_v54 = vld [vmem:[#allocation27_spill] sm:$0xff] }
 0x4fc   : > { %10511 = vmatpush3.msra.mxu1 %v8565_v47  ;;  %10465 = vmatprep.mubr.msk.f32.mxu1 %vm4941_vm4, %v15387_v6  ;;  %v15391_v47 = vld [vmem:[#allocation28_spill] sm:$0xff] }
 0x4fd   : > { %10560 = vmatprep.subr.mxu1 %v8596_v22 }
 0x4ff   : > { %10466 = vmatmul.mubr.msk.f32.gmra.mrb[58].mxu1 %vm4941_vm4, %v14016_v9 }
 0x500   : > { %10468 = vmatprep.mubr.msk.f32.mxu1 %vm4941_vm4, %v15388_v20 }
 0x503   : > { %10469 = vmatmul.mubr.msk.f32.gmra.mrb[60].mxu1 %vm4941_vm4, %v14029_v1 }
 0x504   : > { %10471 = vmatprep.mubr.msk.f32.mxu1 %vm4941_vm4, %v15389_v36  ;;  %v15393_v36 = vld [vmem:[#allocation31_spill] sm:$0xff] }
 0x507   : > { %10472 = vmatmul.mubr.msk.f32.gmra.mrb[62].mxu1 %vm4941_vm4, %v14042_v46 }
 0x508   : > { %10474 = vmatprep.mubr.msk.f32.mxu1 %vm4941_vm4, %v15390_v54  ;;  %v15394_v54 = vld [vmem:[#allocation33_spill] sm:$0xff] }
 0x50b   : > { %10475 = vmatmul.mubr.msk.f32.gmra.mrb[64].mxu1 %vm4941_vm4, %v14055_v5 }
 0x50c   : > { %10477 = vmatprep.mubr.msk.f32.mxu1 %vm4941_vm4, %v15391_v47  ;;  %v15395_v47 = vld [vmem:[#allocation34_spill] sm:$0xff] }
 0x50f   : > { %10478 = vmatmul.mubr.msk.f32.gmra.mrb[66].mxu1 %vm4941_vm4, %v14068_v4 }
 0x510   : > { %10480 = vmatprep.mubr.msk.f32.mxu1 %vm4941_vm4, %v15392_v63  ;;  %v15396_v63 = vld [vmem:[#allocation35_spill] sm:$0xff] }
 0x513   : > { %10481 = vmatmul.mubr.msk.f32.gmra.mrb[68].mxu1 %vm4941_vm4, %v14081_v56 }
 0x514   : > { %10483 = vmatprep.mubr.msk.f32.mxu1 %vm4941_vm4, %v15393_v36  ;;  %v15397_v36 = vld [vmem:[#allocation36_spill] sm:$0xff] }
 0x517   : > { %10484 = vmatmul.mubr.msk.f32.gmra.mrb[70].mxu1 %vm4941_vm4, %v14094_v7 }
 0x518   : > { %10486 = vmatprep.mubr.msk.f32.mxu1 %vm4941_vm4, %v15394_v54  ;;  %v15398_v54 = vld [vmem:[#allocation39_spill] sm:$0xff] }
 0x51b   : > { %10487 = vmatmul.mubr.msk.f32.gmra.mrb[72].mxu1 %vm4941_vm4, %v14107_v45 }
 0x51c   : > { %10489 = vmatprep.mubr.msk.f32.mxu1 %vm4941_vm4, %v15395_v47 }
 0x51f   : > { %10490 = vmatmul.mubr.msk.f32.gmra.mrb[74].mxu1 %vm4941_vm4, %v14120_v25 }
 0x520   : > { %10492 = vmatprep.mubr.msk.f32.mxu1 %vm4941_vm4, %v15396_v63  ;;  %v6457_v63 = vrot.slane %v14261_v33, 2 }
 0x523   : > { %10493 = vmatmul.mubr.msk.f32.gmra.mrb[76].mxu1 %vm4941_vm4, %v14133_v27 }
 0x524   : > { %10495 = vmatprep.mubr.msk.f32.mxu1 %vm4941_vm4, %v15397_v36  ;;  %v6458_v36 = vrot.slane %v14265_v38, 2 }
 0x527   : > { %10496 = vmatmul.mubr.msk.f32.gmra.mrb[78].mxu1 %vm4941_vm4, %v14146_v15  ;;  %v6460_v15 = vrot.slane %v4806_v34, 2  ;;  %v8629_v34 = vld [vmem:[%s14860_s4 + $0x40] sm:$0xff] }
 0x528   : > { %10498 = vmatprep.mubr.msk.f32.mxu1 %vm4941_vm4, %v15398_v54  ;;  %v14413_v54 = vsel %vm1493_vm2, %v6457_v63, %v6458_v36 }
 0x52b   : > { %10499 = vmatmul.mubr.msk.f32.gmra.mrb[80].mxu1 %vm4941_vm4, %v14159_v48 }
 0x52c   : > { %10501 = vmatprep.mubr.msk.f32.mxu1 %vm4941_vm4, %v14165_v41  ;;  %v14418_v41 = vsel %vm1493_vm2, %v6458_v36, %v6460_v15  ;;  %v15421_v15 = vld [vmem:[#allocation17_spill] sm:$0xff] }
 0x52f   : > { %10502 = vmatmul.mubr.msk.f32.gmra.mrb[82].mxu1 %vm4941_vm4, %v14172_v18 }
 0x530   : > { %10504 = vmatprep.mubr.msk.f32.mxu1 %vm4941_vm4, %v14178_v51 }
 0x533   : > { %10505 = vmatmul.mubr.msk.f32.gmra.mrb[84].mxu1 %vm4941_vm4, %v14183_v30 }
 0x534   : > { %10507 = vmatprep.mubr.msk.f32.mxu1 %vm4941_vm4, %v14413_v54 }
 0x537   : > { %10508 = vmatmul.mubr.msk.f32.gmra.mrb[86].mxu1 %vm4941_vm4, %v14418_v41 }
 0x538   : > { %10512 = vmatprep.mubr.msk.f32.mxu1 %vm4941_vm4, %v13468_v28 }
 0x53b   : > { %10513 = vmatmul.mubr.msk.f32.vlgmr.msra.gmra.mrb[56].mxu1 %vm4941_vm4, %v13453_v37  ;;  %v15399_v37 = vld [vmem:[#allocation14_spill] sm:$0xff] }
 0x53c   : > { %10561 = vmatpush3.msra.mxu1 %v8596_v22  ;;  %10515 = vmatprep.mubr.msk.f32.mxu1 %vm4941_vm4, %v13480_v26  ;;  %v15400_v26 = vmov 0.0   ;;  %v15420_v22 = vld [vmem:[#allocation29_spill] sm:$0xff] }
 0x53d   : > { %10610 = vmatprep.subr.mxu1 %v8629_v34 }
 0x53f   : > { %10516 = vmatmul.mubr.msk.f32.gmra.mrb[58].mxu1 %vm4941_vm4, %v13498_v43  ;;  %v15401_v43 = vld [vmem:[#allocation45_spill] sm:$0xff] }
 0x540   : > { %10518 = vmatprep.mubr.msk.f32.mxu1 %vm4941_vm4, %v13532_v55 }
 0x543   : > { %10519 = vmatmul.mubr.msk.f32.gmra.mrb[60].mxu1 %vm4941_vm4, %v13517_v44  ;;  %v11410_v44 = vld [vmem:[%s11590_s25 + $0x270] sm:$0xff] }
 0x544   : > { %10521 = vmatprep.mubr.msk.f32.mxu1 %vm4941_vm4, %v13544_v16  ;;  %v4154_v28 = vrot.slane %v11410_v44, 2  ;;  %v11411_v16 = vld [vmem:[%s11590_s25 + $0x278] sm:$0x3] }
 0x547   : > { %10522 = vmatmul.mubr.msk.f32.gmra.mrb[62].mxu1 %vm4941_vm4, %v13562_v49  ;;  %v4156_v49 = vrot.slane %v11411_v16, 2 }
 0x548   : > { %10524 = vmatprep.mubr.msk.f32.mxu1 %vm4941_vm4, %v13596_v19 }
 0x549   : > { %v4157_v19 = vsel %vm1493_vm2, %v4154_v28, %v4156_v49 }
 0x54b   : > { %10525 = vmatmul.mubr.msk.f32.gmra.mrb[64].mxu1 %vm4941_vm4, %v13581_v14  ;;  %v15402_v14 = vrot.slane %v15401_v43, 2 }
 0x54c   : > { %10527 = vmatprep.mubr.msk.f32.mxu1 %vm4941_vm4, %v13608_v32  ;;  %v15404_v32 = vld [vmem:[#allocation7_spill] sm:$0xff] }
 0x54d   : > { %v4155_v55 = vsel %vm1493_vm2, %v15402_v14, %v4154_v28 }
 0x54e   : > { %10207 = vmatprep.mubr.msk.f32.mxu0 %vm599_vm1, %v4155_v55 }
 0x54f   : > { %10528 = vmatmul.mubr.msk.f32.gmra.mrb[66].mxu1 %vm4941_vm4, %v13626_v61  ;;  %10208 = vmatmul.mubr.msk.f32.gmra.mrb[78].mxu0 %vm599_vm1, %v4157_v19  ;;  %v15405_v61 = vld [vmem:[#allocation9_spill] sm:$0xff] }
 0x550   : > { %10530 = vmatprep.mubr.msk.f32.mxu1 %vm4941_vm4, %v13660_v60  ;;  %v15407_v60 = vld [vmem:[#allocation20_spill] sm:$0xff] }
 0x553   : > { %10531 = vmatmul.mubr.msk.f32.gmra.mrb[68].mxu1 %vm4941_vm4, %v13645_v17  ;;  %v15403_v17 = vld [vmem:[#allocation6_spill] sm:$0xff] }
 0x554   : > { %10533 = vmatprep.mubr.msk.f32.mxu1 %vm4941_vm4, %v13672_v57  ;;  %v15408_v57 = vld [vmem:[#allocation8_spill] sm:$0xff] }
 0x557   : > { %10534 = vmatmul.mubr.msk.f32.gmra.mrb[70].mxu1 %vm4941_vm4, %v13690_v39  ;;  %v15409_v39 = vld [vmem:[#allocation13_spill] sm:$0xff] }
 0x558   : > { %10536 = vmatprep.mubr.msk.f32.mxu1 %vm4941_vm4, %v13724_v42  ;;  %v15411_v42 = vld [vmem:[#allocation59_spill] sm:$0xff] }
 0x55b   : > { %10537 = vmatmul.mubr.msk.f32.gmra.mrb[72].mxu1 %vm4941_vm4, %v13709_v13  ;;  %v15406_v13 = vld [vmem:[#allocation15_spill] sm:$0xff] }
 0x55c   : > { %10539 = vmatprep.mubr.msk.f32.mxu1 %vm4941_vm4, %v13736_v21  ;;  %v15412_v21 = vld [vmem:[#allocation60_spill] sm:$0xff] }
 0x55f   : > { %10540 = vmatmul.mubr.msk.f32.gmra.mrb[74].mxu1 %vm4941_vm4, %v13754_v12  ;;  %v15413_v12 = vld [vmem:[#allocation61_spill] sm:$0xff] }
 0x560   : > { %10542 = vmatprep.mubr.msk.f32.mxu1 %vm4941_vm4, %v13788_v50  ;;  %v15415_v50 = vld [vmem:[#allocation66_spill] sm:$0xff] }
 0x563   : > { %10543 = vmatmul.mubr.msk.f32.gmra.mrb[76].mxu1 %vm4941_vm4, %v13773_v3  ;;  %v15410_v3 = vld [vmem:[#allocation16_spill] sm:$0xff] }
 0x564   : > { %10545 = vmatprep.mubr.msk.f32.mxu1 %vm4941_vm4, %v13800_v53  ;;  %v15416_v53 = vld [vmem:[#allocation69_spill] sm:$0xff] }
 0x567   : > { %10546 = vmatmul.mubr.msk.f32.gmra.mrb[78].mxu1 %vm4941_vm4, %v13818_v40  ;;  %v15417_v40 = vld [vmem:[#allocation73_spill] sm:$0xff] }
 0x568   : > { %10548 = vmatprep.mubr.msk.f32.mxu1 %vm4941_vm4, %v13852_v31  ;;  %v15418_v31 = vld [vmem:[#allocation75_spill] sm:$0xff] }
 0x56b   : > { %10549 = vmatmul.mubr.msk.f32.gmra.mrb[80].mxu1 %vm4941_vm4, %v13837_v29  ;;  %v15414_v29 = vld [vmem:[#allocation65_spill] sm:$0xff] }
 0x56c   : > { %10551 = vmatprep.mubr.msk.f32.mxu1 %vm4941_vm4, %v13881_v23  ;;  %v15419_v23 = vld [vmem:[#allocation21_spill] sm:$0xff] }
 0x56f   : > { %10552 = vmatmul.mubr.msk.f32.gmra.mrb[82].mxu1 %vm4941_vm4, %v15399_v37 }
 0x570   : > { %10554 = vmatprep.mubr.msk.f32.mxu1 %vm4941_vm4, %v14261_v33 }
 0x573   : > { %10555 = vmatmul.mubr.msk.f32.gmra.mrb[84].mxu1 %vm4941_vm4, %v14265_v38 }
 0x574   : > { %10557 = vmatprep.mubr.f32.mxu1 %v15400_v26 }
 0x577   : > { %10558 = vmatmul.mubr.f32.gmra.mrb[86].mxu1 %v15400_v26 }
 0x578   : > { %10562 = vmatprep.mubr.msk.f32.mxu1 %vm4941_vm4, %v15403_v17 }
 0x57b   : > { %10563 = vmatmul.mubr.msk.f32.vlgmr.msra.gmra.mrb[56].mxu1 %vm4941_vm4, %v15404_v32 }
 0x57c   : > { %10611 = vmatpush3.msra.mxu1 %v8629_v34  ;;  %10565 = vmatprep.mubr.msk.f32.mxu1 %vm4941_vm4, %v15405_v61 }
 0x57f   : > { %10566 = vmatmul.mubr.msk.f32.gmra.mrb[58].mxu1 %vm4941_vm4, %v15406_v13 }
 0x580   : > { %10568 = vmatprep.mubr.msk.f32.mxu1 %vm4941_vm4, %v15407_v60 }
 0x583   : > { %10569 = vmatmul.mubr.msk.f32.gmra.mrb[60].mxu1 %vm4941_vm4, %v15408_v57 }
 0x584   : > { %10571 = vmatprep.mubr.msk.f32.mxu1 %vm4941_vm4, %v15409_v39 }
 0x587   : > { %10572 = vmatmul.mubr.msk.f32.gmra.mrb[62].mxu1 %vm4941_vm4, %v15410_v3 }
 0x588   : > { %10574 = vmatprep.mubr.msk.f32.mxu1 %vm4941_vm4, %v15411_v42 }
 0x58b   : > { %10575 = vmatmul.mubr.msk.f32.gmra.mrb[64].mxu1 %vm4941_vm4, %v15412_v21 }
 0x58c   : > { %10577 = vmatprep.mubr.msk.f32.mxu1 %vm4941_vm4, %v15413_v12 }
 0x58f   : > { %10578 = vmatmul.mubr.msk.f32.gmra.mrb[66].mxu1 %vm4941_vm4, %v15414_v29 }
 0x590   : > { %10580 = vmatprep.mubr.msk.f32.mxu1 %vm4941_vm4, %v15415_v50 }
 0x593   : > { %10581 = vmatmul.mubr.msk.f32.gmra.mrb[68].mxu1 %vm4941_vm4, %v15416_v53 }
 0x594   : > { %10583 = vmatprep.mubr.msk.f32.mxu1 %vm4941_vm4, %v15417_v40 }
 0x597   : > { %10584 = vmatmul.mubr.msk.f32.gmra.mrb[70].mxu1 %vm4941_vm4, %v15377_v35 }
 0x598   : > { %10586 = vmatprep.mubr.msk.f32.mxu1 %vm4941_vm4, %v15418_v31 }
 0x59b   : > { %10587 = vmatmul.mubr.msk.f32.gmra.mrb[72].mxu1 %vm4941_vm4, %v15419_v23 }
 0x59c   : > { %10589 = vmatprep.mubr.msk.f32.mxu1 %vm4941_vm4, %v15380_v0 }
 0x59f   : > { %10590 = vmatmul.mubr.msk.f32.gmra.mrb[74].mxu1 %vm4941_vm4, %v15420_v22 }
 0x5a0   : > { %10592 = vmatprep.mubr.msk.f32.mxu1 %vm4941_vm4, %v15382_v2 }
 0x5a3   : > { %10593 = vmatmul.mubr.msk.f32.gmra.mrb[76].mxu1 %vm4941_vm4, %v15383_v59  ;;  %v15424_v59 = vld [vmem:[#allocation27_spill] sm:$0xff] }
 0x5a4   : > { %10595 = vmatprep.mubr.msk.f32.mxu1 %vm4941_vm4, %v13841_v52  ;;  %v15422_v52 = vld [vmem:[#allocation53_spill] sm:$0xff] }
 0x5a7   : > { %10596 = vmatmul.mubr.msk.f32.gmra.mrb[78].mxu1 %vm4941_vm4, %v15384_v11 }
 0x5a8   : > { %10598 = vmatprep.mubr.msk.f32.mxu1 %vm4941_vm4, %v13867_v24  ;;  %v15423_v24 = vld [vmem:[#allocation26_spill] sm:$0xff] }
 0x5ab   : > { %10599 = vmatmul.mubr.msk.f32.gmra.mrb[80].mxu1 %vm4941_vm4, %v13893_v58  ;;  %v15425_v58 = vld [vmem:[#allocation28_spill] sm:$0xff] }
 0x5ac   : > { %10601 = vmatprep.mubr.msk.f32.mxu1 %vm4941_vm4, %v15421_v15 }
 0x5af   : > { %10602 = vmatmul.mubr.msk.f32.gmra.mrb[82].mxu1 %vm4941_vm4, %v15385_v8 }
 0x5b0   : > { %10604 = vmatprep.mubr.msk.f32.mxu1 %vm4941_vm4, %v14338_v62 }
 0x5b3   : > { %10605 = vmatmul.mubr.msk.f32.gmra.mrb[84].mxu1 %vm4941_vm4, %v14343_v10 }
 0x5b4   : > { %10607 = vmatprep.mubr.msk.f32.mxu1 %vm4941_vm4, %v15422_v52 }
 0x5b7   : > { %10608 = vmatmul.mubr.msk.f32.gmra.mrb[86].mxu1 %vm4941_vm4, %v15422_v52 }
 0x5b8   : > { %10612 = vmatprep.mubr.msk.f32.mxu1 %vm4941_vm4, %v15387_v6 }
 0x5bb   : > { %10613 = vmatmul.mubr.msk.f32.vlgmr.msra.gmra.mrb[56].mxu1 %vm4941_vm4, %v14016_v9  ;;  %v15426_v9 = vld [vmem:[#allocation30_spill] sm:$0xff] }
 0x5bc   : > { %10615 = vmatprep.mubr.msk.f32.mxu1 %vm4941_vm4, %v15388_v20 }
 0x5bf   : > { %10616 = vmatmul.mubr.msk.f32.gmra.mrb[58].mxu1 %vm4941_vm4, %v14029_v1  ;;  %v15427_v1 = vld [vmem:[#allocation31_spill] sm:$0xff] }
 0x5c0   : > { %10618 = vmatprep.mubr.msk.f32.mxu1 %vm4941_vm4, %v15423_v24 }
 0x5c3   : > { %10619 = vmatmul.mubr.msk.f32.gmra.mrb[60].mxu1 %vm4941_vm4, %v14042_v46  ;;  %v15428_v46 = vld [vmem:[#allocation33_spill] sm:$0xff] }
 0x5c4   : > { %10621 = vmatprep.mubr.msk.f32.mxu1 %vm4941_vm4, %v15424_v59 }
 0x5c7   : > { %10622 = vmatmul.mubr.msk.f32.gmra.mrb[62].mxu1 %vm4941_vm4, %v14055_v5  ;;  %v15429_v5 = vld [vmem:[#allocation35_spill] sm:$0xff] }
 0x5c8   : > { %10624 = vmatprep.mubr.msk.f32.mxu1 %vm4941_vm4, %v15425_v58 }
 0x5cb   : > { %10625 = vmatmul.mubr.msk.f32.gmra.mrb[64].mxu1 %vm4941_vm4, %v14068_v4  ;;  %v15430_v4 = vld [vmem:[#allocation36_spill] sm:$0xff] }
 0x5cc   : > { %10627 = vmatprep.mubr.msk.f32.mxu1 %vm4941_vm4, %v15426_v9 }
 0x5cf   : > { %10628 = vmatmul.mubr.msk.f32.gmra.mrb[66].mxu1 %vm4941_vm4, %v14081_v56  ;;  %v15431_v56 = vld [vmem:[#allocation38_spill] sm:$0xff] }
 0x5d0   : > { %10630 = vmatprep.mubr.msk.f32.mxu1 %vm4941_vm4, %v15427_v1 }
 0x5d3   : > { %10631 = vmatmul.mubr.msk.f32.gmra.mrb[68].mxu1 %vm4941_vm4, %v14094_v7  ;;  %v15432_v7 = vld [vmem:[#allocation39_spill] sm:$0xff] }
 0x5d4   : > { %10633 = vmatprep.mubr.msk.f32.mxu1 %vm4941_vm4, %v15428_v46 }
 0x5d7   : > { %10634 = vmatmul.mubr.msk.f32.gmra.mrb[70].mxu1 %vm4941_vm4, %v14107_v45  ;;  %v15433_v45 = vld [vmem:[#allocation41_spill] sm:$0xff] }
 0x5d8   : > { %10636 = vmatprep.mubr.msk.f32.mxu1 %vm4941_vm4, %v15395_v47 }
 0x5db   : > { %10637 = vmatmul.mubr.msk.f32.gmra.mrb[72].mxu1 %vm4941_vm4, %v14120_v25  ;;  %v15434_v25 = vld [vmem:[#allocation19_spill] sm:$0xff] }
 0x5dc   : > { %10639 = vmatprep.mubr.msk.f32.mxu1 %vm4941_vm4, %v15429_v5 }
 0x5df   : > { %10640 = vmatmul.mubr.msk.f32.gmra.mrb[74].mxu1 %vm4941_vm4, %v14133_v27 }
 0x5e0   : > { %10642 = vmatprep.mubr.msk.f32.mxu1 %vm4941_vm4, %v15430_v4 }
 0x5e3   : > { %10643 = vmatmul.mubr.msk.f32.gmra.mrb[76].mxu1 %vm4941_vm4, %v15431_v56 }
 0x5e4   : > { %10645 = vmatprep.mubr.msk.f32.mxu1 %vm4941_vm4, %v15432_v7 }
 0x5e7   : > { %10646 = vmatmul.mubr.msk.f32.gmra.mrb[78].mxu1 %vm4941_vm4, %v14159_v48 }
 0x5e8   : > { %10648 = vmatprep.mubr.msk.f32.mxu1 %vm4941_vm4, %v15433_v45 }
 0x5eb   : > { %10649 = vmatmul.mubr.msk.f32.gmra.mrb[80].mxu1 %vm4941_vm4, %v14172_v18 }
 0x5ec   : > { %10651 = vmatprep.mubr.msk.f32.mxu1 %vm4941_vm4, %v14178_v51  ;;  %v14626_v51 = vld [vmem:[%s14861_s5] ss:$0 sm:$0xff] }
 0x5ef   : > { %10652 = vmatmul.mubr.msk.f32.gmra.mrb[82].mxu1 %vm4941_vm4, %v14183_v30 }
 0x5f0   : > { %10654 = vmatprep.mubr.msk.f32.mxu1 %vm4941_vm4, %v14413_v54 }
 0x5f3   : > { %10655 = vmatmul.mubr.msk.f32.gmra.mrb[84].mxu1 %vm4941_vm4, %v14418_v41  ;;  %v14632_v41 = vld [vmem:[%s14862_s6] ss:$0 sm:$0xff] }
 0x5f4   : > { %10657 = vmatprep.mubr.msk.f32.mxu1 %vm4941_vm4, %v15434_v25 }
 0x5f7   : > { %10658 = vmatmul.mubr.msk.f32.gmra.mrb[86].mxu1 %vm4941_vm4, %v15434_v25 }
 0x622   : > { %v10209_v27 = vpop.f32.mrb[78].mxu0 }
 0x623   : > { %v4495_v48 = vpop.f32.mrb[79].mxu0 }
 0x68e   : > { %v10614_v18 = vpop.f32.mrb[56].mxu1 }
 0x68f   : > { %v7528_v30 = vmax.f32 %v10614_v18, 0.0  ;;  %v7336_v33 = vpop.f32.mrb[57].mxu1 }
 0x690   : > { %v7527_v38 = vmax.f32 %v7336_v33, 0.0 }
 0x691   : > { %v7567_v11 = vmul.f32 %v14626_v51, %v7528_v30 }
 0x692   : > { %v7566_v0 = vmul.f32 %v14626_v51, %v7527_v38  ;;  %v10617_v2 = vpop.f32.mrb[58].mxu1 }
 0x693   : > { %v7606_v35 = vadd.f32 %v14632_v41, %v7567_v11  ;;  %v7530_v8 = vmax.f32 %v10617_v2, 0.0  ;;  %v7346_v62 = vpop.f32.mrb[59].mxu1 }
 0x694   : > { %v7605_v10 = vadd.f32 %v14632_v41, %v7566_v0  ;;  %v7529_v6 = vmax.f32 %v7346_v62, 0.0 }
 0x695   : > { %7638 = vst.msk [vmem:[%s14638_s17 + $0x8] sm:$0xff] %vm4941_vm4, %v7606_v35  ;;  %v7569_v20 = vmul.f32 %v14626_v51, %v7530_v8 }
 0x696   : > { %7637 = vst.msk [vmem:[%s14638_s17] sm:$0xff] %vm4941_vm4, %v7605_v10  ;;  %v7568_v36 = vmul.f32 %v14626_v51, %v7529_v6  ;;  %v10620_v54 = vpop.f32.mrb[60].mxu1 }
 0x697   : > { %v7608_v47 = vadd.f32 %v14632_v41, %v7569_v20  ;;  %v7532_v63 = vmax.f32 %v10620_v54, 0.0  ;;  %v7356_v34 = vpop.f32.mrb[61].mxu1 }
 0x698   : > { %v7607_v37 = vadd.f32 %v14632_v41, %v7568_v36  ;;  %v7531_v44 = vmax.f32 %v7356_v34, 0.0 }
 0x699   : > { %7640 = vst.msk [vmem:[%s14638_s17 + $0x18] sm:$0xff] %vm4941_vm4, %v7608_v47  ;;  %v7670_v28 = vmax.f32 %v7606_v35, %v7608_v47  ;;  %v7571_v26 = vmul.f32 %v14626_v51, %v7532_v63 }
 0x69a   : > { %7639 = vst.msk [vmem:[%s14638_s17 + $0x10] sm:$0xff] %vm4941_vm4, %v7607_v37  ;;  %v7669_v43 = vmax.f32 %v7605_v10, %v7607_v37  ;;  %v7570_v14 = vmul.f32 %v14626_v51, %v7531_v44  ;;  %v10623_v55 = vpop.f32.mrb[62].mxu1 }
 0x69b   : > { %7686 = vst.msk [vmem:[#allocation2 + $0x8] sm:$0xff] %vm4941_vm4, %v7670_v28  ;;  %v7610_v16 = vadd.f32 %v14632_v41, %v7571_v26  ;;  %v7534_v49 = vmax.f32 %v10623_v55, 0.0  ;;  %v7366_v17 = vpop.f32.mrb[63].mxu1 }
 0x69c   : > { %7685 = vst.msk [vmem:[#allocation2] sm:$0xff] %vm4941_vm4, %v7669_v43  ;;  %v7609_v19 = vadd.f32 %v14632_v41, %v7570_v14  ;;  %v7533_v32 = vmax.f32 %v7366_v17, 0.0 }
 0x69d   : > { %7642 = vst.msk [vmem:[%s14638_s17 + $0x28] sm:$0xff] %vm4941_vm4, %v7610_v16  ;;  %v7573_v61 = vmul.f32 %v14626_v51, %v7534_v49 }
 0x69e   : > { %7641 = vst.msk [vmem:[%s14638_s17 + $0x20] sm:$0xff] %vm4941_vm4, %v7609_v19  ;;  %v7572_v13 = vmul.f32 %v14626_v51, %v7533_v32  ;;  %v10626_v60 = vpop.f32.mrb[64].mxu1 }
 0x69f   : > { %v7612_v57 = vadd.f32 %v14632_v41, %v7573_v61  ;;  %v7536_v39 = vmax.f32 %v10626_v60, 0.0  ;;  %v7376_v3 = vpop.f32.mrb[65].mxu1 }
 0x6a0   : > { %v7611_v42 = vadd.f32 %v14632_v41, %v7572_v13  ;;  %v7535_v21 = vmax.f32 %v7376_v3, 0.0 }
 0x6a1   : > { %7644 = vst.msk [vmem:[%s14638_s17 + $0x38] sm:$0xff] %vm4941_vm4, %v7612_v57  ;;  %v7672_v12 = vmax.f32 %v7610_v16, %v7612_v57  ;;  %v7575_v29 = vmul.f32 %v14626_v51, %v7536_v39 }
 0x6a2   : > { %7643 = vst.msk [vmem:[%s14638_s17 + $0x30] sm:$0xff] %vm4941_vm4, %v7611_v42  ;;  %v7671_v50 = vmax.f32 %v7609_v19, %v7611_v42  ;;  %v7574_v53 = vmul.f32 %v14626_v51, %v7535_v21  ;;  %v10629_v40 = vpop.f32.mrb[66].mxu1 }
 0x6a3   : > { %v7701_v31 = vld [vmem:[#allocation2] ss:$2 sm:$0xff]  ;;  %v7717_v23 = vld [vmem:[#allocation2 + $0x1] ss:$2 sm:$0xff]  ;;  %7688 = vst.msk [vmem:[#allocation2 + $0x18] sm:$0xff] %vm4941_vm4, %v7672_v12  ;;  %v7614_v22 = vadd.f32 %v14632_v41, %v7575_v29  ;;  %v7538_v15 = vmax.f32 %v10629_v40, 0.0 }
 0x6a4   : > { %v7386_v52 = vpop.f32.mrb[67].mxu1  ;;  %v7732_v24 = vmax.f32 %v7701_v31, %v7717_v23  ;;  %7687 = vst.msk [vmem:[#allocation2 + $0x10] sm:$0xff] %vm4941_vm4, %v7671_v50  ;;  %v7613_v59 = vadd.f32 %v14632_v41, %v7574_v53 }
 0x6a5   : > { %v7537_v58 = vmax.f32 %v7386_v52, 0.0  ;;  %7646 = vst.msk [vmem:[%s14638_s17 + $0x48] sm:$0xff] %vm4941_vm4, %v7614_v22  ;;  %v7577_v9 = vmul.f32 %v14626_v51, %v7538_v15 }
 0x6a6   : > { %7645 = vst.msk [vmem:[%s14638_s17 + $0x40] sm:$0xff] %vm4941_vm4, %v7613_v59  ;;  %v10632_v46 = vpop.f32.mrb[68].mxu1  ;;  %7740 = vst.msk [vmem:[%s14688_s19] sm:$0xff] %vm4941_vm4, %v7732_v24 }
 0x6a7   : > { %v7576_v1 = vmul.f32 %v14626_v51, %v7537_v58  ;;  %v7616_v5 = vadd.f32 %v14632_v41, %v7577_v9  ;;  %v7540_v4 = vmax.f32 %v10632_v46, 0.0  ;;  %v7396_v56 = vpop.f32.mrb[69].mxu1 }
 0x6a8   : > { %v7539_v45 = vmax.f32 %v7396_v56, 0.0 }
 0x6a9   : > { %v7615_v7 = vadd.f32 %v14632_v41, %v7576_v1  ;;  %7648 = vst.msk [vmem:[%s14638_s17 + $0x58] sm:$0xff] %vm4941_vm4, %v7616_v5  ;;  %v7674_v25 = vmax.f32 %v7614_v22, %v7616_v5  ;;  %v7579_v27 = vmul.f32 %v14626_v51, %v7540_v4 }
 0x6aa   : > { %v7578_v18 = vmul.f32 %v14626_v51, %v7539_v45  ;;  %v10635_v30 = vpop.f32.mrb[70].mxu1 }
 0x6ab   : > { %7647 = vst.msk [vmem:[%s14638_s17 + $0x50] sm:$0xff] %vm4941_vm4, %v7615_v7  ;;  %v7673_v48 = vmax.f32 %v7613_v59, %v7615_v7  ;;  %v7703_v33 = vld [vmem:[#allocation2 + $0x10] ss:$2 sm:$0xff]  ;;  %v7719_v38 = vld [vmem:[#allocation2 + $0x11] ss:$2 sm:$0xff]  ;;  %7690 = vst.msk [vmem:[#allocation2 + $0x28] sm:$0xff] %vm4941_vm4, %v7674_v25  ;;  %v7618_v11 = vadd.f32 %v14632_v41, %v7579_v27 }
 0x6ac   : > { %v7542_v0 = vmax.f32 %v10635_v30, 0.0  ;;  %v7406_v2 = vpop.f32.mrb[71].mxu1  ;;  %v7733_v35 = vmax.f32 %v7703_v33, %v7719_v38  ;;  %v7617_v8 = vadd.f32 %v14632_v41, %v7578_v18 }
 0x6ad   : > { %7689 = vst.msk [vmem:[#allocation2 + $0x20] sm:$0xff] %vm4941_vm4, %v7673_v48  ;;  %v7541_v62 = vmax.f32 %v7406_v2, 0.0  ;;  %7650 = vst.msk [vmem:[%s14638_s17 + $0x68] sm:$0xff] %vm4941_vm4, %v7618_v11 }
 0x6ae   : > { %v7581_v10 = vmul.f32 %v14626_v51, %v7542_v0  ;;  %7649 = vst.msk [vmem:[%s14638_s17 + $0x60] sm:$0xff] %vm4941_vm4, %v7617_v8  ;;  %v10638_v20 = vpop.f32.mrb[72].mxu1  ;;  %7741 = vst.msk [vmem:[%s14688_s19 + $0x8] sm:$0xff] %vm4941_vm4, %v7733_v35 }
 0x6af   : > { %v7580_v6 = vmul.f32 %v14626_v51, %v7541_v62  ;;  %v7544_v54 = vmax.f32 %v10638_v20, 0.0  ;;  %v7416_v47 = vpop.f32.mrb[73].mxu1 }
 0x6b0   : > { %v7620_v36 = vadd.f32 %v14632_v41, %v7581_v10  ;;  %v7543_v34 = vmax.f32 %v7416_v47, 0.0 }
 0x6b1   : > { %v7619_v63 = vadd.f32 %v14632_v41, %v7580_v6  ;;  %v7583_v44 = vmul.f32 %v14626_v51, %v7544_v54 }
 0x6b2   : > { %7652 = vst.msk [vmem:[%s14638_s17 + $0x78] sm:$0xff] %vm4941_vm4, %v7620_v36  ;;  %v7676_v37 = vmax.f32 %v7618_v11, %v7620_v36  ;;  %v7582_v26 = vmul.f32 %v14626_v51, %v7543_v34  ;;  %v10641_v43 = vpop.f32.mrb[74].mxu1 }
 0x6b3   : > { %7651 = vst.msk [vmem:[%s14638_s17 + $0x70] sm:$0xff] %vm4941_vm4, %v7619_v63  ;;  %v7675_v28 = vmax.f32 %v7617_v8, %v7619_v63  ;;  %v7622_v16 = vadd.f32 %v14632_v41, %v7583_v44  ;;  %v7546_v49 = vmax.f32 %v10641_v43, 0.0  ;;  %v7426_v17 = vpop.f32.mrb[75].mxu1 }
 0x6b4   : > { %v7705_v14 = vld [vmem:[#allocation2 + $0x20] ss:$2 sm:$0xff]  ;;  %v7721_v55 = vld [vmem:[#allocation2 + $0x21] ss:$2 sm:$0xff]  ;;  %7692 = vst.msk [vmem:[#allocation2 + $0x38] sm:$0xff] %vm4941_vm4, %v7676_v37  ;;  %v7621_v32 = vadd.f32 %v14632_v41, %v7582_v26  ;;  %v7545_v61 = vmax.f32 %v7426_v17, 0.0 }
 0x6b5   : > { %v7734_v19 = vmax.f32 %v7705_v14, %v7721_v55  ;;  %7691 = vst.msk [vmem:[#allocation2 + $0x30] sm:$0xff] %vm4941_vm4, %v7675_v28  ;;  %7654 = vst.msk [vmem:[%s14638_s17 + $0x88] sm:$0xff] %vm4941_vm4, %v7622_v16  ;;  %v7585_v13 = vmul.f32 %v14626_v51, %v7546_v49 }
 0x6b6   : > { %7653 = vst.msk [vmem:[%s14638_s17 + $0x80] sm:$0xff] %vm4941_vm4, %v7621_v32  ;;  %v7584_v60 = vmul.f32 %v14626_v51, %v7545_v61  ;;  %v10644_v57 = vpop.f32.mrb[76].mxu1 }
 0x6b7   : > { %7742 = vst.msk [vmem:[%s14688_s19 + $0x10] sm:$0xff] %vm4941_vm4, %v7734_v19  ;;  %v7624_v39 = vadd.f32 %v14632_v41, %v7585_v13  ;;  %v7548_v3 = vmax.f32 %v10644_v57, 0.0  ;;  %v7436_v42 = vpop.f32.mrb[77].mxu1 }
 0x6b8   : > { %v7623_v21 = vadd.f32 %v14632_v41, %v7584_v60  ;;  %v7547_v12 = vmax.f32 %v7436_v42, 0.0 }
 0x6b9   : > { %7656 = vst.msk [vmem:[%s14638_s17 + $0x98] sm:$0xff] %vm4941_vm4, %v7624_v39  ;;  %v7678_v29 = vmax.f32 %v7622_v16, %v7624_v39  ;;  %v7587_v50 = vmul.f32 %v14626_v51, %v7548_v3 }
 0x6ba   : > { %7655 = vst.msk [vmem:[%s14638_s17 + $0x90] sm:$0xff] %vm4941_vm4, %v7623_v21  ;;  %v7677_v53 = vmax.f32 %v7621_v32, %v7623_v21  ;;  %v7586_v40 = vmul.f32 %v14626_v51, %v7547_v12  ;;  %v10647_v31 = vpop.f32.mrb[78].mxu1 }
 0x6bb   : > { %7694 = vst.msk [vmem:[#allocation2 + $0x48] sm:$0xff] %vm4941_vm4, %v7678_v29  ;;  %v7626_v15 = vadd.f32 %v14632_v41, %v7587_v50  ;;  %v7550_v52 = vmax.f32 %v10647_v31, 0.0  ;;  %v7446_v24 = vpop.f32.mrb[79].mxu1 }
 0x6bc   : > { %v7707_v23 = vld [vmem:[#allocation2 + $0x30] ss:$2 sm:$0xff]  ;;  %v7723_v22 = vld [vmem:[#allocation2 + $0x31] ss:$2 sm:$0xff]  ;;  %7693 = vst.msk [vmem:[#allocation2 + $0x40] sm:$0xff] %vm4941_vm4, %v7677_v53  ;;  %v7625_v58 = vadd.f32 %v14632_v41, %v7586_v40  ;;  %v7549_v9 = vmax.f32 %v7446_v24, 0.0 }
 0x6bd   : > { %v7735_v59 = vmax.f32 %v7707_v23, %v7723_v22  ;;  %7658 = vst.msk [vmem:[%s14638_s17 + $0xa8] sm:$0xff] %vm4941_vm4, %v7626_v15  ;;  %v7589_v1 = vmul.f32 %v14626_v51, %v7550_v52 }
 0x6be   : > { %7657 = vst.msk [vmem:[%s14638_s17 + $0xa0] sm:$0xff] %vm4941_vm4, %v7625_v58  ;;  %v7588_v46 = vmul.f32 %v14626_v51, %v7549_v9  ;;  %v10650_v5 = vpop.f32.mrb[80].mxu1 }
 0x6bf   : > { %7743 = vst.msk [vmem:[%s14688_s19 + $0x18] sm:$0xff] %vm4941_vm4, %v7735_v59  ;;  %v7628_v4 = vadd.f32 %v14632_v41, %v7589_v1  ;;  %v7552_v56 = vmax.f32 %v10650_v5, 0.0  ;;  %v7456_v7 = vpop.f32.mrb[81].mxu1 }
 0x6c0   : > { %v7627_v45 = vadd.f32 %v14632_v41, %v7588_v46  ;;  %v7551_v25 = vmax.f32 %v7456_v7, 0.0 }
 0x6c1   : > { %7660 = vst.msk [vmem:[%s14638_s17 + $0xb8] sm:$0xff] %vm4941_vm4, %v7628_v4  ;;  %v7680_v27 = vmax.f32 %v7626_v15, %v7628_v4  ;;  %v7591_v48 = vmul.f32 %v14626_v51, %v7552_v56 }
 0x6c2   : > { %7659 = vst.msk [vmem:[%s14638_s17 + $0xb0] sm:$0xff] %vm4941_vm4, %v7627_v45  ;;  %v7679_v18 = vmax.f32 %v7625_v58, %v7627_v45  ;;  %v7590_v30 = vmul.f32 %v14626_v51, %v7551_v25  ;;  %v10653_v33 = vpop.f32.mrb[82].mxu1 }
 0x6c3   : > { %v7709_v38 = vld [vmem:[#allocation2 + $0x40] ss:$2 sm:$0xff]  ;;  %v7725_v11 = vld [vmem:[#allocation2 + $0x41] ss:$2 sm:$0xff]  ;;  %7696 = vst.msk [vmem:[#allocation2 + $0x58] sm:$0xff] %vm4941_vm4, %v7680_v27  ;;  %v7630_v0 = vadd.f32 %v14632_v41, %v7591_v48  ;;  %v7554_v2 = vmax.f32 %v10653_v33, 0.0 }
 0x6c4   : > { %v7466_v35 = vpop.f32.mrb[83].mxu1  ;;  %v7736_v8 = vmax.f32 %v7709_v38, %v7725_v11  ;;  %7695 = vst.msk [vmem:[#allocation2 + $0x50] sm:$0xff] %vm4941_vm4, %v7679_v18  ;;  %v7629_v62 = vadd.f32 %v14632_v41, %v7590_v30 }
 0x6c5   : > { %v7553_v10 = vmax.f32 %v7466_v35, 0.0  ;;  %7662 = vst.msk [vmem:[%s14638_s17 + $0xc8] sm:$0xff] %vm4941_vm4, %v7630_v0  ;;  %v7593_v6 = vmul.f32 %v14626_v51, %v7554_v2 }
 0x6c6   : > { %7661 = vst.msk [vmem:[%s14638_s17 + $0xc0] sm:$0xff] %vm4941_vm4, %v7629_v62  ;;  %v10656_v36 = vpop.f32.mrb[84].mxu1  ;;  %7744 = vst.msk [vmem:[%s14688_s19 + $0x20] sm:$0xff] %vm4941_vm4, %v7736_v8 }
 0x6c7   : > { %v7592_v20 = vmul.f32 %v14626_v51, %v7553_v10  ;;  %v7632_v54 = vadd.f32 %v14632_v41, %v7593_v6  ;;  %v7556_v47 = vmax.f32 %v10656_v36, 0.0  ;;  %v7476_v63 = vpop.f32.mrb[85].mxu1 }
 0x6c8   : > { %v7555_v37 = vmax.f32 %v7476_v63, 0.0 }
 0x6c9   : > { %v7631_v34 = vadd.f32 %v14632_v41, %v7592_v20  ;;  %7664 = vst.msk [vmem:[%s14638_s17 + $0xd8] sm:$0xff] %vm4941_vm4, %v7632_v54  ;;  %v7682_v44 = vmax.f32 %v7630_v0, %v7632_v54  ;;  %v7595_v28 = vmul.f32 %v14626_v51, %v7556_v47 }
 0x6ca   : > { %v7594_v43 = vmul.f32 %v14626_v51, %v7555_v37  ;;  %v10659_v14 = vpop.f32.mrb[86].mxu1 }
 0x6cb   : > { %7663 = vst.msk [vmem:[%s14638_s17 + $0xd0] sm:$0xff] %vm4941_vm4, %v7631_v34  ;;  %v7681_v26 = vmax.f32 %v7629_v62, %v7631_v34  ;;  %v7711_v55 = vld [vmem:[#allocation2 + $0x50] ss:$2 sm:$0xff]  ;;  %v7727_v16 = vld [vmem:[#allocation2 + $0x51] ss:$2 sm:$0xff]  ;;  %7698 = vst.msk [vmem:[#allocation2 + $0x68] sm:$0xff] %vm4941_vm4, %v7682_v44  ;;  %v7634_v49 = vadd.f32 %v14632_v41, %v7595_v28 }
 0x6cc   : > { %v7558_v17 = vmax.f32 %v10659_v14, 0.0  ;;  %v7486_v19 = vpop.f32.mrb[87].mxu1  ;;  %v7737_v32 = vmax.f32 %v7711_v55, %v7727_v16  ;;  %v7633_v61 = vadd.f32 %v14632_v41, %v7594_v43 }
 0x6cd   : > { %7697 = vst.msk [vmem:[#allocation2 + $0x60] sm:$0xff] %vm4941_vm4, %v7681_v26  ;;  %v7557_v13 = vmax.f32 %v7486_v19, 0.0  ;;  %7666 = vst.msk [vmem:[%s14638_s17 + $0xe8] sm:$0xff] %vm4941_vm4, %v7634_v49 }
 0x6ce   : > { %v7597_v60 = vmul.f32 %v14626_v51, %v7558_v17  ;;  %7665 = vst.msk [vmem:[%s14638_s17 + $0xe0] sm:$0xff] %vm4941_vm4, %v7633_v61  ;;  %7745 = vst.msk [vmem:[%s14688_s19 + $0x28] sm:$0xff] %vm4941_vm4, %v7737_v32 }
 0x6cf   : > { %v7596_v57 = vmul.f32 %v14626_v51, %v7557_v13 }
 0x6d0   : > { %v7636_v39 = vadd.f32 %v14632_v41, %v7597_v60 }
 0x6d1   : > { %v7635_v3 = vadd.f32 %v14632_v41, %v7596_v57 }
 0x6d2   : > { %7668 = vst.msk [vmem:[%s14638_s17 + $0xf8] sm:$0xff] %vm4941_vm4, %v7636_v39  ;;  %v7684_v42 = vmax.f32 %v7634_v49, %v7636_v39 }
 0x6d3   : > { %7667 = vst.msk [vmem:[%s14638_s17 + $0xf0] sm:$0xff] %vm4941_vm4, %v7635_v3  ;;  %v7683_v21 = vmax.f32 %v7633_v61, %v7635_v3 }
 0x6d4   : > { %v7713_v12 = vld [vmem:[#allocation2 + $0x60] ss:$2 sm:$0xff]  ;;  %v7729_v29 = vld [vmem:[#allocation2 + $0x61] ss:$2 sm:$0xff]  ;;  %7700 = vst.msk [vmem:[#allocation2 + $0x78] sm:$0xff] %vm4941_vm4, %v7684_v42 }
 0x6d5   : > { %v7738_v51 = vmax.f32 %v7713_v12, %v7729_v29  ;;  %7699 = vst.msk [vmem:[#allocation2 + $0x70] sm:$0xff] %vm4941_vm4, %v7683_v21 }
 0x6d7   : > { %7746 = vst.msk [vmem:[%s14688_s19 + $0x30] sm:$0xff] %vm4941_vm4, %v7738_v51 }
 0x6dc   : > { %v7715_v41 = vld [vmem:[#allocation2 + $0x70] ss:$2 sm:$0xff]  ;;  %v7731_v50 = vld [vmem:[#allocation2 + $0x71] ss:$2 sm:$0xff] }
 0x6dd   : > { %v7739_v53 = vmax.f32 %v7715_v41, %v7731_v50 }
 0x6df   : > { %7747 = vst.msk [vmem:[%s14688_s19 + $0x38] sm:$0xff] %vm4941_vm4, %v7739_v53 }
 0x6e0   : > { %11425 = shalt.err (!%p11422_p3)
}
 0x6e1   : > { %s11426_s17 = scalar_lea.hbm %s14807_s24, 1024  ;;  %s11430_s19 = scalar_lea.hbm %s14864_s8, 2048 }
 0x6e2   : > { %p11427_p4 = scmp.ne.s32.totalorder %s14807_s24, %s11426_s17  ;;  %p11431_p9 = scmp.lt.u32.totalorder %s14807_s24, %s14864_s8 }
 0x6e3   : > { %p11432_p10 = scmp.lt.u32.totalorder %s11430_s19, %s11426_s17  ;;  %p11434_p12 = scmp.lt.u32.totalorder %s11426_s17, %s14807_s24 }
 0x6e4   : > { %p11428_p7 = pnand %p11427_p4, %p11563_p5 }
 0x6e5   : > { %p11433_p11 = por %p11432_p10, %p11431_p9 }
 0x6e6   : > { %p11429_p8 = pneg %p11428_p7 }
 0x6e7   : > { %p11435_p13 = por %p11434_p12, %p11433_p11 }
 0x6e9   : > { %p11436_p0 = pnand %p11435_p13, %p11429_p8 }
 0x6eb   : > { %11439 = shalt.err (!%p11436_p0)
}
 0x6ec   : > { %s11478_s23 = smov 128   ;;  %s11479_s9 = smov 8  }
 0x6ed   : > { %11317 = dma.vmem_to_hbm [thread:$0]  (%p11563_p5), %s14809_s22, 1024, %s14807_s24, %s14815_s26, %s11478_s23, %s11478_s23, %s11479_s9  }
 0x6ee PF: > { %p11323_p1 = scmp.ge.s32.totalorder %s11474_s30, 2  ;;  %s7793_s10 = sand.u32 1, %s11462_s27  }
 0x6ef   : > { %s7794_s12 = scalar_lea.sflag [#allocation4], %s7793_s10 }
 0x6f0   : > { %p11320_p2 = pnand %p11323_p1, %p11567_p6 }
 0x6f2   : > { %11457 = dma.done.wait (!%p11320_p2), %s7794_s12, 1024  }
 0x6f3   : > { %11459 = vsyncadd (!%p11320_p2), %s7794_s12, 4294966272  ;;  %p19_p3 = scmp.ge.s32.totalorder %s11550_s11, 4   ;;  %s15435_s27 = smov %s11466_s28 }
 0x6f4   : > { %s15436_s28 = smov %s11470_s29  ;;  %s15437_s29 = smov %s11561_s14 }
 0x6f5   : > { %s15438_s30 = smov %s11550_s11  ;;  %21 = sbr.rel (!%p19_p3) target bundleno = 3 (0x3), region = 126 }
 0x6fc   :  { %7799 = vsyncpa [#allocation4], 1 }
 0x6fd   :  { %7801 = vsyncpa [#allocation4 + $0x1], 1 }

</bundles_post_ra>
